<compile_context>
chip_gen: v5e
topology: v5e:2x2
jax: 0.10.0
libtpu: 0.0.40
codegen_flags: <defaults>
</compile_context>

<pallas_src>
import math
import numpy as np
import jax
import jax.numpy as jnp
from jax.experimental import pallas as pl
from jax.experimental.pallas import tpu as pltpu  # noqa: F401  (TPU backend)

# ---------------- model hyper-params (small, consistent with the module) ------
EMB = 32           # emb_size
HEADS = 4          # num_heads (must divide EMB)
HEAD_DIM = EMB // HEADS
NPTS = 8           # num_of_points
FF = 4 * EMB       # forward_expansion * emb_size
BS = 2             # batch
N_FEAT = 16        # feature sequence length n
NC = 8             # n_classes (number of object queries)
EPS = 1e-5
SCALE = EMB ** 0.5            # module scales by sqrt(emb_size), not sqrt(head_dim)
INV_SCALE = 1.0 / SCALE


# ---------------- in-kernel math helpers --------------------------------------

def _layernorm2d(x, gamma, beta):
    # x: (R, EMB); gamma/beta: (1, EMB)
    mu = jnp.mean(x, axis=-1, keepdims=True)
    var = jnp.mean((x - mu) ** 2, axis=-1, keepdims=True)
    return (x - mu) * jax.lax.rsqrt(var + EPS) * gamma + beta


def _softmax_last(x):
    m = jnp.max(x, axis=-1, keepdims=True)
    p = jnp.exp(x - m)
    return p * pl.reciprocal(jnp.sum(p, axis=-1, keepdims=True), approx=True)


def _gelu_tanh(x):
    # tanh-approximation GELU (EUP tanh); ~1e-3 abs diff vs exact erf GELU.
    c = 0.7978845608028654
    return 0.5 * x * (1.0 + jnp.tanh(c * (x + 0.044715 * x * x * x)))


# ---------------- the fused Pallas kernel --------------------------------------

def decoder_block_kernel(feature_ref, query_ref,
                         ln1g_ref, ln1b_ref,
                         wq_ref, bq_ref, wk_ref, bk_ref, wv_ref, bv_ref,
                         wo_ref, bo_ref,
                         ln2g_ref, ln2b_ref,
                         wpts_ref, bpts_ref, ww_ref, bw_ref,
                         wk2_ref, bk2_ref, wv2_ref, bv2_ref, wo2_ref, bo2_ref,
                         ln3g_ref, ln3b_ref, w1_ref, b1_ref, w2_ref, b2_ref,
                         out_ref):
    f32 = jnp.float32

    # ======== p1: x + projection(MHA(LN(x))) ===================================
    x3 = query_ref[...]                                   # (BS, NC, EMB)
    x2 = x3.reshape(BS * NC, EMB)                         # rows on sublanes, EMB on lanes
    xn2 = _layernorm2d(x2, ln1g_ref[...], ln1b_ref[...])

    q3 = (jnp.dot(xn2, wq_ref[...], preferred_element_type=f32)
          + bq_ref[...]).reshape(BS, NC, EMB)
    k3 = (jnp.dot(xn2, wk_ref[...], preferred_element_type=f32)
          + bk_ref[...]).reshape(BS, NC, EMB)
    v3 = (jnp.dot(xn2, wv_ref[...], preferred_element_type=f32)
          + bv_ref[...]).reshape(BS, NC, EMB)

    wo = wo_ref[...]                                      # hoisted weight load
    acc2 = jnp.zeros((BS * NC, EMB), f32)
    for h in range(HEADS):                                # unrolled; per-head output
        sl = slice(h * HEAD_DIM, (h + 1) * HEAD_DIM)      # projection is accumulated
        en = jnp.einsum('bqd,bkd->bqk', q3[..., sl], k3[..., sl],
                        preferred_element_type=f32) * INV_SCALE
        att = _softmax_last(en)
        oh = jnp.einsum('bqk,bkd->bqd', att, v3[..., sl],
                        preferred_element_type=f32)       # (BS, NC, HEAD_DIM)
        acc2 = acc2 + jnp.dot(oh.reshape(BS * NC, HEAD_DIM), wo[sl, :],
                              preferred_element_type=f32)
    x2 = x2 + acc2 + bo_ref[...]                          # residual add (p1)

    # ======== self.ln + fc_pts / fc_w ==========================================
    xq2 = _layernorm2d(x2, ln2g_ref[...], ln2b_ref[...])              # (B*NC, EMB)
    logits = jnp.dot(xq2, wpts_ref[...], preferred_element_type=f32) + bpts_ref[...]
    rw = _softmax_last(jnp.dot(xq2, ww_ref[...], preferred_element_type=f32)
                       + bw_ref[...])                                 # (B*NC, NPTS)

    # ======== deformable sampling: gather == weighted one-hot matmul ===========
    sig = 1.0 / (1.0 + jnp.exp(-logits))                  # exact sigmoid (index safety)
    idx = jnp.clip(jnp.floor(sig * N_FEAT), 0.0, N_FEAT - 1).astype(jnp.int32)
    f_iota = jax.lax.broadcasted_iota(jnp.int32, (BS * NC, NPTS, N_FEAT), 2)
    selw = jnp.where(idx[..., None] == f_iota, rw[..., None], 0.0)    # (B*NC, NPTS, N_FEAT)
    # contract against the shared feature map per batch element (no feature duplication)
    deform = jnp.einsum('bpf,bfe->bpe',
                        selw.reshape(BS, NC * NPTS, N_FEAT), feature_ref[...],
                        preferred_element_type=f32)                   # (BS, NC*NPTS, EMB)

    # ======== deformable cross attention, all NC groups batched ================
    d2 = deform.reshape(BS * NC * NPTS, EMB)
    kg = (jnp.dot(d2, wk2_ref[...], preferred_element_type=f32)
          + bk2_ref[...]).reshape(BS * NC, NPTS, EMB)
    vg = (jnp.dot(d2, wv2_ref[...], preferred_element_type=f32)
          + bv2_ref[...]).reshape(BS * NC, NPTS, EMB)

    # queries are the post-LN query used directly (no projection), broadcast per group
    xq3 = xq2.reshape(BS, NC, EMB)
    qg = jnp.broadcast_to(xq3[:, None], (BS, NC, NC, EMB)).reshape(BS * NC, NC, EMB)

    wo2 = wo2_ref[...]
    accg = jnp.zeros((BS * NC, EMB), f32)
    for h in range(HEADS):
        sl = slice(h * HEAD_DIM, (h + 1) * HEAD_DIM)
        en = jnp.einsum('gqd,gkd->gqk', qg[..., sl], kg[..., sl],
                        preferred_element_type=f32) * INV_SCALE       # (B*NC, NC, NPTS)
        att = _softmax_last(en)
        # sum over queries BEFORE the value contraction (values are q-independent)
        attq = jnp.sum(att, axis=1)                                   # (B*NC, NPTS)
        ohs = jnp.sum(attq[..., None] * vg[..., sl], axis=1)          # (B*NC, HEAD_DIM)
        accg = accg + jnp.dot(ohs, wo2[sl, :], preferred_element_type=f32)
    # sum_q(out @ wo2 + bo2) == (sum_q out) @ wo2 + NC * bo2
    ans2 = accg + float(NC) * bo2_ref[...]                            # (B*NC, EMB)

    # ======== p3: x + FFN(LN(x)) ================================================
    xn3 = _layernorm2d(ans2, ln3g_ref[...], ln3b_ref[...])
    hh = jnp.dot(xn3, w1_ref[...], preferred_element_type=f32) + b1_ref[...]   # (B*NC, FF)
    hh = _gelu_tanh(hh)
    y = jnp.dot(hh, w2_ref[...], preferred_element_type=f32) + b2_ref[...]     # (B*NC, EMB)

    out_ref[...] = (y + ans2).reshape(BS, NC, EMB)


# ---------------- wrapper -------------------------------------------------------

def forward(feature, query, p):
    # single fused, gridless pallas_call: every operand lives fully in VMEM
    return pl.pallas_call(
        decoder_block_kernel,
        out_shape=jax.ShapeDtypeStruct((BS, NC, EMB), jnp.float32),
    )(feature, query,
      p['ln1_g'], p['ln1_b'],
      p['wq'], p['bq'], p['wk'], p['bk'], p['wv'], p['bv'], p['wo'], p['bo'],
      p['ln2_g'], p['ln2_b'],
      p['wpts'], p['bpts'], p['ww'], p['bw'],
      p['wk2'], p['bk2'], p['wv2'], p['bv2'], p['wo2'], p['bo2'],
      p['ln3_g'], p['ln3_b'], p['w1'], p['b1'], p['w2'], p['b2'])


# ---------------- pure-JAX reference (mirrors the PyTorch module) ---------------

def _ref_ln(x, g, b):
    mu = x.mean(-1, keepdims=True)
    var = ((x - mu) ** 2).mean(-1, keepdims=True)
    return (x - mu) / jnp.sqrt(var + EPS) * g + b


def _ref_mha_core(q, k, v):
    def split(t):
        b, l, _ = t.shape
        return t.reshape(b, l, HEADS, HEAD_DIM).transpose(0, 2, 1, 3)
    qh, kh, vh = split(q), split(k), split(v)
    en = jnp.einsum('bhqd,bhkd->bhqk', qh, kh) / SCALE
    a = jax.nn.softmax(en, axis=-1)
    o = jnp.einsum('bhqk,bhkd->bhqd', a, vh)
    b_, h, l, d = o.shape
    return o.transpose(0, 2, 1, 3).reshape(b_, l, h * d)


def ref_forward(feature, query, p):
    # p1
    x = query
    xn = _ref_ln(x, p['ln1_g'], p['ln1_b'])
    q = xn @ p['wq'] + p['bq']
    k = xn @ p['wk'] + p['bk']
    v = xn @ p['wv'] + p['bv']
    x = x + (_ref_mha_core(q, k, v) @ p['wo'] + p['bo'])
    # self.ln
    xq = _ref_ln(x, p['ln2_g'], p['ln2_b'])
    # deformable cross attention
    logits = xq @ p['wpts'] + p['bpts']
    rw = jax.nn.softmax(xq @ p['ww'] + p['bw'], axis=-1)
    idx = jnp.clip(jnp.floor(jax.nn.sigmoid(logits) * N_FEAT), 0, N_FEAT - 1).astype(jnp.int32)
    gathered = jax.vmap(lambda f, ix: f[ix])(feature, idx)        # (BS, NC, NPTS, EMB)
    deform = gathered * rw[..., None]
    outs = []
    for i in range(NC):
        t = deform[:, i]                                          # (BS, NPTS, EMB)
        k2 = t @ p['wk2'] + p['bk2']
        v2 = t @ p['wv2'] + p['bv2']
        o = _ref_mha_core(xq, k2, v2) @ p['wo2'] + p['bo2']
        outs.append(o.sum(axis=1))
    ans = jnp.stack(outs, axis=1)                                 # (BS, NC, EMB)
    # p3 (exact-erf GELU, as in nn.GELU)
    xn3 = _ref_ln(ans, p['ln3_g'], p['ln3_b'])
    h = xn3 @ p['w1'] + p['b1']
    h = 0.5 * h * (1.0 + jax.scipy.special.erf(h / jnp.sqrt(2.0)))
    y = h @ p['w2'] + p['b2']
    return y + ans


# ---------------- deterministic parameter init ----------------------------------

def init_params(key):
    ks = list(jax.random.split(key, 32))

    def nxt():
        return ks.pop()

    def linear(din, dout):
        w = jax.random.normal(nxt(), (din, dout), jnp.float32) / math.sqrt(din)
        b = jax.random.normal(nxt(), (1, dout), jnp.float32) * 0.02
        return w, b

    def ln_params():
        g = 1.0 + 0.1 * jax.random.normal(nxt(), (1, EMB), jnp.float32)
        b = 0.02 * jax.random.normal(nxt(), (1, EMB), jnp.float32)
        return g, b

    p = {}
    p['ln1_g'], p['ln1_b'] = ln_params()
    p['wq'], p['bq'] = linear(EMB, EMB)
    p['wk'], p['bk'] = linear(EMB, EMB)
    p['wv'], p['bv'] = linear(EMB, EMB)
    p['wo'], p['bo'] = linear(EMB, EMB)
    p['ln2_g'], p['ln2_b'] = ln_params()
    p['wpts'], p['bpts'] = linear(EMB, NPTS)
    p['ww'], p['bw'] = linear(EMB, NPTS)
    p['wk2'], p['bk2'] = linear(EMB, EMB)
    p['wv2'], p['bv2'] = linear(EMB, EMB)
    p['wo2'], p['bo2'] = linear(EMB, EMB)
    p['ln3_g'], p['ln3_b'] = ln_params()
    p['w1'], p['b1'] = linear(EMB, FF)
    p['w2'], p['b2'] = linear(FF, EMB)
    return p


# ---------------- main -----------------------------------------------------------

if __name__ == "__main__":
    key = jax.random.PRNGKey(0)
    kf, kq, kp = jax.random.split(key, 3)
    feature = jax.random.normal(kf, (BS, N_FEAT, EMB), dtype=jnp.float32)
    query = jax.random.normal(kq, (BS, NC, EMB), dtype=jnp.float32)
    params = init_params(kp)

    fwd = jax.jit(forward)
    out = jax.block_until_ready(fwd(feature, query, params))
    assert out.shape == (BS, NC, EMB)
    assert bool(jnp.all(jnp.isfinite(out)))

    # End-to-end correctness check against a pure-JAX reference of the PyTorch module.
    ref = ref_forward(feature, query, params)
    np.testing.assert_allclose(np.asarray(out), np.asarray(ref), rtol=5e-2, atol=5e-2)

    print("KERNEL_OK")
</pallas_src>

<mosaic_0001>
module attributes {stable_mosaic.version = 11 : i64} {
  func.func @decoder_block_kernel(%arg0: memref<2x16x32xf32, #tpu.memory_space<vmem>>, %arg1: memref<2x8x32xf32, #tpu.memory_space<vmem>>, %arg2: memref<1x32xf32, #tpu.memory_space<vmem>>, %arg3: memref<1x32xf32, #tpu.memory_space<vmem>>, %arg4: memref<32x32xf32, #tpu.memory_space<vmem>>, %arg5: memref<1x32xf32, #tpu.memory_space<vmem>>, %arg6: memref<32x32xf32, #tpu.memory_space<vmem>>, %arg7: memref<1x32xf32, #tpu.memory_space<vmem>>, %arg8: memref<32x32xf32, #tpu.memory_space<vmem>>, %arg9: memref<1x32xf32, #tpu.memory_space<vmem>>, %arg10: memref<32x32xf32, #tpu.memory_space<vmem>>, %arg11: memref<1x32xf32, #tpu.memory_space<vmem>>, %arg12: memref<1x32xf32, #tpu.memory_space<vmem>>, %arg13: memref<1x32xf32, #tpu.memory_space<vmem>>, %arg14: memref<32x8xf32, #tpu.memory_space<vmem>>, %arg15: memref<1x8xf32, #tpu.memory_space<vmem>>, %arg16: memref<32x8xf32, #tpu.memory_space<vmem>>, %arg17: memref<1x8xf32, #tpu.memory_space<vmem>>, %arg18: memref<32x32xf32, #tpu.memory_space<vmem>>, %arg19: memref<1x32xf32, #tpu.memory_space<vmem>>, %arg20: memref<32x32xf32, #tpu.memory_space<vmem>>, %arg21: memref<1x32xf32, #tpu.memory_space<vmem>>, %arg22: memref<32x32xf32, #tpu.memory_space<vmem>>, %arg23: memref<1x32xf32, #tpu.memory_space<vmem>>, %arg24: memref<1x32xf32, #tpu.memory_space<vmem>>, %arg25: memref<1x32xf32, #tpu.memory_space<vmem>>, %arg26: memref<32x128xf32, #tpu.memory_space<vmem>>, %arg27: memref<1x128xf32, #tpu.memory_space<vmem>>, %arg28: memref<128x32xf32, #tpu.memory_space<vmem>>, %arg29: memref<1x32xf32, #tpu.memory_space<vmem>>, %arg30: memref<2x8x32xf32, #tpu.memory_space<vmem>>) attributes {dimension_semantics = [], scalar_prefetch = 0 : i64, scratch_operands = 0 : i64, tpu.core_type = #tpu.core_type<tc>} {
    %c0 = arith.constant 0 : index
    %c0_0 = arith.constant 0 : index
    %c0_1 = arith.constant 0 : index
    %0 = vector.load %arg1[%c0, %c0_0, %c0_1] : memref<2x8x32xf32, #tpu.memory_space<vmem>>, vector<2x8x32xf32>
    %1 = vector.shape_cast %0 : vector<2x8x32xf32> to vector<16x32xf32>
    %c0_2 = arith.constant 0 : index
    %c0_3 = arith.constant 0 : index
    %2 = vector.load %arg2[%c0_2, %c0_3] : memref<1x32xf32, #tpu.memory_space<vmem>>, vector<1x32xf32>
    %c0_4 = arith.constant 0 : index
    %c0_5 = arith.constant 0 : index
    %3 = vector.load %arg3[%c0_4, %c0_5] : memref<1x32xf32, #tpu.memory_space<vmem>>, vector<1x32xf32>
    %cst = arith.constant dense<0.000000e+00> : vector<16xf32>
    %4 = vector.multi_reduction <add>, %1, %cst [1] : vector<16x32xf32> to vector<16xf32>
    %5 = vector.shape_cast %4 : vector<16xf32> to vector<16x1xf32>
    %cst_6 = arith.constant 3.200000e+01 : f32
    %6 = vector.broadcast %cst_6 : f32 to vector<16x1xf32>
    %7 = arith.divf %5, %6 : vector<16x1xf32>
    %8 = vector.broadcast %7 : vector<16x1xf32> to vector<16x32xf32>
    %9 = arith.subf %1, %8 : vector<16x32xf32>
    %10 = arith.mulf %9, %9 : vector<16x32xf32>
    %cst_7 = arith.constant dense<0.000000e+00> : vector<16xf32>
    %11 = vector.multi_reduction <add>, %10, %cst_7 [1] : vector<16x32xf32> to vector<16xf32>
    %12 = vector.shape_cast %11 : vector<16xf32> to vector<16x1xf32>
    %cst_8 = arith.constant 3.200000e+01 : f32
    %13 = vector.broadcast %cst_8 : f32 to vector<16x1xf32>
    %14 = arith.divf %12, %13 : vector<16x1xf32>
    %15 = vector.broadcast %7 : vector<16x1xf32> to vector<16x32xf32>
    %16 = arith.subf %1, %15 : vector<16x32xf32>
    %cst_9 = arith.constant 9.99999974E-6 : f32
    %17 = vector.broadcast %cst_9 : f32 to vector<16x1xf32>
    %18 = arith.addf %14, %17 : vector<16x1xf32>
    %19 = math.rsqrt %18 : vector<16x1xf32>
    %20 = vector.broadcast %19 : vector<16x1xf32> to vector<16x32xf32>
    %21 = arith.mulf %16, %20 : vector<16x32xf32>
    %22 = vector.broadcast %2 : vector<1x32xf32> to vector<16x32xf32>
    %23 = arith.mulf %21, %22 : vector<16x32xf32>
    %24 = vector.broadcast %3 : vector<1x32xf32> to vector<16x32xf32>
    %25 = arith.addf %23, %24 : vector<16x32xf32>
    %c0_10 = arith.constant 0 : index
    %c0_11 = arith.constant 0 : index
    %26 = vector.load %arg4[%c0_10, %c0_11] : memref<32x32xf32, #tpu.memory_space<vmem>>, vector<32x32xf32>
    %cst_12 = arith.constant dense<0.000000e+00> : vector<16x32xf32>
    %27 = tpu.matmul %25, %26, %cst_12 {dimension_numbers = #tpu.dot_dimension_numbers<[1], [0], [0], [1], [0, 0, 1, 1], [], []>} : vector<16x32xf32>, vector<32x32xf32>, vector<16x32xf32> -> vector<16x32xf32>
    %c0_13 = arith.constant 0 : index
    %c0_14 = arith.constant 0 : index
    %28 = vector.load %arg5[%c0_13, %c0_14] : memref<1x32xf32, #tpu.memory_space<vmem>>, vector<1x32xf32>
    %29 = vector.broadcast %28 : vector<1x32xf32> to vector<16x32xf32>
    %30 = arith.addf %27, %29 : vector<16x32xf32>
    %31 = vector.shape_cast %30 : vector<16x32xf32> to vector<2x8x32xf32>
    %c0_15 = arith.constant 0 : index
    %c0_16 = arith.constant 0 : index
    %32 = vector.load %arg6[%c0_15, %c0_16] : memref<32x32xf32, #tpu.memory_space<vmem>>, vector<32x32xf32>
    %cst_17 = arith.constant dense<0.000000e+00> : vector<16x32xf32>
    %33 = tpu.matmul %25, %32, %cst_17 {dimension_numbers = #tpu.dot_dimension_numbers<[1], [0], [0], [1], [0, 0, 1, 1], [], []>} : vector<16x32xf32>, vector<32x32xf32>, vector<16x32xf32> -> vector<16x32xf32>
    %c0_18 = arith.constant 0 : index
    %c0_19 = arith.constant 0 : index
    %34 = vector.load %arg7[%c0_18, %c0_19] : memref<1x32xf32, #tpu.memory_space<vmem>>, vector<1x32xf32>
    %35 = vector.broadcast %34 : vector<1x32xf32> to vector<16x32xf32>
    %36 = arith.addf %33, %35 : vector<16x32xf32>
    %37 = vector.shape_cast %36 : vector<16x32xf32> to vector<2x8x32xf32>
    %c0_20 = arith.constant 0 : index
    %c0_21 = arith.constant 0 : index
    %38 = vector.load %arg8[%c0_20, %c0_21] : memref<32x32xf32, #tpu.memory_space<vmem>>, vector<32x32xf32>
    %cst_22 = arith.constant dense<0.000000e+00> : vector<16x32xf32>
    %39 = tpu.matmul %25, %38, %cst_22 {dimension_numbers = #tpu.dot_dimension_numbers<[1], [0], [0], [1], [0, 0, 1, 1], [], []>} : vector<16x32xf32>, vector<32x32xf32>, vector<16x32xf32> -> vector<16x32xf32>
    %c0_23 = arith.constant 0 : index
    %c0_24 = arith.constant 0 : index
    %40 = vector.load %arg9[%c0_23, %c0_24] : memref<1x32xf32, #tpu.memory_space<vmem>>, vector<1x32xf32>
    %41 = vector.broadcast %40 : vector<1x32xf32> to vector<16x32xf32>
    %42 = arith.addf %39, %41 : vector<16x32xf32>
    %43 = vector.shape_cast %42 : vector<16x32xf32> to vector<2x8x32xf32>
    %c0_25 = arith.constant 0 : index
    %c0_26 = arith.constant 0 : index
    %44 = vector.load %arg10[%c0_25, %c0_26] : memref<32x32xf32, #tpu.memory_space<vmem>>, vector<32x32xf32>
    %cst_27 = arith.constant 0.000000e+00 : f32
    %45 = vector.broadcast %cst_27 : f32 to vector<16x32xf32>
    %46 = vector.extract_strided_slice %31 {offsets = [0, 0, 0], sizes = [2, 8, 8], strides = [1, 1, 1]} : vector<2x8x32xf32> to vector<2x8x8xf32>
    %47 = vector.extract_strided_slice %37 {offsets = [0, 0, 0], sizes = [2, 8, 8], strides = [1, 1, 1]} : vector<2x8x32xf32> to vector<2x8x8xf32>
    "tpu.trace_start"() <{level = 10 : i32, message = "bqd,bkd->bqk"}> : () -> ()
    %cst_28 = arith.constant dense<0.000000e+00> : vector<2x8x8xf32>
    %48 = tpu.matmul %46, %47, %cst_28 {dimension_numbers = #tpu.dot_dimension_numbers<[2], [2], [1], [1], [0, 0, 0, 1, 1, 1], [0], [0]>} : vector<2x8x8xf32>, vector<2x8x8xf32>, vector<2x8x8xf32> -> vector<2x8x8xf32>
    "tpu.trace_stop"() : () -> ()
    %cst_29 = arith.constant 0.176776692 : f32
    %49 = vector.broadcast %cst_29 : f32 to vector<2x8x8xf32>
    %50 = arith.mulf %48, %49 : vector<2x8x8xf32>
    %cst_30 = arith.constant dense<0xFF800000> : vector<2x8xf32>
    %51 = vector.multi_reduction <maximumf>, %50, %cst_30 [2] : vector<2x8x8xf32> to vector<2x8xf32>
    %52 = vector.shape_cast %51 : vector<2x8xf32> to vector<2x8x1xf32>
    %53 = vector.broadcast %52 : vector<2x8x1xf32> to vector<2x8x8xf32>
    %54 = arith.subf %50, %53 : vector<2x8x8xf32>
    %55 = math.exp %54 : vector<2x8x8xf32>
    %cst_31 = arith.constant dense<0.000000e+00> : vector<2x8xf32>
    %56 = vector.multi_reduction <add>, %55, %cst_31 [2] : vector<2x8x8xf32> to vector<2x8xf32>
    %57 = vector.shape_cast %56 : vector<2x8xf32> to vector<2x8x1xf32>
    %58 = tpu.reciprocal %57 {approx = true} : vector<2x8x1xf32> -> vector<2x8x1xf32>
    %59 = vector.broadcast %58 : vector<2x8x1xf32> to vector<2x8x8xf32>
    %60 = arith.mulf %55, %59 : vector<2x8x8xf32>
    %61 = vector.extract_strided_slice %43 {offsets = [0, 0, 0], sizes = [2, 8, 8], strides = [1, 1, 1]} : vector<2x8x32xf32> to vector<2x8x8xf32>
    "tpu.trace_start"() <{level = 10 : i32, message = "bqk,bkd->bqd"}> : () -> ()
    %cst_32 = arith.constant dense<0.000000e+00> : vector<2x8x8xf32>
    %62 = tpu.matmul %60, %61, %cst_32 {dimension_numbers = #tpu.dot_dimension_numbers<[2], [1], [1], [2], [0, 0, 0, 1, 1, 2], [0], [0]>} : vector<2x8x8xf32>, vector<2x8x8xf32>, vector<2x8x8xf32> -> vector<2x8x8xf32>
    "tpu.trace_stop"() : () -> ()
    %63 = vector.shape_cast %62 : vector<2x8x8xf32> to vector<16x8xf32>
    %64 = vector.extract_strided_slice %44 {offsets = [0, 0], sizes = [8, 32], strides = [1, 1]} : vector<32x32xf32> to vector<8x32xf32>
    %cst_33 = arith.constant dense<0.000000e+00> : vector<16x32xf32>
    %65 = tpu.matmul %63, %64, %cst_33 {dimension_numbers = #tpu.dot_dimension_numbers<[1], [0], [0], [1], [0, 0, 1, 1], [], []>} : vector<16x8xf32>, vector<8x32xf32>, vector<16x32xf32> -> vector<16x32xf32>
    %66 = arith.addf %45, %65 : vector<16x32xf32>
    %67 = vector.extract_strided_slice %31 {offsets = [0, 0, 8], sizes = [2, 8, 8], strides = [1, 1, 1]} : vector<2x8x32xf32> to vector<2x8x8xf32>
    %68 = vector.extract_strided_slice %37 {offsets = [0, 0, 8], sizes = [2, 8, 8], strides = [1, 1, 1]} : vector<2x8x32xf32> to vector<2x8x8xf32>
    "tpu.trace_start"() <{level = 10 : i32, message = "bqd,bkd->bqk"}> : () -> ()
    %cst_34 = arith.constant dense<0.000000e+00> : vector<2x8x8xf32>
    %69 = tpu.matmul %67, %68, %cst_34 {dimension_numbers = #tpu.dot_dimension_numbers<[2], [2], [1], [1], [0, 0, 0, 1, 1, 1], [0], [0]>} : vector<2x8x8xf32>, vector<2x8x8xf32>, vector<2x8x8xf32> -> vector<2x8x8xf32>
    "tpu.trace_stop"() : () -> ()
    %cst_35 = arith.constant 0.176776692 : f32
    %70 = vector.broadcast %cst_35 : f32 to vector<2x8x8xf32>
    %71 = arith.mulf %69, %70 : vector<2x8x8xf32>
    %cst_36 = arith.constant dense<0xFF800000> : vector<2x8xf32>
    %72 = vector.multi_reduction <maximumf>, %71, %cst_36 [2] : vector<2x8x8xf32> to vector<2x8xf32>
    %73 = vector.shape_cast %72 : vector<2x8xf32> to vector<2x8x1xf32>
    %74 = vector.broadcast %73 : vector<2x8x1xf32> to vector<2x8x8xf32>
    %75 = arith.subf %71, %74 : vector<2x8x8xf32>
    %76 = math.exp %75 : vector<2x8x8xf32>
    %cst_37 = arith.constant dense<0.000000e+00> : vector<2x8xf32>
    %77 = vector.multi_reduction <add>, %76, %cst_37 [2] : vector<2x8x8xf32> to vector<2x8xf32>
    %78 = vector.shape_cast %77 : vector<2x8xf32> to vector<2x8x1xf32>
    %79 = tpu.reciprocal %78 {approx = true} : vector<2x8x1xf32> -> vector<2x8x1xf32>
    %80 = vector.broadcast %79 : vector<2x8x1xf32> to vector<2x8x8xf32>
    %81 = arith.mulf %76, %80 : vector<2x8x8xf32>
    %82 = vector.extract_strided_slice %43 {offsets = [0, 0, 8], sizes = [2, 8, 8], strides = [1, 1, 1]} : vector<2x8x32xf32> to vector<2x8x8xf32>
    "tpu.trace_start"() <{level = 10 : i32, message = "bqk,bkd->bqd"}> : () -> ()
    %cst_38 = arith.constant dense<0.000000e+00> : vector<2x8x8xf32>
    %83 = tpu.matmul %81, %82, %cst_38 {dimension_numbers = #tpu.dot_dimension_numbers<[2], [1], [1], [2], [0, 0, 0, 1, 1, 2], [0], [0]>} : vector<2x8x8xf32>, vector<2x8x8xf32>, vector<2x8x8xf32> -> vector<2x8x8xf32>
    "tpu.trace_stop"() : () -> ()
    %84 = vector.shape_cast %83 : vector<2x8x8xf32> to vector<16x8xf32>
    %85 = vector.extract_strided_slice %44 {offsets = [8, 0], sizes = [8, 32], strides = [1, 1]} : vector<32x32xf32> to vector<8x32xf32>
    %cst_39 = arith.constant dense<0.000000e+00> : vector<16x32xf32>
    %86 = tpu.matmul %84, %85, %cst_39 {dimension_numbers = #tpu.dot_dimension_numbers<[1], [0], [0], [1], [0, 0, 1, 1], [], []>} : vector<16x8xf32>, vector<8x32xf32>, vector<16x32xf32> -> vector<16x32xf32>
    %87 = arith.addf %66, %86 : vector<16x32xf32>
    %88 = vector.extract_strided_slice %31 {offsets = [0, 0, 16], sizes = [2, 8, 8], strides = [1, 1, 1]} : vector<2x8x32xf32> to vector<2x8x8xf32>
    %89 = vector.extract_strided_slice %37 {offsets = [0, 0, 16], sizes = [2, 8, 8], strides = [1, 1, 1]} : vector<2x8x32xf32> to vector<2x8x8xf32>
    "tpu.trace_start"() <{level = 10 : i32, message = "bqd,bkd->bqk"}> : () -> ()
    %cst_40 = arith.constant dense<0.000000e+00> : vector<2x8x8xf32>
    %90 = tpu.matmul %88, %89, %cst_40 {dimension_numbers = #tpu.dot_dimension_numbers<[2], [2], [1], [1], [0, 0, 0, 1, 1, 1], [0], [0]>} : vector<2x8x8xf32>, vector<2x8x8xf32>, vector<2x8x8xf32> -> vector<2x8x8xf32>
    "tpu.trace_stop"() : () -> ()
    %cst_41 = arith.constant 0.176776692 : f32
    %91 = vector.broadcast %cst_41 : f32 to vector<2x8x8xf32>
    %92 = arith.mulf %90, %91 : vector<2x8x8xf32>
    %cst_42 = arith.constant dense<0xFF800000> : vector<2x8xf32>
    %93 = vector.multi_reduction <maximumf>, %92, %cst_42 [2] : vector<2x8x8xf32> to vector<2x8xf32>
    %94 = vector.shape_cast %93 : vector<2x8xf32> to vector<2x8x1xf32>
    %95 = vector.broadcast %94 : vector<2x8x1xf32> to vector<2x8x8xf32>
    %96 = arith.subf %92, %95 : vector<2x8x8xf32>
    %97 = math.exp %96 : vector<2x8x8xf32>
    %cst_43 = arith.constant dense<0.000000e+00> : vector<2x8xf32>
    %98 = vector.multi_reduction <add>, %97, %cst_43 [2] : vector<2x8x8xf32> to vector<2x8xf32>
    %99 = vector.shape_cast %98 : vector<2x8xf32> to vector<2x8x1xf32>
    %100 = tpu.reciprocal %99 {approx = true} : vector<2x8x1xf32> -> vector<2x8x1xf32>
    %101 = vector.broadcast %100 : vector<2x8x1xf32> to vector<2x8x8xf32>
    %102 = arith.mulf %97, %101 : vector<2x8x8xf32>
    %103 = vector.extract_strided_slice %43 {offsets = [0, 0, 16], sizes = [2, 8, 8], strides = [1, 1, 1]} : vector<2x8x32xf32> to vector<2x8x8xf32>
    "tpu.trace_start"() <{level = 10 : i32, message = "bqk,bkd->bqd"}> : () -> ()
    %cst_44 = arith.constant dense<0.000000e+00> : vector<2x8x8xf32>
    %104 = tpu.matmul %102, %103, %cst_44 {dimension_numbers = #tpu.dot_dimension_numbers<[2], [1], [1], [2], [0, 0, 0, 1, 1, 2], [0], [0]>} : vector<2x8x8xf32>, vector<2x8x8xf32>, vector<2x8x8xf32> -> vector<2x8x8xf32>
    "tpu.trace_stop"() : () -> ()
    %105 = vector.shape_cast %104 : vector<2x8x8xf32> to vector<16x8xf32>
    %106 = vector.extract_strided_slice %44 {offsets = [16, 0], sizes = [8, 32], strides = [1, 1]} : vector<32x32xf32> to vector<8x32xf32>
    %cst_45 = arith.constant dense<0.000000e+00> : vector<16x32xf32>
    %107 = tpu.matmul %105, %106, %cst_45 {dimension_numbers = #tpu.dot_dimension_numbers<[1], [0], [0], [1], [0, 0, 1, 1], [], []>} : vector<16x8xf32>, vector<8x32xf32>, vector<16x32xf32> -> vector<16x32xf32>
    %108 = arith.addf %87, %107 : vector<16x32xf32>
    %109 = vector.extract_strided_slice %31 {offsets = [0, 0, 24], sizes = [2, 8, 8], strides = [1, 1, 1]} : vector<2x8x32xf32> to vector<2x8x8xf32>
    %110 = vector.extract_strided_slice %37 {offsets = [0, 0, 24], sizes = [2, 8, 8], strides = [1, 1, 1]} : vector<2x8x32xf32> to vector<2x8x8xf32>
    "tpu.trace_start"() <{level = 10 : i32, message = "bqd,bkd->bqk"}> : () -> ()
    %cst_46 = arith.constant dense<0.000000e+00> : vector<2x8x8xf32>
    %111 = tpu.matmul %109, %110, %cst_46 {dimension_numbers = #tpu.dot_dimension_numbers<[2], [2], [1], [1], [0, 0, 0, 1, 1, 1], [0], [0]>} : vector<2x8x8xf32>, vector<2x8x8xf32>, vector<2x8x8xf32> -> vector<2x8x8xf32>
    "tpu.trace_stop"() : () -> ()
    %cst_47 = arith.constant 0.176776692 : f32
    %112 = vector.broadcast %cst_47 : f32 to vector<2x8x8xf32>
    %113 = arith.mulf %111, %112 : vector<2x8x8xf32>
    %cst_48 = arith.constant dense<0xFF800000> : vector<2x8xf32>
    %114 = vector.multi_reduction <maximumf>, %113, %cst_48 [2] : vector<2x8x8xf32> to vector<2x8xf32>
    %115 = vector.shape_cast %114 : vector<2x8xf32> to vector<2x8x1xf32>
    %116 = vector.broadcast %115 : vector<2x8x1xf32> to vector<2x8x8xf32>
    %117 = arith.subf %113, %116 : vector<2x8x8xf32>
    %118 = math.exp %117 : vector<2x8x8xf32>
    %cst_49 = arith.constant dense<0.000000e+00> : vector<2x8xf32>
    %119 = vector.multi_reduction <add>, %118, %cst_49 [2] : vector<2x8x8xf32> to vector<2x8xf32>
    %120 = vector.shape_cast %119 : vector<2x8xf32> to vector<2x8x1xf32>
    %121 = tpu.reciprocal %120 {approx = true} : vector<2x8x1xf32> -> vector<2x8x1xf32>
    %122 = vector.broadcast %121 : vector<2x8x1xf32> to vector<2x8x8xf32>
    %123 = arith.mulf %118, %122 : vector<2x8x8xf32>
    %124 = vector.extract_strided_slice %43 {offsets = [0, 0, 24], sizes = [2, 8, 8], strides = [1, 1, 1]} : vector<2x8x32xf32> to vector<2x8x8xf32>
    "tpu.trace_start"() <{level = 10 : i32, message = "bqk,bkd->bqd"}> : () -> ()
    %cst_50 = arith.constant dense<0.000000e+00> : vector<2x8x8xf32>
    %125 = tpu.matmul %123, %124, %cst_50 {dimension_numbers = #tpu.dot_dimension_numbers<[2], [1], [1], [2], [0, 0, 0, 1, 1, 2], [0], [0]>} : vector<2x8x8xf32>, vector<2x8x8xf32>, vector<2x8x8xf32> -> vector<2x8x8xf32>
    "tpu.trace_stop"() : () -> ()
    %126 = vector.shape_cast %125 : vector<2x8x8xf32> to vector<16x8xf32>
    %127 = vector.extract_strided_slice %44 {offsets = [24, 0], sizes = [8, 32], strides = [1, 1]} : vector<32x32xf32> to vector<8x32xf32>
    %cst_51 = arith.constant dense<0.000000e+00> : vector<16x32xf32>
    %128 = tpu.matmul %126, %127, %cst_51 {dimension_numbers = #tpu.dot_dimension_numbers<[1], [0], [0], [1], [0, 0, 1, 1], [], []>} : vector<16x8xf32>, vector<8x32xf32>, vector<16x32xf32> -> vector<16x32xf32>
    %129 = arith.addf %108, %128 : vector<16x32xf32>
    %130 = arith.addf %1, %129 : vector<16x32xf32>
    %c0_52 = arith.constant 0 : index
    %c0_53 = arith.constant 0 : index
    %131 = vector.load %arg11[%c0_52, %c0_53] : memref<1x32xf32, #tpu.memory_space<vmem>>, vector<1x32xf32>
    %132 = vector.broadcast %131 : vector<1x32xf32> to vector<16x32xf32>
    %133 = arith.addf %130, %132 : vector<16x32xf32>
    %c0_54 = arith.constant 0 : index
    %c0_55 = arith.constant 0 : index
    %134 = vector.load %arg12[%c0_54, %c0_55] : memref<1x32xf32, #tpu.memory_space<vmem>>, vector<1x32xf32>
    %c0_56 = arith.constant 0 : index
    %c0_57 = arith.constant 0 : index
    %135 = vector.load %arg13[%c0_56, %c0_57] : memref<1x32xf32, #tpu.memory_space<vmem>>, vector<1x32xf32>
    %cst_58 = arith.constant dense<0.000000e+00> : vector<16xf32>
    %136 = vector.multi_reduction <add>, %133, %cst_58 [1] : vector<16x32xf32> to vector<16xf32>
    %137 = vector.shape_cast %136 : vector<16xf32> to vector<16x1xf32>
    %cst_59 = arith.constant 3.200000e+01 : f32
    %138 = vector.broadcast %cst_59 : f32 to vector<16x1xf32>
    %139 = arith.divf %137, %138 : vector<16x1xf32>
    %140 = vector.broadcast %139 : vector<16x1xf32> to vector<16x32xf32>
    %141 = arith.subf %133, %140 : vector<16x32xf32>
    %142 = arith.mulf %141, %141 : vector<16x32xf32>
    %cst_60 = arith.constant dense<0.000000e+00> : vector<16xf32>
    %143 = vector.multi_reduction <add>, %142, %cst_60 [1] : vector<16x32xf32> to vector<16xf32>
    %144 = vector.shape_cast %143 : vector<16xf32> to vector<16x1xf32>
    %cst_61 = arith.constant 3.200000e+01 : f32
    %145 = vector.broadcast %cst_61 : f32 to vector<16x1xf32>
    %146 = arith.divf %144, %145 : vector<16x1xf32>
    %147 = vector.broadcast %139 : vector<16x1xf32> to vector<16x32xf32>
    %148 = arith.subf %133, %147 : vector<16x32xf32>
    %cst_62 = arith.constant 9.99999974E-6 : f32
    %149 = vector.broadcast %cst_62 : f32 to vector<16x1xf32>
    %150 = arith.addf %146, %149 : vector<16x1xf32>
    %151 = math.rsqrt %150 : vector<16x1xf32>
    %152 = vector.broadcast %151 : vector<16x1xf32> to vector<16x32xf32>
    %153 = arith.mulf %148, %152 : vector<16x32xf32>
    %154 = vector.broadcast %134 : vector<1x32xf32> to vector<16x32xf32>
    %155 = arith.mulf %153, %154 : vector<16x32xf32>
    %156 = vector.broadcast %135 : vector<1x32xf32> to vector<16x32xf32>
    %157 = arith.addf %155, %156 : vector<16x32xf32>
    %c0_63 = arith.constant 0 : index
    %c0_64 = arith.constant 0 : index
    %158 = vector.load %arg14[%c0_63, %c0_64] : memref<32x8xf32, #tpu.memory_space<vmem>>, vector<32x8xf32>
    %cst_65 = arith.constant dense<0.000000e+00> : vector<16x8xf32>
    %159 = tpu.matmul %157, %158, %cst_65 {dimension_numbers = #tpu.dot_dimension_numbers<[1], [0], [0], [1], [0, 0, 1, 1], [], []>} : vector<16x32xf32>, vector<32x8xf32>, vector<16x8xf32> -> vector<16x8xf32>
    %c0_66 = arith.constant 0 : index
    %c0_67 = arith.constant 0 : index
    %160 = vector.load %arg15[%c0_66, %c0_67] : memref<1x8xf32, #tpu.memory_space<vmem>>, vector<1x8xf32>
    %161 = vector.broadcast %160 : vector<1x8xf32> to vector<16x8xf32>
    %162 = arith.addf %159, %161 : vector<16x8xf32>
    %c0_68 = arith.constant 0 : index
    %c0_69 = arith.constant 0 : index
    %163 = vector.load %arg16[%c0_68, %c0_69] : memref<32x8xf32, #tpu.memory_space<vmem>>, vector<32x8xf32>
    %cst_70 = arith.constant dense<0.000000e+00> : vector<16x8xf32>
    %164 = tpu.matmul %157, %163, %cst_70 {dimension_numbers = #tpu.dot_dimension_numbers<[1], [0], [0], [1], [0, 0, 1, 1], [], []>} : vector<16x32xf32>, vector<32x8xf32>, vector<16x8xf32> -> vector<16x8xf32>
    %c0_71 = arith.constant 0 : index
    %c0_72 = arith.constant 0 : index
    %165 = vector.load %arg17[%c0_71, %c0_72] : memref<1x8xf32, #tpu.memory_space<vmem>>, vector<1x8xf32>
    %166 = vector.broadcast %165 : vector<1x8xf32> to vector<16x8xf32>
    %167 = arith.addf %164, %166 : vector<16x8xf32>
    %cst_73 = arith.constant dense<0xFF800000> : vector<16xf32>
    %168 = vector.multi_reduction <maximumf>, %167, %cst_73 [1] : vector<16x8xf32> to vector<16xf32>
    %169 = vector.shape_cast %168 : vector<16xf32> to vector<16x1xf32>
    %170 = vector.broadcast %169 : vector<16x1xf32> to vector<16x8xf32>
    %171 = arith.subf %167, %170 : vector<16x8xf32>
    %172 = math.exp %171 : vector<16x8xf32>
    %cst_74 = arith.constant dense<0.000000e+00> : vector<16xf32>
    %173 = vector.multi_reduction <add>, %172, %cst_74 [1] : vector<16x8xf32> to vector<16xf32>
    %174 = vector.shape_cast %173 : vector<16xf32> to vector<16x1xf32>
    %175 = tpu.reciprocal %174 {approx = true} : vector<16x1xf32> -> vector<16x1xf32>
    %176 = vector.broadcast %175 : vector<16x1xf32> to vector<16x8xf32>
    %177 = arith.mulf %172, %176 : vector<16x8xf32>
    %cst_75 = arith.constant 0.000000e+00 : f32
    %178 = vector.broadcast %cst_75 : f32 to vector<16x8xf32>
    %179 = arith.subf %178, %162 : vector<16x8xf32>
    %180 = math.exp %179 : vector<16x8xf32>
    %cst_76 = arith.constant 1.000000e+00 : f32
    %181 = vector.broadcast %cst_76 : f32 to vector<16x8xf32>
    %182 = arith.addf %181, %180 : vector<16x8xf32>
    %cst_77 = arith.constant 1.000000e+00 : f32
    %183 = vector.broadcast %cst_77 : f32 to vector<16x8xf32>
    %184 = arith.divf %183, %182 : vector<16x8xf32>
    %cst_78 = arith.constant 1.600000e+01 : f32
    %185 = vector.broadcast %cst_78 : f32 to vector<16x8xf32>
    %186 = arith.mulf %184, %185 : vector<16x8xf32>
    %187 = math.floor %186 : vector<16x8xf32>
    %cst_79 = arith.constant 0.000000e+00 : f32
    %c15_i32 = arith.constant 15 : i32
    %188 = vector.broadcast %cst_79 : f32 to vector<16x8xf32>
    %189 = arith.maximumf %188, %187 : vector<16x8xf32>
    %190 = arith.sitofp %c15_i32 : i32 to f32
    %191 = vector.broadcast %190 : f32 to vector<16x8xf32>
    %192 = arith.minimumf %191, %189 : vector<16x8xf32>
    %193 = arith.fptosi %192 : vector<16x8xf32> to vector<16x8xi32>
    %194 = tpu.iota {dimensions = array<i32: 2>} : vector<16x8x16xi32>
    %195 = vector.shape_cast %193 : vector<16x8xi32> to vector<16x8x1xi32>
    %196 = vector.broadcast %195 : vector<16x8x1xi32> to vector<16x8x16xi32>
    %197 = arith.cmpi eq, %196, %194 : vector<16x8x16xi32>
    %198 = vector.shape_cast %177 : vector<16x8xf32> to vector<16x8x1xf32>
    %cst_80 = arith.constant 0.000000e+00 : f32
    %199 = vector.shape_cast %198 : vector<16x8x1xf32> to vector<16x8x1xf32>
    %200 = vector.broadcast %199 : vector<16x8x1xf32> to vector<16x8x16xf32>
    %201 = vector.broadcast %cst_80 : f32 to vector<16x8x16xf32>
    %202 = arith.select %197, %200, %201 : vector<16x8x16xi1>, vector<16x8x16xf32>
    %203 = vector.shape_cast %202 : vector<16x8x16xf32> to vector<2x64x16xf32>
    %c0_81 = arith.constant 0 : index
    %c0_82 = arith.constant 0 : index
    %c0_83 = arith.constant 0 : index
    %204 = vector.load %arg0[%c0_81, %c0_82, %c0_83] : memref<2x16x32xf32, #tpu.memory_space<vmem>>, vector<2x16x32xf32>
    "tpu.trace_start"() <{level = 10 : i32, message = "bpf,bfe->bpe"}> : () -> ()
    %cst_84 = arith.constant dense<0.000000e+00> : vector<2x64x32xf32>
    %205 = tpu.matmul %203, %204, %cst_84 {dimension_numbers = #tpu.dot_dimension_numbers<[2], [1], [1], [2], [0, 0, 0, 1, 1, 2], [0], [0]>} : vector<2x64x16xf32>, vector<2x16x32xf32>, vector<2x64x32xf32> -> vector<2x64x32xf32>
    "tpu.trace_stop"() : () -> ()
    %206 = vector.shape_cast %205 : vector<2x64x32xf32> to vector<128x32xf32>
    %c0_85 = arith.constant 0 : index
    %c0_86 = arith.constant 0 : index
    %207 = vector.load %arg18[%c0_85, %c0_86] : memref<32x32xf32, #tpu.memory_space<vmem>>, vector<32x32xf32>
    %cst_87 = arith.constant dense<0.000000e+00> : vector<128x32xf32>
    %208 = tpu.matmul %206, %207, %cst_87 {dimension_numbers = #tpu.dot_dimension_numbers<[1], [0], [0], [1], [0, 0, 1, 1], [], []>} : vector<128x32xf32>, vector<32x32xf32>, vector<128x32xf32> -> vector<128x32xf32>
    %c0_88 = arith.constant 0 : index
    %c0_89 = arith.constant 0 : index
    %209 = vector.load %arg19[%c0_88, %c0_89] : memref<1x32xf32, #tpu.memory_space<vmem>>, vector<1x32xf32>
    %210 = vector.broadcast %209 : vector<1x32xf32> to vector<128x32xf32>
    %211 = arith.addf %208, %210 : vector<128x32xf32>
    %212 = vector.shape_cast %211 : vector<128x32xf32> to vector<16x8x32xf32>
    %c0_90 = arith.constant 0 : index
    %c0_91 = arith.constant 0 : index
    %213 = vector.load %arg20[%c0_90, %c0_91] : memref<32x32xf32, #tpu.memory_space<vmem>>, vector<32x32xf32>
    %cst_92 = arith.constant dense<0.000000e+00> : vector<128x32xf32>
    %214 = tpu.matmul %206, %213, %cst_92 {dimension_numbers = #tpu.dot_dimension_numbers<[1], [0], [0], [1], [0, 0, 1, 1], [], []>} : vector<128x32xf32>, vector<32x32xf32>, vector<128x32xf32> -> vector<128x32xf32>
    %c0_93 = arith.constant 0 : index
    %c0_94 = arith.constant 0 : index
    %215 = vector.load %arg21[%c0_93, %c0_94] : memref<1x32xf32, #tpu.memory_space<vmem>>, vector<1x32xf32>
    %216 = vector.broadcast %215 : vector<1x32xf32> to vector<128x32xf32>
    %217 = arith.addf %214, %216 : vector<128x32xf32>
    %218 = vector.shape_cast %217 : vector<128x32xf32> to vector<16x8x32xf32>
    %219 = vector.shape_cast %157 : vector<16x32xf32> to vector<2x8x32xf32>
    %220 = vector.shape_cast %219 : vector<2x8x32xf32> to vector<2x1x8x32xf32>
    %221 = vector.shape_cast %220 : vector<2x1x8x32xf32> to vector<2x1x8x32xf32>
    %222 = vector.broadcast %221 : vector<2x1x8x32xf32> to vector<2x8x8x32xf32>
    %223 = vector.shape_cast %222 : vector<2x8x8x32xf32> to vector<16x8x32xf32>
    %c0_95 = arith.constant 0 : index
    %c0_96 = arith.constant 0 : index
    %224 = vector.load %arg22[%c0_95, %c0_96] : memref<32x32xf32, #tpu.memory_space<vmem>>, vector<32x32xf32>
    %cst_97 = arith.constant 0.000000e+00 : f32
    %225 = vector.broadcast %cst_97 : f32 to vector<16x32xf32>
    %226 = vector.extract_strided_slice %223 {offsets = [0, 0, 0], sizes = [16, 8, 8], strides = [1, 1, 1]} : vector<16x8x32xf32> to vector<16x8x8xf32>
    %227 = vector.extract_strided_slice %212 {offsets = [0, 0, 0], sizes = [16, 8, 8], strides = [1, 1, 1]} : vector<16x8x32xf32> to vector<16x8x8xf32>
    "tpu.trace_start"() <{level = 10 : i32, message = "gqd,gkd->gqk"}> : () -> ()
    %cst_98 = arith.constant dense<0.000000e+00> : vector<16x8x8xf32>
    %228 = tpu.matmul %226, %227, %cst_98 {dimension_numbers = #tpu.dot_dimension_numbers<[2], [2], [1], [1], [0, 0, 0, 1, 1, 1], [0], [0]>} : vector<16x8x8xf32>, vector<16x8x8xf32>, vector<16x8x8xf32> -> vector<16x8x8xf32>
    "tpu.trace_stop"() : () -> ()
    %cst_99 = arith.constant 0.176776692 : f32
    %229 = vector.broadcast %cst_99 : f32 to vector<16x8x8xf32>
    %230 = arith.mulf %228, %229 : vector<16x8x8xf32>
    %cst_100 = arith.constant dense<0xFF800000> : vector<16x8xf32>
    %231 = vector.multi_reduction <maximumf>, %230, %cst_100 [2] : vector<16x8x8xf32> to vector<16x8xf32>
    %232 = vector.shape_cast %231 : vector<16x8xf32> to vector<16x8x1xf32>
    %233 = vector.broadcast %232 : vector<16x8x1xf32> to vector<16x8x8xf32>
    %234 = arith.subf %230, %233 : vector<16x8x8xf32>
    %235 = math.exp %234 : vector<16x8x8xf32>
    %cst_101 = arith.constant dense<0.000000e+00> : vector<16x8xf32>
    %236 = vector.multi_reduction <add>, %235, %cst_101 [2] : vector<16x8x8xf32> to vector<16x8xf32>
    %237 = vector.shape_cast %236 : vector<16x8xf32> to vector<16x8x1xf32>
    %238 = tpu.reciprocal %237 {approx = true} : vector<16x8x1xf32> -> vector<16x8x1xf32>
    %239 = vector.broadcast %238 : vector<16x8x1xf32> to vector<16x8x8xf32>
    %240 = arith.mulf %235, %239 : vector<16x8x8xf32>
    %cst_102 = arith.constant dense<0.000000e+00> : vector<16x8xf32>
    %241 = vector.multi_reduction <add>, %240, %cst_102 [1] : vector<16x8x8xf32> to vector<16x8xf32>
    %242 = vector.shape_cast %241 : vector<16x8xf32> to vector<16x8x1xf32>
    %243 = vector.extract_strided_slice %218 {offsets = [0, 0, 0], sizes = [16, 8, 8], strides = [1, 1, 1]} : vector<16x8x32xf32> to vector<16x8x8xf32>
    %244 = vector.broadcast %242 : vector<16x8x1xf32> to vector<16x8x8xf32>
    %245 = arith.mulf %244, %243 : vector<16x8x8xf32>
    %cst_103 = arith.constant dense<0.000000e+00> : vector<16x8xf32>
    %246 = vector.multi_reduction <add>, %245, %cst_103 [1] : vector<16x8x8xf32> to vector<16x8xf32>
    %247 = vector.extract_strided_slice %224 {offsets = [0, 0], sizes = [8, 32], strides = [1, 1]} : vector<32x32xf32> to vector<8x32xf32>
    %cst_104 = arith.constant dense<0.000000e+00> : vector<16x32xf32>
    %248 = tpu.matmul %246, %247, %cst_104 {dimension_numbers = #tpu.dot_dimension_numbers<[1], [0], [0], [1], [0, 0, 1, 1], [], []>} : vector<16x8xf32>, vector<8x32xf32>, vector<16x32xf32> -> vector<16x32xf32>
    %249 = arith.addf %225, %248 : vector<16x32xf32>
    %250 = vector.extract_strided_slice %223 {offsets = [0, 0, 8], sizes = [16, 8, 8], strides = [1, 1, 1]} : vector<16x8x32xf32> to vector<16x8x8xf32>
    %251 = vector.extract_strided_slice %212 {offsets = [0, 0, 8], sizes = [16, 8, 8], strides = [1, 1, 1]} : vector<16x8x32xf32> to vector<16x8x8xf32>
    "tpu.trace_start"() <{level = 10 : i32, message = "gqd,gkd->gqk"}> : () -> ()
    %cst_105 = arith.constant dense<0.000000e+00> : vector<16x8x8xf32>
    %252 = tpu.matmul %250, %251, %cst_105 {dimension_numbers = #tpu.dot_dimension_numbers<[2], [2], [1], [1], [0, 0, 0, 1, 1, 1], [0], [0]>} : vector<16x8x8xf32>, vector<16x8x8xf32>, vector<16x8x8xf32> -> vector<16x8x8xf32>
    "tpu.trace_stop"() : () -> ()
    %cst_106 = arith.constant 0.176776692 : f32
    %253 = vector.broadcast %cst_106 : f32 to vector<16x8x8xf32>
    %254 = arith.mulf %252, %253 : vector<16x8x8xf32>
    %cst_107 = arith.constant dense<0xFF800000> : vector<16x8xf32>
    %255 = vector.multi_reduction <maximumf>, %254, %cst_107 [2] : vector<16x8x8xf32> to vector<16x8xf32>
    %256 = vector.shape_cast %255 : vector<16x8xf32> to vector<16x8x1xf32>
    %257 = vector.broadcast %256 : vector<16x8x1xf32> to vector<16x8x8xf32>
    %258 = arith.subf %254, %257 : vector<16x8x8xf32>
    %259 = math.exp %258 : vector<16x8x8xf32>
    %cst_108 = arith.constant dense<0.000000e+00> : vector<16x8xf32>
    %260 = vector.multi_reduction <add>, %259, %cst_108 [2] : vector<16x8x8xf32> to vector<16x8xf32>
    %261 = vector.shape_cast %260 : vector<16x8xf32> to vector<16x8x1xf32>
    %262 = tpu.reciprocal %261 {approx = true} : vector<16x8x1xf32> -> vector<16x8x1xf32>
    %263 = vector.broadcast %262 : vector<16x8x1xf32> to vector<16x8x8xf32>
    %264 = arith.mulf %259, %263 : vector<16x8x8xf32>
    %cst_109 = arith.constant dense<0.000000e+00> : vector<16x8xf32>
    %265 = vector.multi_reduction <add>, %264, %cst_109 [1] : vector<16x8x8xf32> to vector<16x8xf32>
    %266 = vector.shape_cast %265 : vector<16x8xf32> to vector<16x8x1xf32>
    %267 = vector.extract_strided_slice %218 {offsets = [0, 0, 8], sizes = [16, 8, 8], strides = [1, 1, 1]} : vector<16x8x32xf32> to vector<16x8x8xf32>
    %268 = vector.broadcast %266 : vector<16x8x1xf32> to vector<16x8x8xf32>
    %269 = arith.mulf %268, %267 : vector<16x8x8xf32>
    %cst_110 = arith.constant dense<0.000000e+00> : vector<16x8xf32>
    %270 = vector.multi_reduction <add>, %269, %cst_110 [1] : vector<16x8x8xf32> to vector<16x8xf32>
    %271 = vector.extract_strided_slice %224 {offsets = [8, 0], sizes = [8, 32], strides = [1, 1]} : vector<32x32xf32> to vector<8x32xf32>
    %cst_111 = arith.constant dense<0.000000e+00> : vector<16x32xf32>
    %272 = tpu.matmul %270, %271, %cst_111 {dimension_numbers = #tpu.dot_dimension_numbers<[1], [0], [0], [1], [0, 0, 1, 1], [], []>} : vector<16x8xf32>, vector<8x32xf32>, vector<16x32xf32> -> vector<16x32xf32>
    %273 = arith.addf %249, %272 : vector<16x32xf32>
    %274 = vector.extract_strided_slice %223 {offsets = [0, 0, 16], sizes = [16, 8, 8], strides = [1, 1, 1]} : vector<16x8x32xf32> to vector<16x8x8xf32>
    %275 = vector.extract_strided_slice %212 {offsets = [0, 0, 16], sizes = [16, 8, 8], strides = [1, 1, 1]} : vector<16x8x32xf32> to vector<16x8x8xf32>
    "tpu.trace_start"() <{level = 10 : i32, message = "gqd,gkd->gqk"}> : () -> ()
    %cst_112 = arith.constant dense<0.000000e+00> : vector<16x8x8xf32>
    %276 = tpu.matmul %274, %275, %cst_112 {dimension_numbers = #tpu.dot_dimension_numbers<[2], [2], [1], [1], [0, 0, 0, 1, 1, 1], [0], [0]>} : vector<16x8x8xf32>, vector<16x8x8xf32>, vector<16x8x8xf32> -> vector<16x8x8xf32>
    "tpu.trace_stop"() : () -> ()
    %cst_113 = arith.constant 0.176776692 : f32
    %277 = vector.broadcast %cst_113 : f32 to vector<16x8x8xf32>
    %278 = arith.mulf %276, %277 : vector<16x8x8xf32>
    %cst_114 = arith.constant dense<0xFF800000> : vector<16x8xf32>
    %279 = vector.multi_reduction <maximumf>, %278, %cst_114 [2] : vector<16x8x8xf32> to vector<16x8xf32>
    %280 = vector.shape_cast %279 : vector<16x8xf32> to vector<16x8x1xf32>
    %281 = vector.broadcast %280 : vector<16x8x1xf32> to vector<16x8x8xf32>
    %282 = arith.subf %278, %281 : vector<16x8x8xf32>
    %283 = math.exp %282 : vector<16x8x8xf32>
    %cst_115 = arith.constant dense<0.000000e+00> : vector<16x8xf32>
    %284 = vector.multi_reduction <add>, %283, %cst_115 [2] : vector<16x8x8xf32> to vector<16x8xf32>
    %285 = vector.shape_cast %284 : vector<16x8xf32> to vector<16x8x1xf32>
    %286 = tpu.reciprocal %285 {approx = true} : vector<16x8x1xf32> -> vector<16x8x1xf32>
    %287 = vector.broadcast %286 : vector<16x8x1xf32> to vector<16x8x8xf32>
    %288 = arith.mulf %283, %287 : vector<16x8x8xf32>
    %cst_116 = arith.constant dense<0.000000e+00> : vector<16x8xf32>
    %289 = vector.multi_reduction <add>, %288, %cst_116 [1] : vector<16x8x8xf32> to vector<16x8xf32>
    %290 = vector.shape_cast %289 : vector<16x8xf32> to vector<16x8x1xf32>
    %291 = vector.extract_strided_slice %218 {offsets = [0, 0, 16], sizes = [16, 8, 8], strides = [1, 1, 1]} : vector<16x8x32xf32> to vector<16x8x8xf32>
    %292 = vector.broadcast %290 : vector<16x8x1xf32> to vector<16x8x8xf32>
    %293 = arith.mulf %292, %291 : vector<16x8x8xf32>
    %cst_117 = arith.constant dense<0.000000e+00> : vector<16x8xf32>
    %294 = vector.multi_reduction <add>, %293, %cst_117 [1] : vector<16x8x8xf32> to vector<16x8xf32>
    %295 = vector.extract_strided_slice %224 {offsets = [16, 0], sizes = [8, 32], strides = [1, 1]} : vector<32x32xf32> to vector<8x32xf32>
    %cst_118 = arith.constant dense<0.000000e+00> : vector<16x32xf32>
    %296 = tpu.matmul %294, %295, %cst_118 {dimension_numbers = #tpu.dot_dimension_numbers<[1], [0], [0], [1], [0, 0, 1, 1], [], []>} : vector<16x8xf32>, vector<8x32xf32>, vector<16x32xf32> -> vector<16x32xf32>
    %297 = arith.addf %273, %296 : vector<16x32xf32>
    %298 = vector.extract_strided_slice %223 {offsets = [0, 0, 24], sizes = [16, 8, 8], strides = [1, 1, 1]} : vector<16x8x32xf32> to vector<16x8x8xf32>
    %299 = vector.extract_strided_slice %212 {offsets = [0, 0, 24], sizes = [16, 8, 8], strides = [1, 1, 1]} : vector<16x8x32xf32> to vector<16x8x8xf32>
    "tpu.trace_start"() <{level = 10 : i32, message = "gqd,gkd->gqk"}> : () -> ()
    %cst_119 = arith.constant dense<0.000000e+00> : vector<16x8x8xf32>
    %300 = tpu.matmul %298, %299, %cst_119 {dimension_numbers = #tpu.dot_dimension_numbers<[2], [2], [1], [1], [0, 0, 0, 1, 1, 1], [0], [0]>} : vector<16x8x8xf32>, vector<16x8x8xf32>, vector<16x8x8xf32> -> vector<16x8x8xf32>
    "tpu.trace_stop"() : () -> ()
    %cst_120 = arith.constant 0.176776692 : f32
    %301 = vector.broadcast %cst_120 : f32 to vector<16x8x8xf32>
    %302 = arith.mulf %300, %301 : vector<16x8x8xf32>
    %cst_121 = arith.constant dense<0xFF800000> : vector<16x8xf32>
    %303 = vector.multi_reduction <maximumf>, %302, %cst_121 [2] : vector<16x8x8xf32> to vector<16x8xf32>
    %304 = vector.shape_cast %303 : vector<16x8xf32> to vector<16x8x1xf32>
    %305 = vector.broadcast %304 : vector<16x8x1xf32> to vector<16x8x8xf32>
    %306 = arith.subf %302, %305 : vector<16x8x8xf32>
    %307 = math.exp %306 : vector<16x8x8xf32>
    %cst_122 = arith.constant dense<0.000000e+00> : vector<16x8xf32>
    %308 = vector.multi_reduction <add>, %307, %cst_122 [2] : vector<16x8x8xf32> to vector<16x8xf32>
    %309 = vector.shape_cast %308 : vector<16x8xf32> to vector<16x8x1xf32>
    %310 = tpu.reciprocal %309 {approx = true} : vector<16x8x1xf32> -> vector<16x8x1xf32>
    %311 = vector.broadcast %310 : vector<16x8x1xf32> to vector<16x8x8xf32>
    %312 = arith.mulf %307, %311 : vector<16x8x8xf32>
    %cst_123 = arith.constant dense<0.000000e+00> : vector<16x8xf32>
    %313 = vector.multi_reduction <add>, %312, %cst_123 [1] : vector<16x8x8xf32> to vector<16x8xf32>
    %314 = vector.shape_cast %313 : vector<16x8xf32> to vector<16x8x1xf32>
    %315 = vector.extract_strided_slice %218 {offsets = [0, 0, 24], sizes = [16, 8, 8], strides = [1, 1, 1]} : vector<16x8x32xf32> to vector<16x8x8xf32>
    %316 = vector.broadcast %314 : vector<16x8x1xf32> to vector<16x8x8xf32>
    %317 = arith.mulf %316, %315 : vector<16x8x8xf32>
    %cst_124 = arith.constant dense<0.000000e+00> : vector<16x8xf32>
    %318 = vector.multi_reduction <add>, %317, %cst_124 [1] : vector<16x8x8xf32> to vector<16x8xf32>
    %319 = vector.extract_strided_slice %224 {offsets = [24, 0], sizes = [8, 32], strides = [1, 1]} : vector<32x32xf32> to vector<8x32xf32>
    %cst_125 = arith.constant dense<0.000000e+00> : vector<16x32xf32>
    %320 = tpu.matmul %318, %319, %cst_125 {dimension_numbers = #tpu.dot_dimension_numbers<[1], [0], [0], [1], [0, 0, 1, 1], [], []>} : vector<16x8xf32>, vector<8x32xf32>, vector<16x32xf32> -> vector<16x32xf32>
    %321 = arith.addf %297, %320 : vector<16x32xf32>
    %c0_126 = arith.constant 0 : index
    %c0_127 = arith.constant 0 : index
    %322 = vector.load %arg23[%c0_126, %c0_127] : memref<1x32xf32, #tpu.memory_space<vmem>>, vector<1x32xf32>
    %cst_128 = arith.constant 8.000000e+00 : f32
    %323 = vector.broadcast %cst_128 : f32 to vector<1x32xf32>
    %324 = arith.mulf %323, %322 : vector<1x32xf32>
    %325 = vector.broadcast %324 : vector<1x32xf32> to vector<16x32xf32>
    %326 = arith.addf %321, %325 : vector<16x32xf32>
    %c0_129 = arith.constant 0 : index
    %c0_130 = arith.constant 0 : index
    %327 = vector.load %arg24[%c0_129, %c0_130] : memref<1x32xf32, #tpu.memory_space<vmem>>, vector<1x32xf32>
    %c0_131 = arith.constant 0 : index
    %c0_132 = arith.constant 0 : index
    %328 = vector.load %arg25[%c0_131, %c0_132] : memref<1x32xf32, #tpu.memory_space<vmem>>, vector<1x32xf32>
    %cst_133 = arith.constant dense<0.000000e+00> : vector<16xf32>
    %329 = vector.multi_reduction <add>, %326, %cst_133 [1] : vector<16x32xf32> to vector<16xf32>
    %330 = vector.shape_cast %329 : vector<16xf32> to vector<16x1xf32>
    %cst_134 = arith.constant 3.200000e+01 : f32
    %331 = vector.broadcast %cst_134 : f32 to vector<16x1xf32>
    %332 = arith.divf %330, %331 : vector<16x1xf32>
    %333 = vector.broadcast %332 : vector<16x1xf32> to vector<16x32xf32>
    %334 = arith.subf %326, %333 : vector<16x32xf32>
    %335 = arith.mulf %334, %334 : vector<16x32xf32>
    %cst_135 = arith.constant dense<0.000000e+00> : vector<16xf32>
    %336 = vector.multi_reduction <add>, %335, %cst_135 [1] : vector<16x32xf32> to vector<16xf32>
    %337 = vector.shape_cast %336 : vector<16xf32> to vector<16x1xf32>
    %cst_136 = arith.constant 3.200000e+01 : f32
    %338 = vector.broadcast %cst_136 : f32 to vector<16x1xf32>
    %339 = arith.divf %337, %338 : vector<16x1xf32>
    %340 = vector.broadcast %332 : vector<16x1xf32> to vector<16x32xf32>
    %341 = arith.subf %326, %340 : vector<16x32xf32>
    %cst_137 = arith.constant 9.99999974E-6 : f32
    %342 = vector.broadcast %cst_137 : f32 to vector<16x1xf32>
    %343 = arith.addf %339, %342 : vector<16x1xf32>
    %344 = math.rsqrt %343 : vector<16x1xf32>
    %345 = vector.broadcast %344 : vector<16x1xf32> to vector<16x32xf32>
    %346 = arith.mulf %341, %345 : vector<16x32xf32>
    %347 = vector.broadcast %327 : vector<1x32xf32> to vector<16x32xf32>
    %348 = arith.mulf %346, %347 : vector<16x32xf32>
    %349 = vector.broadcast %328 : vector<1x32xf32> to vector<16x32xf32>
    %350 = arith.addf %348, %349 : vector<16x32xf32>
    %c0_138 = arith.constant 0 : index
    %c0_139 = arith.constant 0 : index
    %351 = vector.load %arg26[%c0_138, %c0_139] : memref<32x128xf32, #tpu.memory_space<vmem>>, vector<32x128xf32>
    %cst_140 = arith.constant dense<0.000000e+00> : vector<16x128xf32>
    %352 = tpu.matmul %350, %351, %cst_140 {dimension_numbers = #tpu.dot_dimension_numbers<[1], [0], [0], [1], [0, 0, 1, 1], [], []>} : vector<16x32xf32>, vector<32x128xf32>, vector<16x128xf32> -> vector<16x128xf32>
    %c0_141 = arith.constant 0 : index
    %c0_142 = arith.constant 0 : index
    %353 = vector.load %arg27[%c0_141, %c0_142] : memref<1x128xf32, #tpu.memory_space<vmem>>, vector<1x128xf32>
    %354 = vector.broadcast %353 : vector<1x128xf32> to vector<16x128xf32>
    %355 = arith.addf %352, %354 : vector<16x128xf32>
    %cst_143 = arith.constant 5.000000e-01 : f32
    %356 = vector.broadcast %cst_143 : f32 to vector<16x128xf32>
    %357 = arith.mulf %356, %355 : vector<16x128xf32>
    %cst_144 = arith.constant 4.471500e-02 : f32
    %358 = vector.broadcast %cst_144 : f32 to vector<16x128xf32>
    %359 = arith.mulf %358, %355 : vector<16x128xf32>
    %360 = arith.mulf %359, %355 : vector<16x128xf32>
    %361 = arith.mulf %360, %355 : vector<16x128xf32>
    %362 = arith.addf %355, %361 : vector<16x128xf32>
    %cst_145 = arith.constant 0.797884583 : f32
    %363 = vector.broadcast %cst_145 : f32 to vector<16x128xf32>
    %364 = arith.mulf %363, %362 : vector<16x128xf32>
    %365 = math.tanh %364 : vector<16x128xf32>
    %cst_146 = arith.constant 1.000000e+00 : f32
    %366 = vector.broadcast %cst_146 : f32 to vector<16x128xf32>
    %367 = arith.addf %366, %365 : vector<16x128xf32>
    %368 = arith.mulf %357, %367 : vector<16x128xf32>
    %c0_147 = arith.constant 0 : index
    %c0_148 = arith.constant 0 : index
    %369 = vector.load %arg28[%c0_147, %c0_148] : memref<128x32xf32, #tpu.memory_space<vmem>>, vector<128x32xf32>
    %cst_149 = arith.constant dense<0.000000e+00> : vector<16x32xf32>
    %370 = tpu.matmul %368, %369, %cst_149 {dimension_numbers = #tpu.dot_dimension_numbers<[1], [0], [0], [1], [0, 0, 1, 1], [], []>} : vector<16x128xf32>, vector<128x32xf32>, vector<16x32xf32> -> vector<16x32xf32>
    %c0_150 = arith.constant 0 : index
    %c0_151 = arith.constant 0 : index
    %371 = vector.load %arg29[%c0_150, %c0_151] : memref<1x32xf32, #tpu.memory_space<vmem>>, vector<1x32xf32>
    %372 = vector.broadcast %371 : vector<1x32xf32> to vector<16x32xf32>
    %373 = arith.addf %370, %372 : vector<16x32xf32>
    %374 = arith.addf %373, %326 : vector<16x32xf32>
    %375 = vector.shape_cast %374 : vector<16x32xf32> to vector<2x8x32xf32>
    %c0_152 = arith.constant 0 : index
    %c0_153 = arith.constant 0 : index
    %c0_154 = arith.constant 0 : index
    %376 = vector.load %arg30[%c0_152, %c0_153, %c0_154] : memref<2x8x32xf32, #tpu.memory_space<vmem>>, vector<2x8x32xf32>
    tpu.vector_store %arg30[%c0_152, %c0_153, %c0_154], %375 {strides = array<i32>} : memref<2x8x32xf32, #tpu.memory_space<vmem>>, vector<2x8x32xf32>,
    return
  }
}

</mosaic_0001>

<bundles_post_ra>
// kernel: forward.1
= control target key start
LH: loop header
LB: loop body
LE: loop exit
PB: predicated region body
PF: predicated region fallthrough
CT: control target
= control target key end

     0   :  { %s6783_s6 = smov 1   ;;  %s6784_s10 = smov 2   ;;  %s8837_s0 = inlined_call_operand.smem [shape: u32[31], index: -1, kind: input, shape index: {}] }
   0x1   :  { %s6835_s5 = sld [smem:[%s8837_s0]]   ;;  %s6785_s14 = smov 3  }
   0x2   :  { %s6840_s9 = sld [smem:[%s8837_s0 + %s6783_s6]]   ;;  %s6786_s18 = smov 4  }
   0x3   :  { %s6845_s13 = sld [smem:[%s8837_s0 + %s6784_s10]]   ;;  %s6787_s22 = smov 5  }
   0x4   :  { %s6850_s17 = sld [smem:[%s8837_s0 + %s6785_s14]]   ;;  %s6788_s26 = smov 6  }
   0x5   :  { %s6855_s21 = sld [smem:[%s8837_s0 + %s6786_s18]]   ;;  %s6789_s30 = smov 7  }
   0x6   :  { %s6860_s25 = sld [smem:[%s8837_s0 + %s6787_s22]]   ;;  %s6790_s4 = smov 8  }
   0x7   :  { %8872 = sst [smem:[#allocation20_spill]] %s6835_s5  ;;  %s6791_s10 = smov 9  }
   0x8   :  { %s6865_s29 = sld [smem:[%s8837_s0 + %s6788_s26]]   ;;  %s6792_s15 = smov 10  }
   0x9   :  { %s6870_s3 = sld [smem:[%s8837_s0 + %s6789_s30]]   ;;  %s6793_s20 = smov 11  }
   0xa   :  { %s6875_s8 = sld [smem:[%s8837_s0 + %s6790_s4]]   ;;  %s6794_s26 = smov 12  }
   0xb   :  { %s6880_s14 = sld [smem:[%s8837_s0 + %s6791_s10]]   ;;  %s6795_s1 = smov 13  }
   0xc   :  { %s6885_s19 = sld [smem:[%s8837_s0 + %s6792_s15]]   ;;  %s6796_s7 = smov 14  }
   0xd   :  { %s6890_s24 = sld [smem:[%s8837_s0 + %s6793_s20]]   ;;  %s6797_s15 = smov 15  }
   0xe   :  { %s6895_s30 = sld [smem:[%s8837_s0 + %s6794_s26]]   ;;  %s6798_s22 = smov 16  }
   0xf   :  { %s6900_s6 = sld [smem:[%s8837_s0 + %s6795_s1]]   ;;  %s6799_s28 = smov 17  }
  0x10   :  { %s6905_s12 = sld [smem:[%s8837_s0 + %s6796_s7]]   ;;  %s6800_s7 = smov 18  }
  0x11   :  { %s6910_s20 = sld [smem:[%s8837_s0 + %s6797_s15]]   ;;  %s6801_s15 = smov 19  }
  0x12   :  { %s6915_s27 = sld [smem:[%s8837_s0 + %s6798_s22]]   ;;  %s6802_s22 = smov 20  }
  0x13   :  { %8873 = sst [smem:[#allocation21_spill]] %s6890_s24 }
  0x14   :  { %8874 = sst [smem:[#allocation22_spill]] %s6895_s30 }
  0x15   :  { %8875 = sst [smem:[#allocation23_spill]] %s6900_s6 }
  0x16   :  { %8876 = sst [smem:[#allocation24_spill]] %s6905_s12 }
  0x17   :  { %8877 = sst [smem:[#allocation25_spill]] %s6910_s20 }
  0x18   :  { %8878 = sst [smem:[#allocation26_spill]] %s6915_s27 }
  0x19   :  { %s6920_s4 = sld [smem:[%s8837_s0 + %s6799_s28]]   ;;  %s6803_s28 = smov 21  }
  0x1a   :  { %s6925_s5 = sld [smem:[%s8837_s0 + %s6800_s7]]   ;;  %s6804_s7 = smov 22  }
  0x1b   :  { %s6930_s20 = sld [smem:[%s8837_s0 + %s6801_s15]]   ;;  %s6805_s15 = smov 23  }
  0x1c   :  { %s6935_s6 = sld [smem:[%s8837_s0 + %s6802_s22]]   ;;  %s6806_s22 = smov 24  }
  0x1d   :  { %s6950_s30 = sld [smem:[%s8837_s0 + %s6805_s15]]   ;;  %s6809_s15 = smov 27  }
  0x1e   :  { %s6955_s27 = sld [smem:[%s8837_s0 + %s6806_s22]]   ;;  %s6810_s22 = smov 28  }
  0x1f   :  { %8879 = sst [smem:[#allocation27_spill]] %s6920_s4 }
  0x20   :  { %8880 = sst [smem:[#allocation28_spill]] %s6925_s5 }
  0x21   :  { %s6940_s4 = sld [smem:[%s8837_s0 + %s6803_s28]]   ;;  %s6807_s28 = smov 25  }
  0x22   :  { %s6945_s5 = sld [smem:[%s8837_s0 + %s6804_s7]]   ;;  %s6808_s7 = smov 26  }
  0x23   :  { %8882 = sst [smem:[#allocation30_spill]] %s6950_s30 }
  0x24   :  { %8883 = sst [smem:[#allocation31_spill]] %s6955_s27 }
  0x25   :  { %s6965_s12 = sld [smem:[%s8837_s0 + %s6808_s7]]   ;;  %s6812_s7 = smov 30  }
  0x26   :  { %s6970_s30 = sld [smem:[%s8837_s0 + %s6809_s15]]  }
  0x27   :  { %8881 = sst [smem:[#allocation29_spill]] %s6940_s4 }
  0x28   :  { %s6960_s4 = sld [smem:[%s8837_s0 + %s6807_s28]]   ;;  %s6811_s28 = smov 29  }
  0x29   :  { %s6975_s27 = sld [smem:[%s8837_s0 + %s6810_s22]]  }
  0x2a   :  { %s6985_s24 = sld [smem:[%s8837_s0 + %s6812_s7]]  }
  0x2e   :  { %8884 = sst [smem:[#allocation32_spill]] %s6960_s4 }
  0x2f   :  { %s6980_s4 = sld [smem:[%s8837_s0 + %s6811_s28]]  }
  0x30   :  { %66 = vsyncpa [#allocation3], 0 }
  0x31   :  { %67 = vsyncpa [#allocation6], 0 }
  0x32   :  { %68 = vsyncpa [#allocation9], 0 }
  0x33   :  { %69 = vsyncpa [#allocation12], 0  ;;  %s125_s15 = sshll.u32 %s6930_s20, 4  ;;  %s126_s15 = int_to_ptr.hbm [resolvable:$true] %s125_s15 }
  0x34   :  { %70 = vsyncpa [#allocation4], 0  ;;  %s6813_s16 = smov [#allocation5]   ;;  %s6581_s22 = sshra.s32 %s126_s15, 4  ;;  %s6582_s22 = int_to_ptr.hbm [resolvable:$true] %s6581_s22 }
  0x35   :  { %s127_s18 = sshll.u32 %s6813_s16, 4  ;;  %s6583_s23 = scalar_lea.hbm %s6582_s22, 1  ;;  %s128_s18 = int_to_ptr.vmem [resolvable:$true] %s127_s18 }
  0x36   :  { %p6584_p0 = scmp.ne.s32.totalorder %s6582_s22, %s6583_s23  ;;  %s6585_s26 = scalar_lea.hbm %s6930_s20, 1 }
  0x37   :  { %p6586_p1 = scmp.lt.s32.totalorder %s6582_s22, %s6930_s20  ;;  %p6587_p2 = scmp.lt.s32.totalorder %s6585_s26, %s6583_s23 }
  0x39   :  { %p6588_p3 = por %p6587_p2, %p6586_p1 }
  0x3b   :  { %p6589_p4 = pnand %p6588_p3, %p6584_p0 }
  0x3d   :  { %6592 = shalt.err (!%p6589_p4)
}
  0x3e   :  { %130 = dma.hbm_to_vmem [thread:$0]  %s126_s15, 16, %s128_s18, [#allocation6]  }
  0x3f   :  { %s150_s0 = sshll.u32 %s6945_s5, 4  ;;  %s6814_s28 = smov [#allocation8]   ;;  %s151_s0 = int_to_ptr.hbm [resolvable:$true] %s150_s0 }
  0x40   :  { %s152_s1 = sshll.u32 %s6814_s28, 4  ;;  %s183_s2 = sshll.u32 %s6970_s30, 4  ;;  %s153_s1 = int_to_ptr.vmem [resolvable:$true] %s152_s1  ;;  %s6992_s2 = int_to_ptr.hbm [resolvable:$true] %s183_s2 }
  0x41   :  { %s6605_s7 = sshra.s32 %s151_s0, 4  ;;  %s6609_s10 = scalar_lea.hbm %s6945_s5, 32  ;;  %s6606_s7 = int_to_ptr.hbm [resolvable:$true] %s6605_s7 }
  0x42   :  { %s6607_s20 = scalar_lea.hbm %s6606_s7, 32  ;;  %p6610_p6 = scmp.lt.s32.totalorder %s6606_s7, %s6945_s5 }
  0x43   :  { %p6608_p5 = scmp.ne.s32.totalorder %s6606_s7, %s6607_s20  ;;  %p6611_p7 = scmp.lt.s32.totalorder %s6609_s10, %s6607_s20 }
  0x45   :  { %p6612_p8 = por %p6611_p7, %p6610_p6 }
  0x47   :  { %p6613_p9 = pnand %p6612_p8, %p6608_p5 }
  0x49   :  { %6616 = shalt.err (!%p6613_p9)
}
  0x4a   :  { %s6815_s11 = smov 128   ;;  %s6816_s15 = smov 8  }
  0x4b   :  { %158 = dma.hbm_to_vmem [thread:$0]  %s151_s0, 512, %s153_s1, [#allocation9], %s6815_s11, %s6815_s11, %s6816_s15  }
  0x4c   :  { %s77_s16 = sshll.u32 %s6840_s9, 4  ;;  %s6817_s18 = smov [#allocation11]   ;;  %s7000_s16 = int_to_ptr.hbm [resolvable:$true] %s77_s16 }
  0x4d   :  { %s185_s22 = sshll.u32 %s6817_s18, 4  ;;  %s6629_s5 = sshra.s32 %s6992_s2, 4  ;;  %s186_s22 = int_to_ptr.vmem [resolvable:$true] %s185_s22  ;;  %s6630_s5 = int_to_ptr.hbm [resolvable:$true] %s6629_s5 }
  0x4e   :  { %s6631_s23 = scalar_lea.hbm %s6630_s5, 1  ;;  %s6633_s26 = scalar_lea.hbm %s6970_s30, 1 }
  0x4f   :  { %p6632_p10 = scmp.ne.s32.totalorder %s6630_s5, %s6631_s23  ;;  %p6634_p11 = scmp.lt.s32.totalorder %s6630_s5, %s6970_s30 }
  0x50   :  { %p6635_p12 = scmp.lt.s32.totalorder %s6633_s26, %s6631_s23 }
  0x52   :  { %p6636_p13 = por %p6635_p12, %p6634_p11 }
  0x54   :  { %p6637_p0 = pnand %p6636_p13, %p6632_p10 }
  0x56   :  { %6640 = shalt.err (!%p6637_p0)
}
  0x57   :  { %188 = dma.hbm_to_vmem [thread:$0]  %s6992_s2, 16, %s186_s22, [#allocation12]  }
  0x58   :  { %s6818_s0 = smov [#allocation2]   ;;  %s135_s1 = sshll.u32 %s6935_s6, 4  ;;  %s7007_s1 = int_to_ptr.hbm [resolvable:$true] %s135_s1 }
  0x59   :  { %s79_s28 = sshll.u32 %s6818_s0, 4  ;;  %s6653_s7 = sshra.s32 %s7000_s16, 4  ;;  %s80_s28 = int_to_ptr.vmem [resolvable:$true] %s79_s28  ;;  %s6654_s7 = int_to_ptr.hbm [resolvable:$true] %s6653_s7 }
  0x5a   :  { %s6655_s20 = scalar_lea.hbm %s6654_s7, 16  ;;  %s6657_s30 = scalar_lea.hbm %s6840_s9, 16 }
  0x5b   :  { %p6656_p1 = scmp.ne.s32.totalorder %s6654_s7, %s6655_s20  ;;  %p6658_p2 = scmp.lt.s32.totalorder %s6654_s7, %s6840_s9 }
  0x5c   :  { %p6659_p3 = scmp.lt.s32.totalorder %s6657_s30, %s6655_s20 }
  0x5e   :  { %p6660_p4 = por %p6659_p3, %p6658_p2 }
  0x60   :  { %p6661_p5 = pnand %p6660_p4, %p6656_p1 }
  0x62   :  { %6664 = shalt.err (!%p6661_p5)
}
  0x63   :  { %85 = dma.hbm_to_vmem [thread:$0]  %s7000_s16, 256, %s80_s28, [#allocation3], %s6815_s11, %s6815_s11, %s6816_s15  }
  0x64   :  { %s169_s2 = sshll.u32 %s6965_s12, 4  ;;  %s6819_s10 = smov [#allocation7]   ;;  %s7017_s2 = int_to_ptr.hbm [resolvable:$true] %s169_s2 }
  0x65   :  { %s137_s18 = sshll.u32 %s6819_s10, 4  ;;  %s6677_s9 = sshra.s32 %s7007_s1, 4  ;;  %s138_s18 = int_to_ptr.vmem [resolvable:$true] %s137_s18  ;;  %s6678_s9 = int_to_ptr.hbm [resolvable:$true] %s6677_s9 }
  0x66   :  { %s6679_s22 = scalar_lea.hbm %s6678_s9, 32  ;;  %s6681_s5 = scalar_lea.hbm %s6935_s6, 32 }
  0x67   :  { %p6680_p6 = scmp.ne.s32.totalorder %s6678_s9, %s6679_s22  ;;  %p6682_p7 = scmp.lt.s32.totalorder %s6678_s9, %s6935_s6 }
  0x68   :  { %p6683_p8 = scmp.lt.s32.totalorder %s6681_s5, %s6679_s22 }
  0x6a   :  { %p6684_p9 = por %p6683_p8, %p6682_p7 }
  0x6c   :  { %p6685_p10 = pnand %p6684_p9, %p6680_p6 }
  0x6e   :  { %6688 = shalt.err (!%p6685_p10)
}
  0x6f   :  { %143 = dma.hbm_to_vmem [thread:$0]  %s7007_s1, 512, %s138_s18, [#allocation6], %s6815_s11, %s6815_s11, %s6816_s15  }
  0x70   :  { %s6820_s16 = smov [#allocation10]   ;;  %s196_s26 = sshll.u32 %s6980_s4, 4  ;;  %s197_s26 = int_to_ptr.hbm [resolvable:$true] %s196_s26 }
  0x71   :  { %s171_s23 = sshll.u32 %s6820_s16, 4  ;;  %s6701_s0 = sshra.s32 %s7017_s2, 4  ;;  %s172_s23 = int_to_ptr.vmem [resolvable:$true] %s171_s23  ;;  %s6702_s0 = int_to_ptr.hbm [resolvable:$true] %s6701_s0 }
  0x72   :  { %s6703_s6 = scalar_lea.hbm %s6702_s0, 32  ;;  %s6705_s28 = scalar_lea.hbm %s6965_s12, 32 }
  0x73   :  { %p6704_p11 = scmp.ne.s32.totalorder %s6702_s0, %s6703_s6  ;;  %p6706_p12 = scmp.lt.s32.totalorder %s6702_s0, %s6965_s12 }
  0x74   :  { %p6707_p13 = scmp.lt.s32.totalorder %s6705_s28, %s6703_s6 }
  0x76   :  { %p6708_p0 = por %p6707_p13, %p6706_p12 }
  0x78   :  { %p6709_p1 = pnand %p6708_p0, %p6704_p11 }
  0x7a   :  { %6712 = shalt.err (!%p6709_p1)
}
  0x7b   :  { %177 = dma.hbm_to_vmem [thread:$0]  %s7017_s2, 512, %s172_s23, [#allocation9], %s6815_s11, %s6815_s11, %s6816_s15  }
  0x7c   :  { %s6821_s1 = smov [#allocation13]   ;;  %s6725_s20 = sshra.s32 %s197_s26, 4  ;;  %s6726_s20 = int_to_ptr.hbm [resolvable:$true] %s6725_s20 }
  0x7d   :  { %s198_s7 = sshll.u32 %s6821_s1, 4  ;;  %s6727_s30 = scalar_lea.hbm %s6726_s20, 1  ;;  %s199_s7 = int_to_ptr.vmem [resolvable:$true] %s198_s7 }
  0x7e   :  { %p6728_p2 = scmp.ne.s32.totalorder %s6726_s20, %s6727_s30  ;;  %s6729_s12 = scalar_lea.hbm %s6980_s4, 1 }
  0x7f   :  { %p6730_p3 = scmp.lt.s32.totalorder %s6726_s20, %s6980_s4  ;;  %p6731_p4 = scmp.lt.s32.totalorder %s6729_s12, %s6727_s30 }
  0x81   :  { %p6732_p5 = por %p6731_p4, %p6730_p3 }
  0x83   :  { %p6733_p6 = pnand %p6732_p5, %p6728_p2 }
  0x85   :  { %6736 = shalt.err (!%p6733_p6)
}
  0x86   :  { %201 = dma.hbm_to_vmem [thread:$0]  %s197_s26, 16, %s199_s7, [#allocation12]  }
  0x87   :  { %6773 = dma.done.wait [#allocation3], 256  }
  0x88   :  { %6774 = vsyncadd [#allocation3], 4294967040 }
  0x89   :  { %6775 = dma.done.wait [#allocation6], 528  }
  0x8a   :  { %6776 = vsyncadd [#allocation6], 4294966768 }
  0x8b   :  { %6777 = dma.done.wait [#allocation9], 1024  }
  0x8c   :  { %6778 = vsyncadd [#allocation9], 4294966272 }
  0x8d   :  { %6779 = dma.done.wait [#allocation12], 32  }
  0x8e   :  { %6780 = vsyncadd [#allocation12], 4294967264  ;;  %vm234_vm0 = vcmask 261120   ;;  %v7036_v0 = vld [vmem:[#allocation2] sm:$0xff]  ;;  %v7038_v1 = vld [vmem:[#allocation2 + $0x8] sm:$0xff]  ;;  %v6822_v4 = vmov 32.0  }
  0x8f   :  { %v235_v2 = vsel %vm234_vm0, %v7036_v0, 0.0  ;;  %v238_v3 = vsel %vm234_vm0, %v7038_v1, 0.0  ;;  %6259 = vrcp.f32 %v6822_v4  ;;  %v299_v21 = vld [vmem:[%s6855_s21 + $0x18] sm:$0xff]  ;;  %v298_v23 = vld [vmem:[%s6855_s21 + $0x10] sm:$0xff]  ;;  %v297_v25 = vld [vmem:[%s6855_s21 + $0x8] sm:$0xff]  ;;  %vm399_vm8 = vcmask 64512  }
  0x90   :  { %236 = vadd.xlane.f32.xlu0 %v235_v2  ;;  %239 = vadd.xlane.f32.xlu1 %v238_v3  ;;  %v336_v22 = vld [vmem:[%s6865_s29 + $0x18] sm:$0xff]  ;;  %v335_v24 = vld [vmem:[%s6865_s29 + $0x10] sm:$0xff]  ;;  %v334_v26 = vld [vmem:[%s6865_s29 + $0x8] sm:$0xff]  ;;  %s8892_s4 = sld [smem:[#allocation27_spill]]  ;;  %s5918_s23 = sshll.u32 %s6985_s24, 4  ;;  %s5919_s23 = int_to_ptr.hbm [resolvable:$true] %s5918_s23 }
  0x91   :  { %322 = vmatpush.msra.mxu0 %v299_v21  ;;  %353 = vmatpush.msra.mxu2 %v336_v22  ;;  %v296_v27 = vld [vmem:[%s6855_s21] sm:$0xff]  ;;  %v367_v35 = vld [vmem:[%s6875_s8 + $0x18] sm:$0xff]  ;;  %v366_v36 = vld [vmem:[%s6875_s8 + $0x10] sm:$0xff]  ;;  %s6825_s21 = smov 104   ;;  %s8894_s2 = sld [smem:[#allocation20_spill]] }
  0x92   :  { %v333_v28 = vld [vmem:[%s6865_s29] sm:$0xff]  ;;  %v365_v37 = vld [vmem:[%s6875_s8 + $0x8] sm:$0xff]  ;;  %s8887_s29 = sld [smem:[#allocation24_spill]]  ;;  %s6761_s26 = sshra.s32 %s5919_s23, 4  ;;  %s6762_s26 = int_to_ptr.hbm [resolvable:$true] %s6761_s26 }
  0x93   :  { %323 = vmatpush.msra.mxu0 %v298_v23  ;;  %354 = vmatpush.msra.mxu2 %v335_v24  ;;  %v364_v38 = vld [vmem:[%s6875_s8] sm:$0xff]  ;;  %s8889_s8 = sld [smem:[#allocation22_spill]]  ;;  %s6763_s0 = scalar_lea.hbm %s6762_s26, 16 }
  0x94   :  { %v6243_v51 = vld [vmem:[%s6845_s13] ss:$0 sm:$0xff]  ;;  %s6823_s13 = smov 120   ;;  %s8895_s10 = sld [smem:[#allocation28_spill]] }
  0x95   :  { %v6260_v5 = vpop.eup %6259  ;;  %324 = vmatpush.msra.mxu0 %v297_v25  ;;  %355 = vmatpush.msra.mxu2 %v334_v26  ;;  %v6244_v54 = vld [vmem:[%s6850_s17] ss:$0 sm:$0xff]  ;;  %s6824_s17 = smov 112   ;;  %s8928_s18 = sld [smem:[#allocation29_spill]] }
  0x96   :  { %v242_v6 = vmul.f32 32.0, %v6260_v5  ;;  %vm246_vm1 = vweird.f32 %v6260_v5  ;;  %v6246_v61 = vld [vmem:[%s6870_s3] ss:$0 sm:$0xff]  ;;  %s8888_s3 = sld [smem:[#allocation26_spill]]  ;;  %p6764_p7 = scmp.ne.s32.totalorder %s6762_s26, %s6763_s0 }
  0x97   :  { %325 = vmatpush.msra.mxu0 %v296_v27  ;;  %356 = vmatpush.msra.mxu2 %v333_v28  ;;  %v6245_v63 = vld [vmem:[%s6860_s25] ss:$0 sm:$0xff]  ;;  %s8886_s25 = sld [smem:[#allocation21_spill]]  ;;  %s6765_s6 = scalar_lea.hbm %s6985_s24, 16 }
  0x98   :  { %v243_v7 = vsub.f32 1.0, %v242_v6  ;;  %s8974_s9 = sld [smem:[#allocation30_spill]]  ;;  %p6766_p8 = scmp.lt.s32.totalorder %s6762_s26, %s6985_s24 }
  0x99   :  { %384 = vmatpush.msrb.mxu2 %v367_v35  ;;  %s8976_s22 = sld [smem:[#allocation31_spill]]  ;;  %p6767_p9 = scmp.lt.s32.totalorder %s6765_s6, %s6763_s0 }
  0x9a   :  { %v244_v8 = vmul.f32 %v6260_v5, %v243_v7  ;;  %s8977_s5 = sld [smem:[#allocation32_spill]] }
  0x9b   :  { %385 = vmatpush.msrb.mxu2 %v366_v36  ;;  %p6768_p10 = por %p6767_p9, %p6766_p8 }
  0x9c   :  { %v245_v9 = vadd.f32 %v6260_v5, %v244_v8 }
  0x9d   :  { %386 = vmatpush.msrb.mxu2 %v365_v37  ;;  %p6769_p11 = pnand %p6768_p10, %p6764_p7 }
  0x9e   :  { %v7044_v10 = vsel %vm246_vm1, %v6260_v5, %v245_v9  ;;  %v6247_v9 = vld [vmem:[%s6880_s14] ss:$0 sm:$0xff]  ;;  %s8890_s14 = sld [smem:[#allocation23_spill]] }
  0x9f   :  { %8885 = vst [vmem:[#allocation33_spill] sm:$0xff] %v7044_v10  ;;  %387 = vmatpush.msrb.mxu2 %v364_v38 }
 0x103   :  { %v237_v11 = vpop.xlane.xlu0 %236  ;;  %v240_v12 = vpop.xlane.xlu1 %239 }
 0x104   :  { %v248_v13 = vmul.f32 %v7044_v10, %v237_v11  ;;  %v249_v14 = vmul.f32 %v7044_v10, %v240_v12 }
 0x106   :  { %v250_v15 = vsub.f32 %v7036_v0, %v248_v13  ;;  %v7050_v16 = vsub.f32 %v7038_v1, %v249_v14 }
 0x108   :  { %v252_v17 = vmul.f32 %v250_v15, %v250_v15  ;;  %v253_v18 = vmul.f32 %v7050_v16, %v7050_v16 }
 0x10a   :  { %v254_v19 = vsel %vm234_vm0, %v252_v17, 0.0  ;;  %v257_v20 = vsel %vm234_vm0, %v253_v18, 0.0 }
 0x10b   :  { %255 = vadd.xlane.f32.xlu0 %v254_v19  ;;  %258 = vadd.xlane.f32.xlu1 %v257_v20 }
 0x17e   :  { %v256_v29 = vpop.xlane.xlu0 %255  ;;  %v259_v30 = vpop.xlane.xlu1 %258 }
 0x17f   :  { %v260_v31 = vmul.f32 %v256_v29, %v7044_v10  ;;  %v261_v32 = vmul.f32 %v259_v30, %v7044_v10 }
 0x181   :  { %v262_v33 = vadd.f32 1e-05, %v260_v31  ;;  %v263_v34 = vadd.f32 1e-05, %v261_v32 }
 0x183   :  { %6261 = vrsqrt.f32 %v262_v33  ;;  %vm280_vm2 = vweird.f32 %v263_v34  ;;  %vm270_vm5 = vweird.f32 %v262_v33 }
 0x184   :  { %6263 = vrsqrt.f32 %v263_v34 }
 0x189   :  { %v6262_v39 = vpop.eup %6261 }
 0x18a   :  { %v6264_v40 = vpop.eup %6263  ;;  %v265_v41 = vmul.f32 %v6262_v39, %v262_v33  ;;  %vm271_vm4 = vweird.f32 %v6262_v39 }
 0x18b   :  { %v275_v42 = vmul.f32 %v6264_v40, %v263_v34  ;;  %vm281_vm3 = vweird.f32 %v6264_v40  ;;  %vm272_vm7 = vmor %vm270_vm5, %vm271_vm4 }
 0x18c   :  { %v266_v43 = vmul.f32 %v6262_v39, %v265_v41  ;;  %vm282_vm6 = vmor %vm280_vm2, %vm281_vm3 }
 0x18d   :  { %v276_v44 = vmul.f32 %v6264_v40, %v275_v42 }
 0x18e   :  { %v267_v45 = vmul.f32 0.5, %v266_v43 }
 0x18f   :  { %v277_v46 = vmul.f32 0.5, %v276_v44 }
 0x190   :  { %v268_v47 = vsub.f32 1.5, %v267_v45 }
 0x191   :  { %v278_v48 = vsub.f32 1.5, %v277_v46 }
 0x192   :  { %v269_v49 = vmul.f32 %v6262_v39, %v268_v47 }
 0x193   :  { %v279_v50 = vmul.f32 %v6264_v40, %v278_v48 }
 0x194   :  { %v273_v52 = vsel %vm272_vm7, %v6262_v39, %v269_v49 }
 0x195   :  { %v284_v53 = vmul.f32 %v273_v52, %v250_v15  ;;  %v283_v55 = vsel %vm282_vm6, %v6264_v40, %v279_v50 }
 0x196   :  { %v285_v57 = vmul.f32 %v283_v55, %v7050_v16 }
 0x197   :  { %v289_v56 = vmul.f32 %v6243_v51, %v284_v53 }
 0x198   :  { %v290_v59 = vmul.f32 %v6243_v51, %v285_v57  ;;  %v395_v51 = vld [vmem:[%s6885_s19] sm:$0xff] }
 0x199   :  { %v294_v58 = vadd.f32 %v6244_v54, %v289_v56 }
 0x19a   :  { %v295_v60 = vadd.f32 %v6244_v54, %v290_v59 }
 0x19b   :  { %5964 = vmatmul.msk.f32.vlgmr.msra.gmra.mxu0 %vm234_vm0, %v294_v58  ;;  %5966 = vmatmul.msk.f32.vlgmr.msra.gmra.mxu2 %vm234_vm0, %v294_v58 }
 0x1a3   :  { %5967 = vmatmul.msk.f32.gmra.mxu2 %vm234_vm0, %v295_v60  ;;  %5965 = vmatmul.msk.f32.gmra.mxu0 %vm234_vm0, %v295_v60 }
 0x1ab   :  { %5968 = vmatmul.msk.f32.vlgmr.msrb.gmra.mxu2 %vm234_vm0, %v294_v58 }
 0x1b3   :  { %5969 = vmatmul.msk.f32.gmra.mxu2 %vm234_vm0, %v295_v60 }
 0x218   :  { %v327_v62 = vpop.f32.mrf.mxu0 }
 0x219   :  { %v7087_v4 = vadd.f32 %v6245_v63, %v327_v62 }
 0x21e   :  { %v358_v2 = vpop.f32.mrf.mxu2 }
 0x21f   :  { %v7081_v3 = vadd.f32 %v6246_v61, %v358_v2 }
 0x220   :  { %v330_v5 = vpop.f32.mrf.mxu0 }
 0x221   :  { %524 = vrot.lane.b32.xlu2 %v7081_v3, %s6823_s13  ;;  %5970 = vmatpush.xpose.msk.msra.mxu3 %vm399_vm8, %v7081_v3  ;;  %v7093_v8 = vadd.f32 %v6245_v63, %v330_v5 }
 0x224   :  { %5971 = vmatmul.msk.f32.vlgmr.msra.gmra.mxu3 %vm399_vm8, %v7087_v4 }
 0x226   :  { %v361_v6 = vpop.f32.mrf.mxu2 }
 0x227   :  { %v7091_v7 = vadd.f32 %v6246_v61, %v361_v6 }
 0x229   :  { %522 = vrot.lane.b32.xlu2 %v7087_v4, %s6823_s13  ;;  %5972 = vmatpush.xpose.msk.msrb.mxu3 %vm399_vm8, %v7091_v7 }
 0x22c   :  { %5973 = vmatmul.msk.f32.vlgmr.msrb.gmra.mxu3 %vm399_vm8, %v7093_v8 }
 0x22e   :  { %v389_v11 = vpop.f32.mrf.mxu2 }
 0x22f   :  { %v7102_v12 = vadd.f32 %v6247_v9, %v389_v11 }
 0x231   :  { %494 = vmatpush.msra.mxu3 %v7102_v12  ;;  %552 = vrot.lane.b32.xlu2 %v7091_v7, %s6823_s13 }
 0x236   :  { %v392_v13 = vpop.f32.mrf.mxu2 }
 0x237   :  { %v7107_v14 = vadd.f32 %v6247_v9, %v392_v13  ;;  %v396_v9 = vld [vmem:[%s6885_s19 + $0x8] sm:$0xff] }
 0x239   :  { %517 = vmatpush.msrb.mxu0 %v7107_v14 }
 0x27b   :  { %v525_v15 = vpop.permute.xlu2 %524 }
 0x27c   :  { %5976 = vmatpush.xpose.msk.msra.mxu1 %vm399_vm8, %v525_v15 }
 0x280   :  { %677 = vmatpush.msrb.mxu1 %v396_v9 }
 0x283   :  { %v523_v16 = vpop.permute.xlu2 %522 }
 0x284   :  { %5977 = vmatmul.msk.f32.vlgmr.msra.gmra.mxu1 %vm399_vm8, %v523_v16 }
 0x28b   :  { %v553_v17 = vpop.permute.xlu2 %552 }
 0x28c   :  { %5978 = vmatpush.xpose.msk.msra.mxu2 %vm399_vm8, %v553_v17 }
 0x290   :  { %706 = vmatpush.msrb.mxu2 %v395_v51 }
 0x2a7   :  { %v423_v18 = vpop.f32.mrf.mxu3 }
 0x2a8   :  { %v452_v19 = vmul.f32 0.17677669, %v423_v18 }
 0x2aa   :  { %v454_v20 = vsel %vm399_vm8, %v452_v19, -inf }
 0x2ab   :  { %455 = vmax.xlane.f32.xlu0 %v454_v20 }
 0x2af   :  { %v449_v29 = vpop.f32.mrf.mxu3 }
 0x2b0   :  { %v453_v30 = vmul.f32 0.17677669, %v449_v29 }
 0x2b2   :  { %v457_v32 = vsel %vm399_vm8, %v453_v30, -inf }
 0x2bf   :  { %550 = vrot.lane.b32.xlu0 %v7093_v8, %s6823_s13 }
 0x2c7   :  { %716 = vrot.lane.b32.xlu0 %v7081_v3, %s6824_s17 }
 0x2cf   :  { %714 = vrot.lane.b32.xlu0 %v7087_v4, %s6824_s17 }
 0x301   :  { %v547_v21 = vpop.f32.mrf.mxu1 }
 0x302   :  { %v578_v22 = vmul.f32 0.17677669, %v547_v21 }
 0x304   :  { %v580_v23 = vsel %vm399_vm8, %v578_v22, -inf }
 0x305   :  { %581 = vmax.xlane.f32.xlu1 %v580_v23 }
 0x31e   :  { %v456_v24 = vpop.xlane.xlu0 %455 }
 0x31f   :  { %v460_v25 = vsub.f32 %v452_v19, %v456_v24 }
 0x321   :  { %v462_v26 = vmul.f32 1.442695, %v460_v25 }
 0x323   :  { %6265 = vpow2.f32 %v462_v26 }
 0x329   :  { %v6266_v27 = vpop.eup %6265 }
 0x32a   :  { %v466_v28 = vsel %vm399_vm8, %v6266_v27, 0.0 }
 0x32b   :  { %467 = vadd.xlane.f32.xlu1 %v466_v28 }
 0x331   :  { %v551_v31 = vpop.permute.xlu0 %550 }
 0x332   :  { %5979 = vmatmul.msk.f32.vlgmr.msra.gmra.mxu2 %vm399_vm8, %v551_v31 }
 0x333   :  { %458 = vmax.xlane.f32.xlu1 %v457_v32 }
 0x339   :  { %v717_v50 = vpop.permute.xlu0 %716 }
 0x341   :  { %v715_v57 = vpop.permute.xlu0 %714 }
 0x34c   :  { %603 = vrot.lane.b32.xlu1 %v7102_v12, %s6823_s13 }
 0x378   :  { %v582_v33 = vpop.xlane.xlu1 %581 }
 0x379   :  { %v586_v34 = vsub.f32 %v578_v22, %v582_v33 }
 0x37b   :  { %v588_v35 = vmul.f32 1.442695, %v586_v34 }
 0x37d   :  { %6267 = vpow2.f32 %v588_v35 }
 0x383   :  { %v6268_v36 = vpop.eup %6267 }
 0x384   :  { %v592_v37 = vsel %vm399_vm8, %v6268_v36, 0.0 }
 0x385   :  { %593 = vadd.xlane.f32.xlu2 %v592_v37 }
 0x39d   :  { %630 = vrot.lane.b32.xlu2 %v7107_v14, %s6823_s13 }
 0x39e   :  { %v468_v38 = vpop.xlane.xlu1 %467 }
 0x39f   :  { %6269 = vrcp.f32 %v468_v38 }
 0x3a5   :  { %v6270_v39 = vpop.eup %6269  ;;  %879 = vrot.lane.b32.xlu2 %v7081_v3, %s6825_s21 }
 0x3a6   :  { %v474_v40 = vmul.f32 %v6270_v39, %v6266_v27  ;;  %v459_v41 = vpop.xlane.xlu1 %458 }
 0x3a7   :  { %v461_v42 = vsub.f32 %v453_v30, %v459_v41 }
 0x3a8   :  { %5974 = vmatmul.msk.f32.vlgmr.msra.gmra.mxu3 %vm399_vm8, %v474_v40 }
 0x3a9   :  { %v464_v43 = vmul.f32 1.442695, %v461_v42 }
 0x3ab   :  { %6271 = vpow2.f32 %v464_v43 }
 0x3b1   :  { %v6272_v44 = vpop.eup %6271 }
 0x3b2   :  { %v469_v45 = vsel %vm399_vm8, %v6272_v44, 0.0 }
 0x3b3   :  { %470 = vadd.xlane.f32.xlu0 %v469_v45  ;;  %v397_v45 = vld [vmem:[%s6885_s19 + $0x10] sm:$0xff] }
 0x3b4   :  { %867 = vmatpush.msra.mxu1 %v397_v45 }
 0x3b5   :  { %v575_v46 = vpop.f32.mrf.mxu2 }
 0x3b6   :  { %v579_v47 = vmul.f32 0.17677669, %v575_v46 }
 0x3b8   :  { %v583_v48 = vsel %vm399_vm8, %v579_v47, -inf }
 0x3b9   :  { %584 = vmax.xlane.f32.xlu1 %v583_v48 }
 0x3be   :  { %v604_v49 = vpop.permute.xlu1 %603 }
 0x3bf   :  { %624 = vmatpush.msrb.mxu3 %v604_v49 }
 0x3c1   :  { %5986 = vmatpush.xpose.msk.msra.mxu3 %vm399_vm8, %v717_v50 }
 0x3c7   :  { %744 = vrot.lane.b32.xlu0 %v7091_v7, %s6824_s17 }
 0x3cf   :  { %794 = vrot.lane.b32.xlu0 %v7102_v12, %s6824_s17 }
 0x3d2   :  { %742 = vrot.lane.b32.xlu1 %v7093_v8, %s6824_s17 }
 0x3d7   :  { %907 = vrot.lane.b32.xlu0 %v7091_v7, %s6825_s21 }
 0x3da   :  { %905 = vrot.lane.b32.xlu1 %v7093_v8, %s6825_s21 }
 0x3f8   :  { %v594_v52 = vpop.xlane.xlu2 %593 }
 0x3f9   :  { %6273 = vrcp.f32 %v594_v52 }
 0x3ff   :  { %v6274_v53 = vpop.eup %6273 }
 0x400   :  { %v600_v54 = vmul.f32 %v6274_v53, %v6268_v36  ;;  %v631_v55 = vpop.permute.xlu2 %630 }
 0x401   :  { %651 = vmatpush.msra.mxu0 %v631_v55 }
 0x402   :  { %5980 = vmatmul.msk.f32.vlgmr.msrb.gmra.mxu3 %vm399_vm8, %v600_v54 }
 0x408   :  { %v880_v56 = vpop.permute.xlu2 %879 }
 0x409   :  { %5994 = vmatpush.xpose.msk.msra.mxu2 %vm399_vm8, %v880_v56 }
 0x40a   :  { %5987 = vmatmul.msk.f32.vlgmr.msra.gmra.mxu3 %vm399_vm8, %v715_v57 }
 0x426   :  { %v471_v58 = vpop.xlane.xlu0 %470 }
 0x427   :  { %6275 = vrcp.f32 %v471_v58 }
 0x42b   :  { %v496_v59 = vpop.f32.mrf.mxu3 }
 0x42c   :  { %5984 = vmatmul.msk.f32.vlgmr.msrb.gmra.mxu2 %vm399_vm8, %v496_v59  ;;  %v585_v60 = vpop.xlane.xlu1 %584 }
 0x42d   :  { %v6276_v61 = vpop.eup %6275  ;;  %v587_v62 = vsub.f32 %v579_v47, %v585_v60 }
 0x42e   :  { %v475_v63 = vmul.f32 %v6276_v61, %v6272_v44 }
 0x42f   :  { %v590_v2 = vmul.f32 1.442695, %v587_v62 }
 0x430   :  { %5975 = vmatmul.msk.f32.vlgmr.msrb.gmra.mxu0 %vm399_vm8, %v475_v63 }
 0x431   :  { %6277 = vpow2.f32 %v590_v2 }
 0x437   :  { %v6278_v3 = vpop.eup %6277 }
 0x438   :  { %v595_v5 = vsel %vm399_vm8, %v6278_v3, 0.0 }
 0x439   :  { %v745_v6 = vpop.permute.xlu0 %744  ;;  %596 = vadd.xlane.f32.xlu2 %v595_v5 }
 0x43a   :  { %5988 = vmatpush.xpose.msk.msrb.mxu0 %vm399_vm8, %v745_v6  ;;  %v398_v6 = vld [vmem:[%s6885_s19 + $0x18] sm:$0xff]  ;;  %s8891_s19 = sld [smem:[#allocation25_spill]] }
 0x441   :  { %v795_v7 = vpop.permute.xlu0 %794 }
 0x442   :  { %815 = vmatpush.msrb.mxu3 %v795_v7 }
 0x444   :  { %v743_v21 = vpop.permute.xlu1 %742 }
 0x449   :  { %v908_v8 = vpop.permute.xlu0 %907 }
 0x44a   :  { %5996 = vmatpush.xpose.msk.msra.mxu3 %vm399_vm8, %v908_v8 }
 0x44c   :  { %v906_v39 = vpop.permute.xlu1 %905 }
 0x485   :  { %v626_v11 = vpop.f32.mrf.mxu3 }
 0x486   :  { %5982 = vmatmul.msk.f32.vlgmr.msrb.gmra.mxu1 %vm399_vm8, %v626_v11 }
 0x48d   :  { %v739_v13 = vpop.f32.mrf.mxu3 }
 0x48e   :  { %v770_v15 = vmul.f32 0.17677669, %v739_v13 }
 0x490   :  { %v772_v16 = vsel %vm399_vm8, %v770_v15, -inf }
 0x491   :  { %773 = vmax.xlane.f32.xlu2 %v772_v16 }
 0x4a9   :  { %877 = vrot.lane.b32.xlu2 %v7087_v4, %s6825_s21 }
 0x4ac   :  { %v597_v17 = vpop.xlane.xlu2 %596 }
 0x4ad   :  { %6279 = vrcp.f32 %v597_v17  ;;  %v519_v18 = vpop.f32.mrf.mxu0 }
 0x4ae   :  { %5985 = vmatmul.msk.f32.gmra.mxu2 %vm399_vm8, %v519_v18 }
 0x4af   :  { %v7166_v31 = vpop.f32.mrf.mxu2 }
 0x4b3   :  { %v6280_v19 = vpop.eup %6279 }
 0x4b4   :  { %v601_v20 = vmul.f32 %v6280_v19, %v6278_v3 }
 0x4b6   :  { %5981 = vmatmul.msk.f32.vlgmr.msra.gmra.mxu0 %vm399_vm8, %v601_v20 }
 0x4be   :  { %5989 = vmatmul.msk.f32.vlgmr.msrb.gmra.mxu0 %vm399_vm8, %v743_v21 }
 0x503   :  { %v679_v16 = vpop.f32.mrf.mxu1 }
 0x504   :  { %v774_v22 = vpop.xlane.xlu2 %773  ;;  %v709_v18 = vadd.f32 %v7166_v31, %v679_v16 }
 0x505   :  { %v778_v23 = vsub.f32 %v770_v15, %v774_v22  ;;  %v6248_v22 = vld [vmem:[%s8886_s25] ss:$0 sm:$0xff] }
 0x507   :  { %v780_v24 = vmul.f32 1.442695, %v778_v23 }
 0x509   :  { %6281 = vpow2.f32 %v780_v24 }
 0x50c   :  { %v878_v25 = vpop.permute.xlu2 %877 }
 0x50d   :  { %5995 = vmatmul.msk.f32.vlgmr.msra.gmra.mxu2 %vm399_vm8, %v878_v25 }
 0x50f   :  { %v6282_v4 = vpop.eup %6281 }
 0x510   :  { %v784_v26 = vsel %vm399_vm8, %v6282_v4, 0.0 }
 0x511   :  { %785 = vadd.xlane.f32.xlu2 %v784_v26 }
 0x531   :  { %v7168_v33 = vpop.f32.mrf.mxu2 }
 0x533   :  { %v653_v27 = vpop.f32.mrf.mxu0 }
 0x534   :  { %5983 = vmatmul.msk.f32.gmra.mxu1 %vm399_vm8, %v653_v27 }
 0x53b   :  { %v767_v28 = vpop.f32.mrf.mxu0 }
 0x53c   :  { %v771_v29 = vmul.f32 0.17677669, %v767_v28 }
 0x53e   :  { %v775_v30 = vsel %vm399_vm8, %v771_v29, -inf }
 0x53f   :  { %776 = vmax.xlane.f32.xlu0 %v775_v30 }
 0x584   :  { %v786_v32 = vpop.xlane.xlu2 %785 }
 0x585   :  { %6283 = vrcp.f32 %v786_v32 }
 0x58b   :  { %v6284_v34 = vpop.eup %6283 }
 0x58c   :  { %v792_v35 = vmul.f32 %v6284_v34, %v6282_v4 }
 0x58e   :  { %5990 = vmatmul.msk.f32.vlgmr.msrb.gmra.mxu3 %vm399_vm8, %v792_v35 }
 0x58f   :  { %1030 = vmatpush.msrb.mxu3 %v398_v6  ;;  %v7222_v6 = vld [vmem:[%s8891_s19] ss:$0 sm:$0xff] }
 0x590   :  { %v902_v36 = vpop.f32.mrf.mxu2 }
 0x591   :  { %v933_v37 = vmul.f32 0.17677669, %v902_v36 }
 0x593   :  { %v935_v38 = vsel %vm399_vm8, %v933_v37, -inf }
 0x594   :  { %936 = vmax.xlane.f32.xlu1 %v935_v38 }
 0x596   :  { %5997 = vmatmul.msk.f32.vlgmr.msra.gmra.mxu3 %vm399_vm8, %v906_v39  ;;  %v1107_v39 = vld [vmem:[%s8887_s29 + $0x18] sm:$0xff] }
 0x5ad   :  { %957 = vrot.lane.b32.xlu1 %v7102_v12, %s6825_s21 }
 0x5b1   :  { %v682_v17 = vpop.f32.mrf.mxu1 }
 0x5b2   :  { %v777_v40 = vpop.xlane.xlu0 %776  ;;  %v712_v31 = vadd.f32 %v7168_v33, %v682_v17  ;;  %v1105_v33 = vld [vmem:[%s8887_s29 + $0x8] sm:$0xff] }
 0x5b3   :  { %v779_v41 = vsub.f32 %v771_v29, %v777_v40  ;;  %v1144_v40 = vld [vmem:[%s8888_s3 + $0x18] sm:$0xff] }
 0x5b4   :  { %1161 = vmatpush.msrb.mxu1 %v1144_v40 }
 0x5b5   :  { %v782_v42 = vmul.f32 1.442695, %v779_v41  ;;  %v1106_v41 = vld [vmem:[%s8887_s29 + $0x10] sm:$0xff] }
 0x5b7   :  { %6285 = vpow2.f32 %v782_v42  ;;  %v1143_v42 = vld [vmem:[%s8888_s3 + $0x10] sm:$0xff] }
 0x5b8   :  { %1162 = vmatpush.msrb.mxu1 %v1143_v42 }
 0x5bd   :  { %v6286_v43 = vpop.eup %6285 }
 0x5be   :  { %v787_v44 = vsel %vm399_vm8, %v6286_v43, 0.0 }
 0x5bf   :  { %788 = vadd.xlane.f32.xlu2 %v787_v44  ;;  %v1104_v44 = vld [vmem:[%s8887_s29] sm:$0xff] }
 0x607   :  { %v937_v46 = vpop.xlane.xlu1 %936 }
 0x608   :  { %v941_v47 = vsub.f32 %v933_v37, %v937_v46 }
 0x60a   :  { %v943_v48 = vmul.f32 1.442695, %v941_v47 }
 0x60c   :  { %6287 = vpow2.f32 %v943_v48 }
 0x611   :  { %v817_v49 = vpop.f32.mrf.mxu3 }
 0x612   :  { %v6288_v50 = vpop.eup %6287  ;;  %5992 = vmatmul.msk.f32.vlgmr.msra.gmra.mxu1 %vm399_vm8, %v817_v49 }
 0x613   :  { %v947_v12 = vsel %vm399_vm8, %v6288_v50, 0.0 }
 0x614   :  { %948 = vadd.xlane.f32.xlu2 %v947_v12 }
 0x619   :  { %v930_v51 = vpop.f32.mrf.mxu3 }
 0x61a   :  { %v934_v52 = vmul.f32 0.17677669, %v930_v51 }
 0x61c   :  { %v938_v53 = vsel %vm399_vm8, %v934_v52, -inf }
 0x61d   :  { %939 = vmax.xlane.f32.xlu0 %v938_v53  ;;  %v6249_v53 = vld [vmem:[%s8889_s8] ss:$0 sm:$0xff] }
 0x61f   :  { %v958_v60 = vpop.permute.xlu1 %957 }
 0x62c   :  { %820 = vrot.lane.b32.xlu2 %v7107_v14, %s6824_s17 }
 0x632   :  { %v789_v54 = vpop.xlane.xlu2 %788 }
 0x633   :  { %6289 = vrcp.f32 %v789_v54 }
 0x639   :  { %v6290_v56 = vpop.eup %6289 }
 0x63a   :  { %v793_v57 = vmul.f32 %v6290_v56, %v6286_v43  ;;  %v1142_v43 = vld [vmem:[%s8888_s3 + $0x8] sm:$0xff] }
 0x63b   :  { %1163 = vmatpush.msrb.mxu1 %v1142_v43 }
 0x687   :  { %v949_v55 = vpop.xlane.xlu2 %948 }
 0x688   :  { %6291 = vrcp.f32 %v949_v55  ;;  %v6250_v55 = vld [vmem:[%s8890_s14] ss:$0 sm:$0xff] }
 0x68e   :  { %v6292_v63 = vpop.eup %6291 }
 0x68f   :  { %v821_v58 = vpop.permute.xlu2 %820  ;;  %v955_v2 = vmul.f32 %v6292_v63, %v6288_v50 }
 0x690   :  { %v940_v59 = vpop.xlane.xlu0 %939  ;;  %841 = vmatpush.msra.mxu0 %v821_v58 }
 0x691   :  { %v942_v61 = vsub.f32 %v934_v52, %v940_v59  ;;  %5991 = vmatmul.msk.f32.vlgmr.msra.gmra.mxu0 %vm399_vm8, %v793_v57 }
 0x692   :  { %978 = vmatpush.msrb.mxu0 %v958_v60 }
 0x693   :  { %v945_v62 = vmul.f32 1.442695, %v942_v61 }
 0x694   :  { %1130 = vmatpush.msra.mxu0 %v1107_v39 }
 0x695   :  { %6293 = vpow2.f32 %v945_v62 }
 0x696   :  { %1131 = vmatpush.msra.mxu0 %v1106_v41 }
 0x698   :  { %1132 = vmatpush.msra.mxu0 %v1105_v33 }
 0x699   :  { %5998 = vmatmul.msk.f32.vlgmr.msrb.gmra.mxu0 %vm399_vm8, %v955_v2 }
 0x69a   :  { %1133 = vmatpush.msra.mxu0 %v1104_v44 }
 0x69b   :  { %v6294_v3 = vpop.eup %6293 }
 0x69c   :  { %v950_v5 = vsel %vm399_vm8, %v6294_v3, 0.0 }
 0x69d   :  { %951 = vadd.xlane.f32.xlu0 %v950_v5 }
 0x6b1   :  { %983 = vrot.lane.b32.xlu0 %v7107_v14, %s6825_s21  ;;  %v869_v14 = vpop.f32.mrf.mxu1 }
 0x6b2   :  { %v875_v19 = vadd.f32 %v869_v14, %v709_v18 }
 0x70e   :  { %v843_v7 = vpop.f32.mrf.mxu0 }
 0x70f   :  { %5993 = vmatmul.msk.f32.gmra.mxu1 %vm399_vm8, %v843_v7  ;;  %v6252_v7 = vld [vmem:[%s8892_s4] ss:$0 sm:$0xff] }
 0x710   :  { %v952_v9 = vpop.xlane.xlu0 %951 }
 0x711   :  { %6295 = vrcp.f32 %v952_v9 }
 0x716   :  { %v980_v8 = vpop.f32.mrf.mxu0 }
 0x717   :  { %6000 = vmatmul.msk.f32.vlgmr.msrb.gmra.mxu3 %vm399_vm8, %v980_v8  ;;  %v6296_v11 = vpop.eup %6295 }
 0x718   :  { %v956_v13 = vmul.f32 %v6296_v11, %v6294_v3 }
 0x723   :  { %v984_v15 = vpop.permute.xlu0 %983 }
 0x724   :  { %1004 = vmatpush.msrb.mxu2 %v984_v15  ;;  %v1242_v15 = vlaneseq }
 0x725   :  { %5999 = vmatmul.msk.f32.vlgmr.msrb.gmra.mxu2 %vm399_vm8, %v956_v13 }
 0x79a   :  { %v1032_v20 = vpop.f32.mrf.mxu3 }
 0x79b   :  { %v1038_v21 = vadd.f32 %v1032_v20, %v875_v19  ;;  %v1246_v19 = vshrl.u32 %v1242_v15, 7 }
 0x79d   :  { %v1040_v23 = vadd.f32 %v1038_v21, %v7036_v0  ;;  %v872_v0 = vpop.f32.mrf.mxu1  ;;  %6240 = vset.pattern.permute.xlu0 %v1246_v19  ;;  %6242 = vset.pattern.permute.xlu1 %v1246_v19 }
 0x79e   :  { %v876_v32 = vadd.f32 %v872_v0, %v712_v31  ;;  %6241 = vset.pattern.permute.xlu2 %v1246_v19 }
 0x79f   :  { %v1046_v24 = vadd.f32 %v6248_v22, %v1040_v23 }
 0x7a1   :  { %v1050_v25 = vsel %vm234_vm0, %v1046_v24, 0.0 }
 0x7a2   :  { %1051 = vadd.xlane.f32.xlu2 %v1050_v25 }
 0x7a8   :  { %v1006_v4 = vpop.f32.mrf.mxu2 }
 0x7a9   :  { %6001 = vmatmul.msk.f32.gmra.mxu3 %vm399_vm8, %v1006_v4 }
 0x815   :  { %v1052_v26 = vpop.xlane.xlu2 %1051 }
 0x816   :  { %v1056_v27 = vmul.f32 %v1052_v26, %v7044_v10 }
 0x818   :  { %v1058_v28 = vsub.f32 %v1046_v24, %v1056_v27 }
 0x81a   :  { %v1060_v29 = vmul.f32 %v1058_v28, %v1058_v28 }
 0x81c   :  { %v1062_v30 = vsel %vm234_vm0, %v1060_v29, 0.0 }
 0x81d   :  { %1063 = vadd.xlane.f32.xlu1 %v1062_v30 }
 0x82c   :  { %v1035_v34 = vpop.f32.mrf.mxu3 }
 0x82d   :  { %v1039_v35 = vadd.f32 %v1035_v34, %v876_v32 }
 0x82f   :  { %v1041_v36 = vadd.f32 %v1039_v35, %v7038_v1  ;;  %v1141_v1 = vld [vmem:[%s8888_s3] sm:$0xff] }
 0x830   :  { %1164 = vmatpush.msrb.mxu1 %v1141_v1 }
 0x831   :  { %v1047_v37 = vadd.f32 %v6248_v22, %v1041_v36 }
 0x833   :  { %v1053_v38 = vsel %vm234_vm0, %v1047_v37, 0.0 }
 0x834   :  { %1054 = vadd.xlane.f32.xlu0 %v1053_v38 }
 0x890   :  { %v1064_v45 = vpop.xlane.xlu1 %1063 }
 0x891   :  { %v1068_v46 = vmul.f32 %v1064_v45, %v7044_v10 }
 0x893   :  { %v1070_v47 = vadd.f32 1e-05, %v1068_v46 }
 0x895   :  { %6297 = vrsqrt.f32 %v1070_v47  ;;  %vm1078_vm10 = vweird.f32 %v1070_v47 }
 0x89b   :  { %v6298_v48 = vpop.eup %6297 }
 0x89c   :  { %v1073_v49 = vmul.f32 %v6298_v48, %v1070_v47  ;;  %vm1079_vm9 = vweird.f32 %v6298_v48 }
 0x89d   :  { %vm1080_vm11 = vmor %vm1078_vm10, %vm1079_vm9  ;;  %vm1504_vm9 = vcmask 130048  }
 0x89e   :  { %v1074_v50 = vmul.f32 %v6298_v48, %v1073_v49 }
 0x8a0   :  { %v1075_v12 = vmul.f32 0.5, %v1074_v50 }
 0x8a2   :  { %v1076_v51 = vsub.f32 1.5, %v1075_v12 }
 0x8a4   :  { %v1077_v52 = vmul.f32 %v6298_v48, %v1076_v51 }
 0x8a6   :  { %v1081_v54 = vsel %vm1080_vm11, %v6298_v48, %v1077_v52 }
 0x8a7   :  { %v1092_v56 = vmul.f32 %v1081_v54, %v1058_v28  ;;  %v1055_v57 = vpop.xlane.xlu0 %1054 }
 0x8a8   :  { %v1057_v58 = vmul.f32 %v1055_v57, %v7044_v10 }
 0x8a9   :  { %v1097_v59 = vmul.f32 %v6249_v53, %v1092_v56 }
 0x8aa   :  { %v1059_v60 = vsub.f32 %v1047_v37, %v1057_v58 }
 0x8ab   :  { %v7213_v61 = vadd.f32 %v6250_v55, %v1097_v59 }
 0x8ac   :  { %v1061_v62 = vmul.f32 %v1059_v60, %v1059_v60 }
 0x8ad   :  { %6002 = vmatmul.msk.f32.vlgmr.msra.gmra.mxu0 %vm234_vm0, %v7213_v61  ;;  %6004 = vmatmul.msk.f32.vlgmr.msrb.gmra.mxu1 %vm234_vm0, %v7213_v61 }
 0x8ae   :  { %v1065_v63 = vsel %vm234_vm0, %v1061_v62, 0.0 }
 0x8af   :  { %1066 = vadd.xlane.f32.xlu2 %v1065_v63 }
 0x922   :  { %v1067_v2 = vpop.xlane.xlu2 %1066 }
 0x923   :  { %v1069_v3 = vmul.f32 %v1067_v2, %v7044_v10 }
 0x925   :  { %v1071_v5 = vadd.f32 1e-05, %v1069_v3 }
 0x927   :  { %6299 = vrsqrt.f32 %v1071_v5  ;;  %vm1088_vm13 = vweird.f32 %v1071_v5 }
 0x92a   :  { %v1135_v8 = vpop.f32.mrf.mxu0  ;;  %v1166_v9 = vpop.f32.mrf.mxu1 }
 0x92b   :  { %v1136_v11 = vadd.f32 %v7222_v6, %v1135_v8  ;;  %v1167_v13 = vadd.f32 %v6252_v7, %v1166_v9 }
 0x92d   :  { %v6300_v16 = vpop.eup %6299  ;;  %v1194_v17 = vsub.f32 0.0, %v1136_v11  ;;  %v1172_v14 = vsel %vm399_vm8, %v1167_v13, -inf }
 0x92e   :  { %v1083_v18 = vmul.f32 %v6300_v16, %v1071_v5  ;;  %1173 = vmax.xlane.f32.xlu1 %v1172_v14  ;;  %vm1089_vm12 = vweird.f32 %v6300_v16 }
 0x92f   :  { %v1196_v20 = vmul.f32 1.442695, %v1194_v17  ;;  %vm1090_vm14 = vmor %vm1088_vm13, %vm1089_vm12 }
 0x930   :  { %v1084_v21 = vmul.f32 %v6300_v16, %v1083_v18 }
 0x931   :  { %6301 = vpow2.f32 %v1196_v20 }
 0x932   :  { %v1085_v22 = vmul.f32 0.5, %v1084_v21 }
 0x934   :  { %v1086_v23 = vsub.f32 1.5, %v1085_v22 }
 0x936   :  { %v1087_v24 = vmul.f32 %v6300_v16, %v1086_v23 }
 0x937   :  { %v6302_v25 = vpop.eup %6301 }
 0x938   :  { %v1091_v4 = vsel %vm1090_vm14, %v6300_v16, %v1087_v24  ;;  %v1200_v26 = vadd.f32 1.0, %v6302_v25 }
 0x939   :  { %v1093_v27 = vmul.f32 %v1091_v4, %v1059_v60 }
 0x93a   :  { %6303 = vrcp.f32 %v1200_v26  ;;  %v1213_v32 = vand.u32 2147483648, %v1200_v26  ;;  %v1211_v35 = vand.u32 2147483647, %v1200_v26  ;;  %vm1207_vm1 = vweird.f32 %v1200_v26 }
 0x93b   :  { %v1098_v28 = vmul.f32 %v6249_v53, %v1093_v27 }
 0x93c   :  { %v1214_v37 = vor.u32 1.1754944e-38, %v1213_v32  ;;  %vm1212_vm3 = vcmp.eq.f32.partialorder %v1211_v35, 8.507059e+37 }
 0x93d   :  { %v7228_v29 = vadd.f32 %v6250_v55, %v1098_v28  ;;  %v1501_v28 = vld [vmem:[%s8894_s2 + $0x8] sm:$0xff] }
 0x93e   :  { %1543 = vmatpush.msra.mxu2 %v1501_v28  ;;  %v1635_v28 = vld [vmem:[%s8895_s10] sm:$0xff] }
 0x93f   :  { %8893 = vst [vmem:[#allocation34_spill] sm:$0xff] %v7228_v29  ;;  %6003 = vmatmul.msk.f32.gmra.mxu0 %vm234_vm0, %v7228_v29  ;;  %6005 = vmatmul.msk.f32.gmra.mxu1 %vm234_vm0, %v7228_v29 }
 0x940   :  { %v6304_v30 = vpop.eup %6303 }
 0x941   :  { %v1203_v0 = vmul.f32 %v6304_v30, %v1200_v26  ;;  %vm1208_vm15 = vweird.f32 %v6304_v30 }
 0x942   :  { %vm1209_vm2 = vmor %vm1207_vm1, %vm1208_vm15 }
 0x943   :  { %v1204_v31 = vsub.f32 1.0, %v1203_v0 }
 0x945   :  { %v1205_v34 = vmul.f32 %v6304_v30, %v1204_v31 }
 0x947   :  { %v1206_v36 = vadd.f32 %v6304_v30, %v1205_v34 }
 0x949   :  { %v1210_v38 = vsel %vm1209_vm2, %v6304_v30, %v1206_v36 }
 0x94a   :  { %v1215_v39 = vsel %vm1212_vm3, %v1214_v37, %v1210_v38 }
 0x94b   :  { %v1232_v40 = vmul.f32 16.0, %v1215_v39 }
 0x94d   :  { %v1234_v41 = vfloor.f32 %v1232_v40 }
 0x94f   :  { %v1236_v42 = vmax.f32 %v1234_v41, 0.0 }
 0x951   :  { %v1238_v33 = vmin.f32 %v1236_v42, 15.0 }
 0x953   :  { %v7234_v43 = vcvt.f32.s32 %v1238_v33  ;;  %v1500_v33 = vld [vmem:[%s8894_s2] sm:$0xff] }
 0x954   :  { %1544 = vmatpush.msra.mxu2 %v1500_v33 }
 0x955   :  { %v1244_v44 = vperm.slane %v7234_v43, 0  ;;  %v1251_v51 = vperm.slane %v7234_v43, 1  ;;  %v1258_v21 = vperm.slane %v7234_v43, 2  ;;  %v1265_v27 = vperm.slane %v7234_v43, 3 }
 0x956   :  { %v1272_v32 = vperm.slane %v7234_v43, 4  ;;  %v1279_v36 = vperm.slane %v7234_v43, 5  ;;  %v1286_v39 = vperm.slane %v7234_v43, 6  ;;  %v1293_v42 = vperm.slane %v7234_v43, 7 }
 0x957   :  { %1249 = vperm.xlu0 %6240, %v1244_v44   ;;  %v7260_v44 = vand.u32 127, %v1242_v15 }
 0x9a1   :  { %v1174_v1 = vpop.xlane.xlu1 %1173 }
 0x9a2   :  { %v1178_v45 = vsub.f32 %v1167_v13, %v1174_v1 }
 0x9a4   :  { %v1180_v46 = vmul.f32 1.442695, %v1178_v45 }
 0x9a6   :  { %6305 = vpow2.f32 %v1180_v46 }
 0x9ac   :  { %v6306_v47 = vpop.eup %6305 }
 0x9ad   :  { %v1184_v48 = vsel %vm399_vm8, %v6306_v47, 0.0 }
 0x9ae   :  { %1185 = vadd.xlane.f32.xlu2 %v1184_v48 }
 0x9bc   :  { %v1169_v49 = vpop.f32.mrf.mxu1  ;;  %v1138_v52 = vpop.f32.mrf.mxu0 }
 0x9bd   :  { %v1170_v50 = vadd.f32 %v6252_v7, %v1169_v49  ;;  %v1139_v53 = vadd.f32 %v7222_v6, %v1138_v52 }
 0x9bf   :  { %v1175_v12 = vsel %vm399_vm8, %v1170_v50, -inf  ;;  %v1195_v54 = vsub.f32 0.0, %v1139_v53 }
 0x9c0   :  { %1176 = vmax.xlane.f32.xlu1 %v1175_v12 }
 0x9c1   :  { %v1198_v55 = vmul.f32 1.442695, %v1195_v54 }
 0x9c3   :  { %6307 = vpow2.f32 %v1198_v55 }
 0x9c9   :  { %v6308_v56 = vpop.eup %6307  ;;  %v1250_v1 = vpop.permute.xlu0 %1249 }
 0x9ca   :  { %v1201_v57 = vadd.f32 1.0, %v6308_v56  ;;  %vm1356_vm10 = vcmp.eq.s32.totalorder %v1250_v1, %v7260_v44 }
 0x9cc   :  { %6309 = vrcp.f32 %v1201_v57  ;;  %v1228_v16 = vand.u32 2147483648, %v1201_v57  ;;  %vm1222_vm5 = vweird.f32 %v1201_v57  ;;  %v1226_v14 = vand.u32 2147483647, %v1201_v57 }
 0x9ce   :  { %v1229_v19 = vor.u32 1.1754944e-38, %v1228_v16  ;;  %vm1227_vm7 = vcmp.eq.f32.partialorder %v1226_v14, 8.507059e+37 }
 0x9d2   :  { %v6310_v59 = vpop.eup %6309 }
 0x9d3   :  { %v1218_v62 = vmul.f32 %v6310_v59, %v1201_v57  ;;  %vm1223_vm4 = vweird.f32 %v6310_v59 }
 0x9d4   :  { %vm1224_vm6 = vmor %vm1222_vm5, %vm1223_vm4 }
 0x9d5   :  { %v1219_v5 = vsub.f32 1.0, %v1218_v62 }
 0x9d7   :  { %v1220_v7 = vmul.f32 %v6310_v59, %v1219_v5 }
 0x9d9   :  { %1256 = vperm.xlu1 %6242, %v1251_v51   ;;  %v1221_v13 = vadd.f32 %v6310_v59, %v1220_v7 }
 0x9db   :  { %v1225_v18 = vsel %vm1224_vm6, %v6310_v59, %v1221_v13 }
 0x9dc   :  { %v1230_v22 = vsel %vm1227_vm7, %v1229_v19, %v1225_v18 }
 0x9dd   :  { %v1233_v24 = vmul.f32 16.0, %v1230_v22  ;;  %v1637_v22 = vld [vmem:[%s8895_s10 + $0x10] sm:$0xff] }
 0x9df   :  { %v1235_v4 = vfloor.f32 %v1233_v24  ;;  %v1636_v24 = vld [vmem:[%s8895_s10 + $0x8] sm:$0xff] }
 0x9e1   :  { %v1237_v30 = vmax.f32 %v1235_v4, 0.0 }
 0x9e3   :  { %v1239_v0 = vmin.f32 %v1237_v30, 15.0  ;;  %v1756_v30 = vld [vmem:[#allocation7] sm:$0xff] }
 0x9e5   :  { %v7249_v34 = vcvt.f32.s32 %v1239_v0  ;;  %v1503_v0 = vld [vmem:[%s8894_s2 + $0x18] sm:$0xff] }
 0x9e6   :  { %1608 = vmatpush.msra.mxu3 %v1503_v0 }
 0x9e7   :  { %v1300_v35 = vperm.slane %v7249_v34, 0  ;;  %v1307_v38 = vperm.slane %v7249_v34, 1  ;;  %v1321_v40 = vperm.slane %v7249_v34, 3  ;;  %v1314_v41 = vperm.slane %v7249_v34, 2 }
 0x9e8   :  { %v1328_v4 = vperm.slane %v7249_v34, 4 }
 0xa21   :  { %v1186_v58 = vpop.xlane.xlu2 %1185 }
 0xa22   :  { %6311 = vrcp.f32 %v1186_v58 }
 0xa28   :  { %v6312_v60 = vpop.eup %6311 }
 0xa29   :  { %v1192_v63 = vmul.f32 %v6312_v60, %v6306_v47 }
 0xa2b   :  { %v1386_v2 = vperm.slane %v1192_v63, 2  ;;  %v1372_v3 = vperm.slane %v1192_v63, 0  ;;  %v1393_v6 = vperm.slane %v1192_v63, 3  ;;  %v1379_v9 = vperm.slane %v1192_v63, 1 }
 0xa2c   :  { %v1400_v20 = vperm.slane %v1192_v63, 4  ;;  %v1407_v26 = vperm.slane %v1192_v63, 5  ;;  %v1414_v31 = vperm.slane %v1192_v63, 6  ;;  %v1421_v37 = vperm.slane %v1192_v63, 7 }
 0xa2d   :  { %1391 = vperm.xlu0 %6240, %v1386_v2   ;;  %1377 = vperm.xlu2 %6241, %v1372_v3  }
 0xa33   :  { %v1177_v8 = vpop.xlane.xlu1 %1176 }
 0xa34   :  { %v1179_v11 = vsub.f32 %v1170_v50, %v1177_v8 }
 0xa35   :  { %1398 = vperm.xlu0 %6240, %v1393_v6   ;;  %1384 = vperm.xlu2 %6241, %v1379_v9   ;;  %v1342_v6 = vperm.slane %v7249_v34, 6  ;;  %v1335_v9 = vperm.slane %v7249_v34, 5 }
 0xa36   :  { %v1182_v17 = vmul.f32 1.442695, %v1179_v11 }
 0xa38   :  { %6313 = vpow2.f32 %v1182_v17 }
 0xa3d   :  { %1405 = vperm.xlu0 %6240, %v1400_v20   ;;  %1263 = vperm.xlu2 %6241, %v1258_v21   ;;  %v1638_v20 = vld [vmem:[%s8895_s10 + $0x18] sm:$0xff]  ;;  %v1759_v21 = vld [vmem:[#allocation7 + $0x18] sm:$0xff] }
 0xa3e   :  { %v7242_v23 = vpop.eup %6313  ;;  %1703 = vmatpush.msrb.mxu0 %v1638_v20  ;;  %1776 = vmatpush.msra.mxu1 %v1759_v21 }
 0xa3f   :  { %v1187_v25 = vsel %vm399_vm8, %v7242_v23, 0.0 }
 0xa40   :  { %1188 = vadd.xlane.f32.xlu1 %v1187_v25  ;;  %v1757_v25 = vld [vmem:[#allocation7 + $0x8] sm:$0xff]  ;;  %1704 = vmatpush.msrb.mxu0 %v1637_v22 }
 0xa42   :  { %1705 = vmatpush.msrb.mxu0 %v1636_v24 }
 0xa44   :  { %1706 = vmatpush.msrb.mxu0 %v1635_v28 }
 0xa45   :  { %1412 = vperm.xlu0 %6240, %v1407_v26   ;;  %1270 = vperm.xlu2 %6241, %v1265_v27   ;;  %v1349_v27 = vperm.slane %v7249_v34, 7 }
 0xa4b   :  { %v1257_v47 = vpop.permute.xlu1 %1256 }
 0xa4c   :  { %vm1357_vm11 = vcmp.eq.s32.totalorder %v1257_v47, %v7260_v44 }
 0xa4d   :  { %1419 = vperm.xlu0 %6240, %v1414_v31   ;;  %1277 = vperm.xlu2 %6241, %v1272_v32   ;;  %v1502_v31 = vld [vmem:[%s8894_s2 + $0x10] sm:$0xff] }
 0xa4e   :  { %1609 = vmatpush.msra.mxu3 %v1502_v31 }
 0xa55   :  { %1305 = vperm.xlu0 %6240, %v1300_v35   ;;  %1284 = vperm.xlu2 %6241, %v1279_v36  }
 0xa59   :  { %1426 = vperm.xlu1 %6242, %v1421_v37  }
 0xa5d   :  { %1312 = vperm.xlu0 %6240, %v1307_v38   ;;  %1291 = vperm.xlu2 %6241, %v1286_v39  }
 0xa61   :  { %1326 = vperm.xlu1 %6242, %v1321_v40  }
 0xa65   :  { %1319 = vperm.xlu0 %6240, %v1314_v41   ;;  %1298 = vperm.xlu2 %6241, %v1293_v42  }
 0xa87   :  { %v1378_v45 = vpop.permute.xlu2 %1377 }
 0xa88   :  { %v1484_v46 = vsel %vm1356_vm10, %v1378_v45, 0.0 }
 0xa89   :  { %6006 = vmatmul.msk.f32.vlgmr.msra.gmra.mxu2 %vm1504_vm9, %v1484_v46 }
 0xa8f   :  { %v1385_v48 = vpop.permute.xlu2 %1384 }
 0xa90   :  { %v1485_v43 = vsel %vm1357_vm11, %v1385_v48, 0.0 }
 0xa91   :  { %6007 = vmatmul.msk.f32.gmra.mxu2 %vm1504_vm9, %v1485_v43 }
 0xa97   :  { %v1264_v49 = vpop.permute.xlu2 %1263 }
 0xa98   :  { %vm1358_vm12 = vcmp.eq.s32.totalorder %v1264_v49, %v7260_v44 }
 0xa9f   :  { %v1271_v15 = vpop.permute.xlu2 %1270  ;;  %v1392_v50 = vpop.permute.xlu0 %1391 }
 0xaa0   :  { %v1486_v12 = vsel %vm1358_vm12, %v1392_v50, 0.0  ;;  %vm1359_vm13 = vcmp.eq.s32.totalorder %v1271_v15, %v7260_v44 }
 0xaa1   :  { %6008 = vmatmul.msk.f32.gmra.mxu2 %vm1504_vm9, %v1486_v12 }
 0xaa7   :  { %v1399_v51 = vpop.permute.xlu0 %1398  ;;  %v1278_v52 = vpop.permute.xlu2 %1277 }
 0xaa8   :  { %v1487_v53 = vsel %vm1359_vm13, %v1399_v51, 0.0  ;;  %vm1360_vm14 = vcmp.eq.s32.totalorder %v1278_v52, %v7260_v44  ;;  %vm3670_vm13 = vcmask 1041409  }
 0xaa9   :  { %6009 = vmatmul.msk.f32.gmra.mxu2 %vm1504_vm9, %v1487_v53 }
 0xaaf   :  { %v1406_v54 = vpop.permute.xlu0 %1405  ;;  %v1285_v56 = vpop.permute.xlu2 %1284 }
 0xab0   :  { %v1488_v55 = vsel %vm1360_vm14, %v1406_v54, 0.0  ;;  %vm1361_vm15 = vcmp.eq.s32.totalorder %v1285_v56, %v7260_v44  ;;  %vm3672_vm14 = vcmask 1042434  }
 0xab1   :  { %6010 = vmatmul.msk.f32.gmra.mxu2 %vm1504_vm9, %v1488_v55 }
 0xab3   :  { %v1189_v57 = vpop.xlane.xlu1 %1188 }
 0xab4   :  { %6315 = vrcp.f32 %v1189_v57 }
 0xab7   :  { %v1413_v58 = vpop.permute.xlu0 %1412  ;;  %v1292_v63 = vpop.permute.xlu2 %1291 }
 0xab8   :  { %v1489_v59 = vsel %vm1361_vm15, %v1413_v58, 0.0  ;;  %vm1362_vm1 = vcmp.eq.s32.totalorder %v1292_v63, %v7260_v44  ;;  %v7325_v63 = vld [vmem:[#allocation5] ss:$0 sm:$0xff]  ;;  %vm3674_vm15 = vcmask 1043459  }
 0xab9   :  { %6011 = vmatmul.msk.f32.gmra.mxu2 %vm1504_vm9, %v1489_v59 }
 0xaba   :  { %v6316_v60 = vpop.eup %6315 }
 0xabb   :  { %v1193_v62 = vmul.f32 %v6316_v60, %v7242_v23  ;;  %v1758_v23 = vld [vmem:[#allocation7 + $0x10] sm:$0xff] }
 0xabc   :  { %1777 = vmatpush.msra.mxu1 %v1758_v23 }
 0xabd   :  { %v1456_v2 = vperm.slane %v1193_v62, 4  ;;  %v1449_v3 = vperm.slane %v1193_v62, 3  ;;  %v1428_v5 = vperm.slane %v1193_v62, 0  ;;  %v1435_v11 = vperm.slane %v1193_v62, 1 }
 0xabe   :  { %v1477_v14 = vperm.slane %v1193_v62, 7  ;;  %v1470_v18 = vperm.slane %v1193_v62, 6  ;;  %v1442_v19 = vperm.slane %v1193_v62, 2  ;;  %1778 = vmatpush.msra.mxu1 %v1757_v25  ;;  %v1463_v26 = vperm.slane %v1193_v62, 5 }
 0xabf   :  { %1461 = vperm.xlu1 %6242, %v1456_v2   ;;  %1454 = vperm.xlu0 %6240, %v1449_v3   ;;  %v1420_v7 = vpop.permute.xlu0 %1419  ;;  %v1299_v13 = vpop.permute.xlu2 %1298 }
 0xac0   :  { %1433 = vperm.xlu2 %6241, %v1428_v5   ;;  %v1490_v8 = vsel %vm1362_vm1, %v1420_v7, 0.0  ;;  %vm1363_vm2 = vcmp.eq.s32.totalorder %v1299_v13, %v7260_v44  ;;  %1779 = vmatpush.msra.mxu1 %v1756_v30  ;;  %vm3676_vm1 = vcmask 1044484  }
 0xac1   :  { %6012 = vmatmul.msk.f32.gmra.mxu2 %vm1504_vm9, %v1490_v8 }
 0xac7   :  { %1347 = vperm.xlu1 %6242, %v1342_v6   ;;  %1340 = vperm.xlu0 %6240, %v1335_v9   ;;  %v1306_v35 = vpop.permute.xlu0 %1305 }
 0xac8   :  { %1440 = vperm.xlu2 %6241, %v1435_v11   ;;  %vm1364_vm3 = vcmp.eq.s32.totalorder %v1306_v35, %v7260_v44 }
 0xacb   :  { %v1427_v16 = vpop.permute.xlu1 %1426 }
 0xacc   :  { %v1491_v17 = vsel %vm1363_vm2, %v1427_v16, 0.0  ;;  %vm3678_vm2 = vcmask 1045509  }
 0xacd   :  { %6013 = vmatmul.msk.f32.gmra.mxu2 %vm1504_vm9, %v1491_v17 }
 0xacf   :  { %1482 = vperm.xlu1 %6242, %v1477_v14   ;;  %1475 = vperm.xlu0 %6240, %v1470_v18   ;;  %v1313_v38 = vpop.permute.xlu0 %1312 }
 0xad0   :  { %1447 = vperm.xlu2 %6241, %v1442_v19   ;;  %vm1365_vm4 = vcmp.eq.s32.totalorder %v1313_v38, %v7260_v44 }
 0xad3   :  { %v1327_v46 = vpop.permute.xlu1 %1326 }
 0xad4   :  { %vm1367_vm6 = vcmp.eq.s32.totalorder %v1327_v46, %v7260_v44 }
 0xad7   :  { %2929 = vrot.lane.b32.xlu1 %v7228_v29, %s6823_s13  ;;  %v1320_v42 = vpop.permute.xlu0 %1319 }
 0xad8   :  { %1333 = vperm.xlu2 %6241, %v1328_v4   ;;  %vm1366_vm5 = vcmp.eq.s32.totalorder %v1320_v42, %v7260_v44 }
 0xae0   :  { %1468 = vperm.xlu2 %6241, %v1463_v26  }
 0xae8   :  { %1354 = vperm.xlu2 %6241, %v1349_v27  }
 0xaf0   :  { %2733 = vrot.lane.b32.xlu2 %v7213_v61, %s6823_s13 }
 0xb0c   :  { %v1546_v32 = vpop.f32.mrf.mxu2 }
 0xb0d   :  { %6022 = vmatmul.msk.f32.vlgmr.msrb.gmra.mxu0 %vm234_vm0, %v1546_v32  ;;  %6038 = vmatmul.msk.f32.vlgmr.msra.gmra.mxu1 %vm234_vm0, %v1546_v32 }
 0xb14   :  { %v1549_v36 = vpop.f32.mrf.mxu2 }
 0xb15   :  { %6023 = vmatmul.msk.f32.gmra.mxu0 %vm234_vm0, %v1549_v36  ;;  %6039 = vmatmul.msk.f32.gmra.mxu1 %vm234_vm0, %v1549_v36 }
 0xb1a   :  { %v1434_v34 = vpop.permute.xlu2 %1433 }
 0xb1b   :  { %v1492_v37 = vsel %vm1364_vm3, %v1434_v34, 0.0  ;;  %vm3682_vm3 = vcmask 1047559  }
 0xb1c   :  { %6014 = vmatmul.msk.f32.vlgmr.msra.gmra.mxu3 %vm1504_vm9, %v1492_v37 }
 0xb22   :  { %v1441_v39 = vpop.permute.xlu2 %1440 }
 0xb23   :  { %v1493_v40 = vsel %vm1365_vm4, %v1441_v39, 0.0  ;;  %vm3680_vm4 = vcmask 1046534  }
 0xb24   :  { %6015 = vmatmul.msk.f32.gmra.mxu3 %vm1504_vm9, %v1493_v40  ;;  %v1552_v41 = vpop.f32.mrf.mxu2 }
 0xb25   :  { %6024 = vmatmul.msk.f32.gmra.mxu0 %vm234_vm0, %v1552_v41  ;;  %6040 = vmatmul.msk.f32.gmra.mxu1 %vm234_vm0, %v1552_v41 }
 0xb2a   :  { %v1448_v33 = vpop.permute.xlu2 %1447 }
 0xb2b   :  { %v1494_v1 = vsel %vm1366_vm5, %v1448_v33, 0.0  ;;  %vm4587_vm5 = vcmask 195712  }
 0xb2c   :  { %6016 = vmatmul.msk.f32.gmra.mxu3 %vm1504_vm9, %v1494_v1  ;;  %v1555_v45 = vpop.f32.mrf.mxu2 }
 0xb2d   :  { %6025 = vmatmul.msk.f32.gmra.mxu0 %vm234_vm0, %v1555_v45  ;;  %6041 = vmatmul.msk.f32.gmra.mxu1 %vm234_vm0, %v1555_v45 }
 0xb31   :  { %v1455_v47 = vpop.permute.xlu0 %1454  ;;  %v1462_v15 = vpop.permute.xlu1 %1461 }
 0xb32   :  { %v1495_v48 = vsel %vm1367_vm6, %v1455_v47, 0.0  ;;  %v1334_v49 = vpop.permute.xlu2 %1333  ;;  %vm5571_vm6 = vcmask 261312  }
 0xb33   :  { %vm1368_vm7 = vcmp.eq.s32.totalorder %v1334_v49, %v7260_v44 }
 0xb34   :  { %6017 = vmatmul.msk.f32.gmra.mxu3 %vm1504_vm9, %v1495_v48  ;;  %v1558_v43 = vpop.f32.mrf.mxu2  ;;  %v1496_v50 = vsel %vm1368_vm7, %v1462_v15, 0.0 }
 0xb35   :  { %6026 = vmatmul.msk.f32.gmra.mxu0 %vm234_vm0, %v1558_v43  ;;  %6042 = vmatmul.msk.f32.gmra.mxu1 %vm234_vm0, %v1558_v43 }
 0xb39   :  { %v1341_v51 = vpop.permute.xlu0 %1340  ;;  %v1348_v55 = vpop.permute.xlu1 %1347 }
 0xb3a   :  { %v1469_v52 = vpop.permute.xlu2 %1468  ;;  %vm1369_vm10 = vcmp.eq.s32.totalorder %v1341_v51, %v7260_v44  ;;  %vm1370_vm11 = vcmp.eq.s32.totalorder %v1348_v55, %v7260_v44 }
 0xb3b   :  { %v1497_v53 = vsel %vm1369_vm10, %v1469_v52, 0.0 }
 0xb3c   :  { %6018 = vmatmul.msk.f32.gmra.mxu3 %vm1504_vm9, %v1496_v50  ;;  %v1561_v12 = vpop.f32.mrf.mxu2 }
 0xb3d   :  { %6027 = vmatmul.msk.f32.gmra.mxu0 %vm234_vm0, %v1561_v12  ;;  %6043 = vmatmul.msk.f32.gmra.mxu1 %vm234_vm0, %v1561_v12 }
 0xb41   :  { %v1476_v56 = vpop.permute.xlu0 %1475  ;;  %v1483_v59 = vpop.permute.xlu1 %1482 }
 0xb42   :  { %v1498_v57 = vsel %vm1370_vm11, %v1476_v56, 0.0  ;;  %v1355_v58 = vpop.permute.xlu2 %1354 }
 0xb43   :  { %vm1371_vm12 = vcmp.eq.s32.totalorder %v1355_v58, %v7260_v44 }
 0xb44   :  { %6019 = vmatmul.msk.f32.gmra.mxu3 %vm1504_vm9, %v1497_v53  ;;  %v1564_v54 = vpop.f32.mrf.mxu2  ;;  %v1499_v62 = vsel %vm1371_vm12, %v1483_v59, 0.0 }
 0xb45   :  { %6028 = vmatmul.msk.f32.gmra.mxu0 %vm234_vm0, %v1564_v54  ;;  %6044 = vmatmul.msk.f32.gmra.mxu1 %vm234_vm0, %v1564_v54 }
 0xb49   :  { %v7443_v42 = vpop.permute.xlu1 %2929 }
 0xb4a   :  { %v7415_v28 = vpop.permute.xlu2 %2733 }
 0xb4c   :  { %6020 = vmatmul.msk.f32.gmra.mxu3 %vm1504_vm9, %v1498_v57 }
 0xb50   :  { %v1567_v60 = vpop.f32.mrf.mxu2 }
 0xb51   :  { %6029 = vmatmul.msk.f32.gmra.mxu0 %vm234_vm0, %v1567_v60  ;;  %6045 = vmatmul.msk.f32.gmra.mxu1 %vm234_vm0, %v1567_v60 }
 0xb54   :  { %6021 = vmatmul.msk.f32.gmra.mxu3 %vm1504_vm9, %v1499_v62  ;;  %vm3541_vm9 = vcmask 130112  }
 0xb8a   :  { %v1708_v2 = vpop.f32.mrf.mxu0 }
 0xb8b   :  { %v7328_v3 = vadd.f32 %v7325_v63, %v1708_v2 }
 0xb8d   :  { %8896 = vst [vmem:[#allocation35_spill] sm:$0xff] %v7328_v3  ;;  %2735 = vrot.lane.b32.xlu0 %v7328_v3, %s6823_s13  ;;  %6054 = vmatpush.xpose.msk.msrb.mxu2 %vm399_vm8, %v7328_v3 }
 0xb90   :  { %6055 = vmatmul.msk.f32.vlgmr.msrb.gmra.mxu2 %vm399_vm8, %v7213_v61 }
 0xb92   :  { %v1711_v44 = vpop.f32.mrf.mxu0 }
 0xb93   :  { %v7337_v5 = vadd.f32 %v7325_v63, %v1711_v44 }
 0xb95   :  { %2761 = vrot.lane.b32.xlu1 %v7337_v5, %s6823_s13  ;;  %6056 = vmatpush.xpose.msk.msra.mxu2 %vm399_vm8, %v7337_v5 }
 0xb98   :  { %6057 = vmatmul.msk.f32.vlgmr.msra.gmra.mxu2 %vm399_vm8, %v7213_v61 }
 0xb9f   :  { %v1611_v7 = vpop.f32.mrf.mxu3 }
 0xba0   :  { %6030 = vmatmul.msk.f32.gmra.mxu0 %vm234_vm0, %v1611_v7  ;;  %6046 = vmatmul.msk.f32.gmra.mxu1 %vm234_vm0, %v1611_v7 }
 0xba2   :  { %v1714_v8 = vpop.f32.mrf.mxu0 }
 0xba3   :  { %v7348_v6 = vadd.f32 %v7325_v63, %v1714_v8 }
 0xba5   :  { %2785 = vrot.lane.b32.xlu0 %v7348_v6, %s6823_s13  ;;  %6058 = vmatpush.xpose.msk.msrb.mxu3 %vm399_vm8, %v7348_v6 }
 0xba7   :  { %v1614_v9 = vpop.f32.mrf.mxu3 }
 0xba8   :  { %6031 = vmatmul.msk.f32.gmra.mxu0 %vm234_vm0, %v1614_v9  ;;  %6047 = vmatmul.msk.f32.gmra.mxu1 %vm234_vm0, %v1614_v9 }
 0xba9   :  { %6059 = vmatmul.msk.f32.vlgmr.msrb.gmra.mxu3 %vm399_vm8, %v7213_v61 }
 0xbaa   :  { %v1717_v11 = vpop.f32.mrf.mxu0 }
 0xbab   :  { %v7359_v13 = vadd.f32 %v7325_v63, %v1717_v11 }
 0xbad   :  { %2809 = vrot.lane.b32.xlu2 %v7359_v13, %s6823_s13  ;;  %6060 = vmatpush.xpose.msk.msrb.mxu2 %vm399_vm8, %v7359_v13 }
 0xbaf   :  { %v1617_v16 = vpop.f32.mrf.mxu3 }
 0xbb0   :  { %6032 = vmatmul.msk.f32.gmra.mxu0 %vm234_vm0, %v1617_v16  ;;  %6048 = vmatmul.msk.f32.gmra.mxu1 %vm234_vm0, %v1617_v16 }
 0xbb1   :  { %6061 = vmatmul.msk.f32.vlgmr.msrb.gmra.mxu2 %vm399_vm8, %v7213_v61 }
 0xbb2   :  { %v1720_v17 = vpop.f32.mrf.mxu0 }
 0xbb3   :  { %v7370_v14 = vadd.f32 %v7325_v63, %v1720_v17 }
 0xbb5   :  { %8897 = vst [vmem:[#allocation36_spill] sm:$0xff] %v7370_v14  ;;  %2833 = vrot.lane.b32.xlu2 %v7370_v14, %s6823_s13  ;;  %6062 = vmatpush.xpose.msk.msra.mxu3 %vm399_vm8, %v7370_v14 }
 0xbb7   :  { %v1620_v18 = vpop.f32.mrf.mxu3 }
 0xbb8   :  { %6033 = vmatmul.msk.f32.gmra.mxu0 %vm234_vm0, %v1620_v18  ;;  %6049 = vmatmul.msk.f32.gmra.mxu1 %vm234_vm0, %v1620_v18 }
 0xbb9   :  { %6063 = vmatmul.msk.f32.vlgmr.msra.gmra.mxu3 %vm399_vm8, %v7213_v61 }
 0xbba   :  { %v1723_v19 = vpop.f32.mrf.mxu0 }
 0xbbb   :  { %v7381_v20 = vadd.f32 %v7325_v63, %v1723_v19 }
 0xbbd   :  { %8898 = vst [vmem:[#allocation37_spill] sm:$0xff] %v7381_v20  ;;  %2857 = vrot.lane.b32.xlu1 %v7381_v20, %s6823_s13  ;;  %6064 = vmatpush.xpose.msk.msra.mxu2 %vm399_vm8, %v7381_v20 }
 0xbbf   :  { %v1623_v21 = vpop.f32.mrf.mxu3 }
 0xbc0   :  { %6034 = vmatmul.msk.f32.gmra.mxu0 %vm234_vm0, %v1623_v21  ;;  %6050 = vmatmul.msk.f32.gmra.mxu1 %vm234_vm0, %v1623_v21  ;;  %v7520_v21 = vpop.f32.mrf.mxu1 }
 0xbc1   :  { %6065 = vmatmul.msk.f32.vlgmr.msra.gmra.mxu2 %vm399_vm8, %v7213_v61 }
 0xbc2   :  { %v1726_v22 = vpop.f32.mrf.mxu0 }
 0xbc3   :  { %v7392_v23 = vadd.f32 %v7325_v63, %v1726_v22 }
 0xbc5   :  { %2881 = vrot.lane.b32.xlu0 %v7392_v23, %s6823_s13  ;;  %6066 = vmatpush.xpose.msk.msrb.mxu3 %vm399_vm8, %v7392_v23 }
 0xbc7   :  { %v1626_v24 = vpop.f32.mrf.mxu3 }
 0xbc8   :  { %6035 = vmatmul.msk.f32.gmra.mxu0 %vm234_vm0, %v1626_v24  ;;  %6051 = vmatmul.msk.f32.gmra.mxu1 %vm234_vm0, %v1626_v24 }
 0xbc9   :  { %6067 = vmatmul.msk.f32.vlgmr.msrb.gmra.mxu3 %vm399_vm8, %v7213_v61 }
 0xbce   :  { %v1729_v25 = vpop.f32.mrf.mxu0 }
 0xbcf   :  { %v1629_v4 = vpop.f32.mrf.mxu3  ;;  %v7403_v26 = vadd.f32 %v7325_v63, %v1729_v25 }
 0xbd0   :  { %6036 = vmatmul.msk.f32.gmra.mxu0 %vm234_vm0, %v1629_v4  ;;  %6052 = vmatmul.msk.f32.gmra.mxu1 %vm234_vm0, %v1629_v4 }
 0xbd1   :  { %8899 = vst [vmem:[#allocation38_spill] sm:$0xff] %v7403_v26  ;;  %2905 = vrot.lane.b32.xlu1 %v7403_v26, %s6823_s13  ;;  %6068 = vmatpush.xpose.msk.msrb.mxu2 %vm399_vm8, %v7403_v26 }
 0xbd4   :  { %6069 = vmatmul.msk.f32.vlgmr.msrb.gmra.mxu2 %vm399_vm8, %v7213_v61 }
 0xbd7   :  { %v1632_v27 = vpop.f32.mrf.mxu3 }
 0xbd8   :  { %6037 = vmatmul.msk.f32.gmra.mxu0 %vm234_vm0, %v1632_v27  ;;  %6053 = vmatmul.msk.f32.gmra.mxu1 %vm234_vm0, %v1632_v27  ;;  %v7528_v27 = vpop.f32.mrf.mxu1 }
 0xbff   :  { %v2736_v57 = vpop.permute.xlu0 %2735 }
 0xc07   :  { %v2810_v30 = vpop.permute.xlu2 %2809  ;;  %v2762_v45 = vpop.permute.xlu1 %2761 }
 0xc08   :  { %6092 = vmatpush.xpose.msk.msra.mxu0 %vm399_vm8, %v2810_v30 }
 0xc0b   :  { %6093 = vmatmul.msk.f32.vlgmr.msra.gmra.mxu0 %vm399_vm8, %v7415_v28 }
 0xc0f   :  { %v2834_v0 = vpop.permute.xlu2 %2833 }
 0xc10   :  { %6094 = vmatpush.xpose.msk.msrb.mxu1 %vm399_vm8, %v2834_v0 }
 0xc13   :  { %v1855_v31 = vpop.f32.mrf.mxu2  ;;  %6095 = vmatmul.msk.f32.vlgmr.msrb.gmra.mxu1 %vm399_vm8, %v7415_v28 }
 0xc14   :  { %v7423_v32 = vmul.f32 0.17677669, %v1855_v31 }
 0xc16   :  { %v2221_v35 = vsel %vm399_vm8, %v7423_v32, -inf }
 0xc17   :  { %2222 = vmax.xlane.f32.xlu2 %v2221_v35  ;;  %v2786_v60 = vpop.permute.xlu0 %2785 }
 0xc1b   :  { %v1878_v36 = vpop.f32.mrf.mxu2 }
 0xc1c   :  { %v7427_v34 = vmul.f32 0.17677669, %v1878_v36 }
 0xc1d   :  { %v1732_v37 = vpop.f32.mrf.mxu0 }
 0xc1e   :  { %v7430_v38 = vadd.f32 %v7325_v63, %v1732_v37  ;;  %v2224_v39 = vsel %vm399_vm8, %v7427_v34, -inf }
 0xc1f   :  { %2225 = vmax.xlane.f32.xlu1 %v2224_v39 }
 0xc20   :  { %8900 = vst [vmem:[#allocation39_spill] sm:$0xff] %v7430_v38  ;;  %6070 = vmatpush.xpose.msk.msra.mxu3 %vm399_vm8, %v7430_v38 }
 0xc23   :  { %6071 = vmatmul.msk.f32.vlgmr.msra.gmra.mxu3 %vm399_vm8, %v7228_v29 }
 0xc25   :  { %v1735_v40 = vpop.f32.mrf.mxu0 }
 0xc26   :  { %v7439_v41 = vadd.f32 %v7325_v63, %v1735_v40 }
 0xc28   :  { %8901 = vst [vmem:[#allocation40_spill] sm:$0xff] %v7439_v41  ;;  %6072 = vmatpush.xpose.msk.msra.mxu2 %vm399_vm8, %v7439_v41 }
 0xc2b   :  { %6073 = vmatmul.msk.f32.vlgmr.msra.gmra.mxu2 %vm399_vm8, %v7228_v29 }
 0xc2d   :  { %v1738_v33 = vpop.f32.mrf.mxu0 }
 0xc2e   :  { %v7448_v1 = vadd.f32 %v7325_v63, %v1738_v33 }
 0xc2f   :  { %v2858_v15 = vpop.permute.xlu1 %2857 }
 0xc30   :  { %8902 = vst [vmem:[#allocation41_spill] sm:$0xff] %v7448_v1  ;;  %6074 = vmatpush.xpose.msk.msrb.mxu3 %vm399_vm8, %v7448_v1 }
 0xc33   :  { %6075 = vmatmul.msk.f32.vlgmr.msrb.gmra.mxu3 %vm399_vm8, %v7228_v29 }
 0xc34   :  { %v1924_v46 = vpop.f32.mrf.mxu2 }
 0xc35   :  { %v7454_v47 = vmul.f32 0.17677669, %v1924_v46  ;;  %v1741_v48 = vpop.f32.mrf.mxu0 }
 0xc36   :  { %v7457_v43 = vadd.f32 %v7325_v63, %v1741_v48 }
 0xc37   :  { %v2230_v49 = vsel %vm399_vm8, %v7454_v47, -inf  ;;  %v2882_v9 = vpop.permute.xlu0 %2881 }
 0xc38   :  { %8903 = vst [vmem:[#allocation42_spill] sm:$0xff] %v7457_v43  ;;  %2231 = vmax.xlane.f32.xlu2 %v2230_v49  ;;  %6076 = vmatpush.xpose.msk.msrb.mxu2 %vm399_vm8, %v7457_v43 }
 0xc3b   :  { %6077 = vmatmul.msk.f32.vlgmr.msrb.gmra.mxu2 %vm399_vm8, %v7228_v29 }
 0xc3d   :  { %v1744_v50 = vpop.f32.mrf.mxu0 }
 0xc3e   :  { %v7466_v12 = vadd.f32 %v7325_v63, %v1744_v50 }
 0xc40   :  { %8904 = vst [vmem:[#allocation43_spill] sm:$0xff] %v7466_v12  ;;  %6078 = vmatpush.xpose.msk.msra.mxu3 %vm399_vm8, %v7466_v12 }
 0xc43   :  { %6079 = vmatmul.msk.f32.vlgmr.msra.gmra.mxu3 %vm399_vm8, %v7228_v29  ;;  %v2906_v51 = vpop.permute.xlu1 %2905 }
 0xc44   :  { %v1970_v52 = vpop.f32.mrf.mxu2  ;;  %6100 = vmatpush.xpose.msk.msrb.mxu0 %vm399_vm8, %v2906_v51 }
 0xc45   :  { %v7473_v53 = vmul.f32 0.17677669, %v1970_v52  ;;  %v1747_v54 = vpop.f32.mrf.mxu0 }
 0xc46   :  { %v7476_v55 = vadd.f32 %v7325_v63, %v1747_v54 }
 0xc47   :  { %v2236_v56 = vsel %vm399_vm8, %v7473_v53, -inf  ;;  %6101 = vmatmul.msk.f32.vlgmr.msrb.gmra.mxu0 %vm399_vm8, %v7415_v28 }
 0xc48   :  { %8905 = vst [vmem:[#allocation44_spill] sm:$0xff] %v7476_v55  ;;  %2237 = vmax.xlane.f32.xlu0 %v2236_v56  ;;  %6080 = vmatpush.xpose.msk.msra.mxu2 %vm399_vm8, %v7476_v55 }
 0xc4b   :  { %6081 = vmatmul.msk.f32.vlgmr.msra.gmra.mxu2 %vm399_vm8, %v7228_v29 }
 0xc4d   :  { %v1750_v58 = vpop.f32.mrf.mxu0 }
 0xc4e   :  { %v7487_v59 = vadd.f32 %v7325_v63, %v1750_v58 }
 0xc50   :  { %8906 = vst [vmem:[#allocation45_spill] sm:$0xff] %v7487_v59  ;;  %6082 = vmatpush.xpose.msk.msrb.mxu3 %vm399_vm8, %v7487_v59 }
 0xc53   :  { %6083 = vmatmul.msk.f32.vlgmr.msrb.gmra.mxu3 %vm399_vm8, %v7228_v29 }
 0xc54   :  { %6086 = vmatpush.xpose.msk.msra.mxu3 %vm399_vm8, %v2736_v57 }
 0xc55   :  { %v1753_v62 = vpop.f32.mrf.mxu0 }
 0xc56   :  { %v7496_v2 = vadd.f32 %v7325_v63, %v1753_v62 }
 0xc57   :  { %v2016_v44 = vpop.f32.mrf.mxu2 }
 0xc58   :  { %6090 = vmatpush.xpose.msk.msrb.mxu3 %vm399_vm8, %v2786_v60  ;;  %8907 = vst [vmem:[#allocation46_spill] sm:$0xff] %v7496_v2  ;;  %v2212_v7 = vmul.f32 0.17677669, %v2016_v44  ;;  %6084 = vmatpush.xpose.msk.msrb.mxu2 %vm399_vm8, %v7496_v2 }
 0xc5a   :  { %v2242_v8 = vsel %vm399_vm8, %v2212_v7, -inf }
 0xc5b   :  { %6085 = vmatmul.msk.f32.vlgmr.msrb.gmra.mxu2 %vm399_vm8, %v7228_v29  ;;  %6087 = vmatmul.msk.f32.vlgmr.msra.gmra.mxu3 %vm399_vm8, %v7415_v28 }
 0xc5c   :  { %6088 = vmatpush.xpose.msk.msra.mxu2 %vm399_vm8, %v2762_v45  ;;  %6098 = vmatpush.xpose.msk.msra.mxu3 %vm399_vm8, %v2882_v9 }
 0xc5d   :  { %2243 = vmax.xlane.f32.xlu1 %v2242_v8 }
 0xc60   :  { %6096 = vmatpush.xpose.msk.msrb.mxu2 %vm399_vm8, %v2858_v15 }
 0xc63   :  { %6089 = vmatmul.msk.f32.vlgmr.msra.gmra.mxu2 %vm399_vm8, %v7415_v28  ;;  %6091 = vmatmul.msk.f32.vlgmr.msrb.gmra.mxu3 %vm399_vm8, %v7415_v28 }
 0xc6b   :  { %6097 = vmatmul.msk.f32.vlgmr.msrb.gmra.mxu2 %vm399_vm8, %v7415_v28  ;;  %6099 = vmatmul.msk.f32.vlgmr.msra.gmra.mxu3 %vm399_vm8, %v7415_v28  ;;  %v7530_v28 = vpop.f32.mrf.mxu1 }
 0xc8a   :  { %v2223_v63 = vpop.xlane.xlu2 %2222 }
 0xc8b   :  { %v2269_v11 = vsub.f32 %v7423_v32, %v2223_v63  ;;  %v7533_v32 = vpop.f32.mrf.mxu1 }
 0xc8c   :  { %8908 = vst [vmem:[#allocation47_spill] sm:$0xff] %v7533_v32 }
 0xc8d   :  { %v2285_v16 = vmul.f32 1.442695, %v2269_v11 }
 0xc8f   :  { %6317 = vpow2.f32 %v2285_v16 }
 0xc92   :  { %v2226_v17 = vpop.xlane.xlu1 %2225 }
 0xc93   :  { %v2270_v18 = vsub.f32 %v7427_v34, %v2226_v17  ;;  %v1901_v34 = vpop.f32.mrf.mxu3  ;;  %v7539_v37 = vpop.f32.mrf.mxu1 }
 0xc94   :  { %8909 = vst [vmem:[#allocation48_spill] sm:$0xff] %v7539_v37  ;;  %v7541_v39 = vmul.f32 0.17677669, %v1901_v34 }
 0xc95   :  { %v7518_v19 = vpop.eup %6317  ;;  %v2287_v22 = vmul.f32 1.442695, %v2270_v18 }
 0xc96   :  { %v2317_v24 = vsel %vm399_vm8, %v7518_v19, 0.0  ;;  %v2227_v46 = vsel %vm399_vm8, %v7541_v39, -inf }
 0xc97   :  { %6319 = vpow2.f32 %v2287_v22  ;;  %2318 = vadd.xlane.f32.xlu0 %v2317_v24 }
 0xc9b   :  { %v1947_v15 = vpop.f32.mrf.mxu3 }
 0xc9c   :  { %v7552_v50 = vmul.f32 0.17677669, %v1947_v15 }
 0xc9d   :  { %v7524_v25 = vpop.eup %6319 }
 0xc9e   :  { %v2320_v4 = vsel %vm399_vm8, %v7524_v25, 0.0 }
 0xc9f   :  { %2321 = vadd.xlane.f32.xlu2 %v2320_v4 }
 0xca3   :  { %v1993_v62 = vpop.f32.mrf.mxu3 }
 0xcab   :  { %v2232_v30 = vpop.xlane.xlu2 %2231 }
 0xcac   :  { %v2272_v0 = vsub.f32 %v7454_v47, %v2232_v30  ;;  %v7546_v47 = vpop.f32.mrf.mxu1 }
 0xcad   :  { %8910 = vst [vmem:[#allocation49_spill] sm:$0xff] %v7546_v47 }
 0xcae   :  { %v2291_v31 = vmul.f32 1.442695, %v2272_v0 }
 0xcb0   :  { %6321 = vpow2.f32 %v2291_v31 }
 0xcb4   :  { %v7554_v51 = vpop.f32.mrf.mxu1 }
 0xcb5   :  { %8911 = vst [vmem:[#allocation50_spill] sm:$0xff] %v7554_v51 }
 0xcb6   :  { %v7535_v35 = vpop.eup %6321 }
 0xcb7   :  { %v2326_v36 = vsel %vm399_vm8, %v7535_v35, 0.0 }
 0xcb8   :  { %2327 = vadd.xlane.f32.xlu0 %v2326_v36 }
 0xcbb   :  { %v2238_v40 = vpop.xlane.xlu0 %2237 }
 0xcbc   :  { %v2274_v33 = vsub.f32 %v7473_v53, %v2238_v40  ;;  %v2233_v53 = vsel %vm399_vm8, %v7552_v50, -inf  ;;  %v7560_v57 = vpop.f32.mrf.mxu1 }
 0xcbd   :  { %8912 = vst [vmem:[#allocation51_spill] sm:$0xff] %v7560_v57 }
 0xcbe   :  { %v2295_v45 = vmul.f32 1.442695, %v2274_v33 }
 0xcc0   :  { %6323 = vpow2.f32 %v2295_v45  ;;  %2228 = vmax.xlane.f32.xlu0 %v2227_v46 }
 0xcc4   :  { %v7568_v44 = vpop.f32.mrf.mxu1 }
 0xcc5   :  { %8913 = vst [vmem:[#allocation52_spill] sm:$0xff] %v7568_v44 }
 0xcc6   :  { %v7548_v48 = vpop.eup %6323 }
 0xcc7   :  { %v2332_v49 = vsel %vm399_vm8, %v7548_v48, 0.0 }
 0xcc8   :  { %2333 = vadd.xlane.f32.xlu1 %v2332_v49 }
 0xccc   :  { %v7574_v9 = vpop.f32.mrf.mxu1 }
 0xccd   :  { %8914 = vst [vmem:[#allocation53_spill] sm:$0xff] %v7574_v9 }
 0xcd0   :  { %v2244_v52 = vpop.xlane.xlu1 %2243  ;;  %2234 = vmax.xlane.f32.xlu1 %v2233_v53 }
 0xcd1   :  { %v2276_v54 = vsub.f32 %v2212_v7, %v2244_v52  ;;  %v7570_v7 = vmul.f32 0.17677669, %v1993_v62 }
 0xcd3   :  { %v2299_v56 = vmul.f32 1.442695, %v2276_v54  ;;  %v2239_v8 = vsel %vm399_vm8, %v7570_v7, -inf }
 0xcd4   :  { %2931 = vrot.lane.b32.xlu0 %v7430_v38, %s6823_s13  ;;  %v7578_v63 = vpop.f32.mrf.mxu1 }
 0xcd5   :  { %6325 = vpow2.f32 %v2299_v56  ;;  %8915 = vst [vmem:[#allocation54_spill] sm:$0xff] %v7578_v63 }
 0xcdb   :  { %v7562_v58 = vpop.eup %6325 }
 0xcdc   :  { %v2338_v60 = vsel %vm399_vm8, %v7562_v58, 0.0  ;;  %2957 = vrot.lane.b32.xlu0 %v7439_v41, %s6823_s13  ;;  %v7582_v11 = vpop.f32.mrf.mxu1 }
 0xcdd   :  { %2339 = vadd.xlane.f32.xlu2 %v2338_v60  ;;  %8916 = vst [vmem:[#allocation55_spill] sm:$0xff] %v7582_v11 }
 0xce4   :  { %v7586_v16 = vpop.f32.mrf.mxu1 }
 0xce5   :  { %2240 = vmax.xlane.f32.xlu2 %v2239_v8  ;;  %8917 = vst [vmem:[#allocation56_spill] sm:$0xff] %v7586_v16  ;;  %v7602_v8 = vpop.f32.mrf.mxu0 }
 0xce9   :  { %3053 = vrot.lane.b32.xlu1 %v7476_v55, %s6823_s13 }
 0xcec   :  { %v7590_v22 = vpop.f32.mrf.mxu1 }
 0xced   :  { %8918 = vst [vmem:[#allocation57_spill] sm:$0xff] %v7590_v22 }
 0xcf4   :  { %v7595_v33 = vpop.f32.mrf.mxu1 }
 0xcf5   :  { %8919 = vst [vmem:[#allocation58_spill] sm:$0xff] %v7595_v33 }
 0xcfc   :  { %v7598_v56 = vpop.f32.mrf.mxu1 }
 0xcfd   :  { %2981 = vrot.lane.b32.xlu2 %v7448_v1, %s6823_s13  ;;  %8920 = vst [vmem:[#allocation59_spill] sm:$0xff] %v7598_v56 }
 0xd05   :  { %3005 = vrot.lane.b32.xlu2 %v7457_v43, %s6823_s13 }
 0xd0a   :  { %v2319_v17 = vpop.xlane.xlu0 %2318 }
 0xd0b   :  { %6327 = vrcp.f32 %v2319_v17  ;;  %v2854_v17 = vpop.f32.mrf.mxu1 }
 0xd0d   :  { %3029 = vrot.lane.b32.xlu2 %v7466_v12, %s6823_s13 }
 0xd11   :  { %v6328_v18 = vpop.eup %6327 }
 0xd12   :  { %v2381_v24 = vmul.f32 %v6328_v18, %v7518_v19  ;;  %v2322_v4 = vpop.xlane.xlu2 %2321  ;;  %v7604_v18 = vmul.f32 0.17677669, %v2854_v17 }
 0xd13   :  { %6329 = vrcp.f32 %v2322_v4 }
 0xd14   :  { %v2397_v30 = vsel %vm399_vm8, %v2381_v24, 0.0 }
 0xd15   :  { %v2398_v0 = vrot.slane %v2397_v30, 4 }
 0xd17   :  { %v2399_v31 = vadd.f32 %v2398_v0, %v2397_v30  ;;  %v3153_v30 = vsel %vm399_vm8, %v7604_v18, -inf  ;;  %v2926_v0 = vpop.f32.mrf.mxu0 }
 0xd19   :  { %v6330_v36 = vpop.eup %6329  ;;  %v2400_v34 = vrot.slane %v2399_v31, 2 }
 0xd1a   :  { %v2382_v40 = vmul.f32 %v6330_v36, %v7524_v25 }
 0xd1b   :  { %v2401_v45 = vadd.f32 %v2400_v34, %v2399_v31  ;;  %v7612_v34 = vmul.f32 0.17677669, %v2926_v0 }
 0xd1c   :  { %v2404_v46 = vsel %vm399_vm8, %v2382_v40, 0.0 }
 0xd1d   :  { %v2402_v49 = vrot.slane %v2401_v45, 1  ;;  %v2405_v15 = vrot.slane %v2404_v46, 4 }
 0xd1f   :  { %v2403_v52 = vadd.f32 %v2402_v49, %v2401_v45  ;;  %v2406_v53 = vadd.f32 %v2405_v15, %v2404_v46  ;;  %v3162_v49 = vsel %vm399_vm8, %v7612_v34, -inf }
 0xd21   :  { %2513 = vperm.xlu0 %6240, %v2403_v52   ;;  %v2407_v19 = vrot.slane %v2406_v53, 2 }
 0xd23   :  { %v2408_v54 = vadd.f32 %v2407_v19, %v2406_v53 }
 0xd25   :  { %v2409_v60 = vrot.slane %v2408_v54, 1 }
 0xd27   :  { %v2410_v62 = vadd.f32 %v2409_v60, %v2408_v54 }
 0xd29   :  { %2519 = vperm.xlu1 %6242, %v2410_v62   ;;  %3077 = vrot.lane.b32.xlu0 %v7487_v59, %s6823_s13 }
 0xd2b   :  { %v2328_v25 = vpop.xlane.xlu0 %2327 }
 0xd2c   :  { %6331 = vrcp.f32 %v2328_v25 }
 0xd31   :  { %3101 = vrot.lane.b32.xlu1 %v7496_v2, %s6823_s13 }
 0xd32   :  { %v6332_v24 = vpop.eup %6331 }
 0xd33   :  { %v2384_v4 = vmul.f32 %v6332_v24, %v7535_v35  ;;  %v2229_v35 = vpop.xlane.xlu0 %2228 }
 0xd34   :  { %v2271_v24 = vsub.f32 %v7541_v39, %v2229_v35 }
 0xd35   :  { %v2418_v31 = vsel %vm399_vm8, %v2384_v4, 0.0 }
 0xd36   :  { %3154 = vmax.xlane.f32.xlu2 %v3153_v30  ;;  %v2419_v36 = vrot.slane %v2418_v31, 4  ;;  %v2289_v0 = vmul.f32 1.442695, %v2271_v24 }
 0xd38   :  { %v2420_v40 = vadd.f32 %v2419_v36, %v2418_v31 }
 0xd3a   :  { %v2421_v45 = vrot.slane %v2420_v40, 2 }
 0xd3b   :  { %v2334_v46 = vpop.xlane.xlu1 %2333 }
 0xd3c   :  { %6333 = vrcp.f32 %v2334_v46  ;;  %v2422_v15 = vadd.f32 %v2421_v45, %v2420_v40  ;;  %v2041_v40 = vpop.f32.mrf.mxu3  ;;  %v2064_v45 = vpop.f32.mrf.mxu2 }
 0xd3d   :  { %6335 = vpow2.f32 %v2289_v0 }
 0xd3e   :  { %3163 = vmax.xlane.f32.xlu2 %v3162_v49  ;;  %v2423_v52 = vrot.slane %v2422_v15, 1 }
 0xd40   :  { %v2424_v53 = vadd.f32 %v2423_v52, %v2422_v15 }
 0xd42   :  { %v6334_v19 = vpop.eup %6333  ;;  %2531 = vperm.xlu0 %6240, %v2424_v53  }
 0xd43   :  { %v2386_v54 = vmul.f32 %v6334_v19, %v7548_v48  ;;  %v2235_v46 = vpop.xlane.xlu1 %2234  ;;  %v7627_v49 = vpop.eup %6335 }
 0xd44   :  { %v2087_v35 = vpop.f32.mrf.mxu3  ;;  %v2323_v52 = vsel %vm399_vm8, %v7627_v49, 0.0  ;;  %v2110_v53 = vpop.f32.mrf.mxu2 }
 0xd45   :  { %v2432_v60 = vsel %vm399_vm8, %v2386_v54, 0.0  ;;  %v7632_v54 = vmul.f32 0.17677669, %v2087_v35 }
 0xd46   :  { %v2932_v62 = vpop.permute.xlu0 %2931  ;;  %v2433_v25 = vrot.slane %v2432_v60, 4 }
 0xd47   :  { %6102 = vmatpush.xpose.msk.msra.mxu1 %vm399_vm8, %v2932_v62 }
 0xd48   :  { %v2434_v17 = vadd.f32 %v2433_v25, %v2432_v60  ;;  %v2251_v25 = vsel %vm399_vm8, %v7632_v54, -inf }
 0xd4a   :  { %6103 = vmatmul.msk.f32.vlgmr.msra.gmra.mxu1 %vm399_vm8, %v7443_v42  ;;  %v2435_v4 = vrot.slane %v2434_v17, 2 }
 0xd4c   :  { %v2436_v30 = vadd.f32 %v2435_v4, %v2434_v17  ;;  %v2156_v17 = vpop.f32.mrf.mxu2 }
 0xd4d   :  { %v7642_v24 = vmul.f32 0.17677669, %v2156_v17 }
 0xd4e   :  { %v2958_v31 = vpop.permute.xlu0 %2957  ;;  %v2437_v48 = vrot.slane %v2436_v30, 1 }
 0xd4f   :  { %6104 = vmatpush.xpose.msk.msra.mxu2 %vm399_vm8, %v2958_v31 }
 0xd50   :  { %v7622_v36 = vpop.xlane.xlu2 %2339  ;;  %v2438_v39 = vadd.f32 %v2437_v48, %v2436_v30  ;;  %v7645_v30 = vmul.f32 0.17677669, %v7602_v8  ;;  %v2273_v48 = vsub.f32 %v7552_v50, %v2235_v46  ;;  %v2133_v46 = vpop.f32.mrf.mxu3 }
 0xd52   :  { %6105 = vmatmul.msk.f32.vlgmr.msra.gmra.mxu2 %vm399_vm8, %v7443_v42  ;;  %v3150_v31 = vsel %vm399_vm8, %v7645_v30, -inf }
 0xd56   :  { %2543 = vperm.xlu2 %6241, %v2438_v39  }
 0xd58   :  { %v2241_v15 = vpop.xlane.xlu2 %2240 }
 0xd59   :  { %v2275_v62 = vsub.f32 %v7570_v7, %v2241_v15  ;;  %v2260_v7 = vsel %vm399_vm8, %v7642_v24, -inf  ;;  %v2293_v15 = vmul.f32 1.442695, %v2273_v48 }
 0xd5b   :  { %v3054_v19 = vpop.permute.xlu1 %3053  ;;  %2324 = vadd.xlane.f32.xlu1 %v2323_v52  ;;  %v2297_v4 = vmul.f32 1.442695, %v2275_v62  ;;  %v7662_v52 = vmul.f32 0.17677669, %v2041_v40  ;;  %v7670_v62 = vmul.f32 0.17677669, %v2110_v53  ;;  %v2179_v40 = vpop.f32.mrf.mxu3 }
 0xd5c   :  { %6112 = vmatpush.xpose.msk.msrb.mxu2 %vm399_vm8, %v3054_v19  ;;  %v2202_v53 = vpop.f32.mrf.mxu2 }
 0xd5d   :  { %6337 = vpow2.f32 %v2297_v4  ;;  %v2245_v50 = vsel %vm399_vm8, %v7662_v52, -inf  ;;  %v2254_v17 = vsel %vm399_vm8, %v7670_v62, -inf  ;;  %v7686_v48 = vmul.f32 0.17677669, %v2202_v53 }
 0xd5e   :  { %6339 = vpow2.f32 %v2293_v15 }
 0xd5f   :  { %6113 = vmatmul.msk.f32.vlgmr.msrb.gmra.mxu2 %vm399_vm8, %v7443_v42  ;;  %v2266_v15 = vsel %vm399_vm8, %v7686_v48, -inf }
 0xd60   :  { %v2982_v60 = vpop.permute.xlu2 %2981 }
 0xd61   :  { %6106 = vmatpush.xpose.msk.msrb.mxu3 %vm399_vm8, %v2982_v60 }
 0xd63   :  { %2252 = vmax.xlane.f32.xlu1 %v2251_v25  ;;  %v7655_v8 = vpop.eup %6337  ;;  %v7672_v25 = vmul.f32 0.17677669, %v2064_v45 }
 0xd64   :  { %6107 = vmatmul.msk.f32.vlgmr.msrb.gmra.mxu3 %vm399_vm8, %v7443_v42  ;;  %v2335_v35 = vsel %vm399_vm8, %v7655_v8, 0.0  ;;  %v7664_v19 = vpop.eup %6339 }
 0xd65   :  { %v2329_v60 = vsel %vm399_vm8, %v7664_v19, 0.0  ;;  %v2248_v4 = vsel %vm399_vm8, %v7672_v25, -inf }
 0xd68   :  { %v3006_v0 = vpop.permute.xlu2 %3005 }
 0xd69   :  { %6108 = vmatpush.xpose.msk.msra.mxu0 %vm399_vm8, %v3006_v0  ;;  %v7678_v0 = vmul.f32 0.17677669, %v2179_v40 }
 0xd6b   :  { %2261 = vmax.xlane.f32.xlu1 %v2260_v7  ;;  %v7680_v7 = vmul.f32 0.17677669, %v2133_v46 }
 0xd6c   :  { %6109 = vmatmul.msk.f32.vlgmr.msra.gmra.mxu0 %vm399_vm8, %v7443_v42  ;;  %3151 = vmax.xlane.f32.xlu0 %v3150_v31  ;;  %v2263_v31 = vsel %vm399_vm8, %v7678_v0, -inf }
 0xd6d   :  { %v2257_v45 = vsel %vm399_vm8, %v7680_v7, -inf }
 0xd70   :  { %v3030_v39 = vpop.permute.xlu2 %3029 }
 0xd71   :  { %6110 = vmatpush.xpose.msk.msrb.mxu1 %vm399_vm8, %v3030_v39 }
 0xd74   :  { %6111 = vmatmul.msk.f32.vlgmr.msrb.gmra.mxu1 %vm399_vm8, %v7443_v42  ;;  %2336 = vadd.xlane.f32.xlu0 %v2335_v35  ;;  %v2782_v35 = vpop.f32.mrf.mxu2 }
 0xd7c   :  { %2246 = vmax.xlane.f32.xlu0 %v2245_v50  ;;  %v7692_v50 = vmul.f32 0.17677669, %v2782_v35 }
 0xd7f   :  { %2330 = vadd.xlane.f32.xlu2 %v2329_v60 }
 0xd84   :  { %2255 = vmax.xlane.f32.xlu0 %v2254_v17  ;;  %v3144_v17 = vsel %vm399_vm8, %v7692_v50, -inf }
 0xd87   :  { %2249 = vmax.xlane.f32.xlu2 %v2248_v4 }
 0xd8c   :  { %2264 = vmax.xlane.f32.xlu0 %v2263_v31 }
 0xd8f   :  { %2258 = vmax.xlane.f32.xlu2 %v2257_v45 }
 0xd93   :  { %v7688_v39 = vpop.permute.xlu0 %2513 }
 0xd94   :  { %8921 = vst [vmem:[#allocation60_spill] sm:$0xff] %v7688_v39 }
 0xd97   :  { %2267 = vmax.xlane.f32.xlu2 %v2266_v15  ;;  %v2758_v15 = vpop.f32.mrf.mxu3 }
 0xd9b   :  { %v7694_v46 = vpop.permute.xlu1 %2519  ;;  %v3078_v60 = vpop.permute.xlu0 %3077 }
 0xd9c   :  { %8922 = vst [vmem:[#allocation61_spill] sm:$0xff] %v7694_v46  ;;  %6114 = vmatpush.xpose.msk.msra.mxu3 %vm399_vm8, %v3078_v60 }
 0xd9f   :  { %3145 = vmax.xlane.f32.xlu2 %v3144_v17  ;;  %6115 = vmatmul.msk.f32.vlgmr.msra.gmra.mxu3 %vm399_vm8, %v7443_v42  ;;  %v2806_v59 = vpop.f32.mrf.mxu3 }
 0xda3   :  { %v3102_v40 = vpop.permute.xlu1 %3101 }
 0xda4   :  { %6116 = vmatpush.xpose.msk.msrb.mxu0 %vm399_vm8, %v3102_v40  ;;  %v7710_v40 = vmul.f32 0.17677669, %v2758_v15 }
 0xda7   :  { %6117 = vmatmul.msk.f32.vlgmr.msrb.gmra.mxu0 %vm399_vm8, %v7443_v42  ;;  %v3141_v42 = vsel %vm399_vm8, %v7710_v40, -inf }
 0xda9   :  { %v3155_v4 = vpop.xlane.xlu2 %3154 }
 0xdaa   :  { %v3193_v31 = vsub.f32 %v7604_v18, %v3155_v4 }
 0xdac   :  { %v3213_v53 = vmul.f32 1.442695, %v3193_v31  ;;  %v2902_v31 = vpop.f32.mrf.mxu3 }
 0xdae   :  { %6341 = vpow2.f32 %v3213_v53 }
 0xdb1   :  { %v3164_v45 = vpop.xlane.xlu2 %3163 }
 0xdb2   :  { %v3196_v60 = vsub.f32 %v7612_v34, %v3164_v45  ;;  %v7718_v34 = vmul.f32 0.17677669, %v2902_v31  ;;  %v2878_v45 = vpop.f32.mrf.mxu2 }
 0xdb4   :  { %v7705_v35 = vpop.eup %6341  ;;  %v3219_v10 = vmul.f32 1.442695, %v3196_v60  ;;  %v3159_v53 = vsel %vm399_vm8, %v7718_v34, -inf  ;;  %v7725_v38 = vpop.permute.xlu0 %2531 }
 0xdb5   :  { %v3249_v17 = vsel %vm399_vm8, %v7705_v35, 0.0  ;;  %8923 = vst [vmem:[#allocation62_spill] sm:$0xff] %v7725_v38 }
 0xdb6   :  { %3250 = vadd.xlane.f32.xlu0 %v3249_v17  ;;  %6343 = vpow2.f32 %v3219_v10 }
 0xdbc   :  { %v7714_v18 = vpop.eup %6343 }
 0xdbd   :  { %v3258_v4 = vsel %vm399_vm8, %v7714_v18, 0.0 }
 0xdbe   :  { %3142 = vmax.xlane.f32.xlu0 %v3141_v42 }
 0xdc6   :  { %3259 = vadd.xlane.f32.xlu0 %v3258_v4 }
 0xdce   :  { %3160 = vmax.xlane.f32.xlu0 %v3159_v53  ;;  %v2325_v15 = vpop.xlane.xlu1 %2324 }
 0xdcf   :  { %6345 = vrcp.f32 %v2325_v15 }
 0xdd5   :  { %v6346_v10 = vpop.eup %6345  ;;  %v2978_v60 = vpop.f32.mrf.mxu2 }
 0xdd6   :  { %v2383_v17 = vmul.f32 %v6346_v10, %v7627_v49  ;;  %v7723_v42 = vmul.f32 0.17677669, %v2978_v60  ;;  %v7731_v10 = vpop.permute.xlu2 %2543 }
 0xdd7   :  { %8924 = vst [vmem:[#allocation63_spill] sm:$0xff] %v7731_v10 }
 0xdd8   :  { %v2411_v41 = vsel %vm399_vm8, %v2383_v17, 0.0  ;;  %v3168_v4 = vsel %vm399_vm8, %v7723_v42, -inf }
 0xdd9   :  { %v2412_v31 = vrot.slane %v2411_v41, 4  ;;  %3169 = vmax.xlane.f32.xlu0 %v3168_v4  ;;  %v7737_v4 = vmul.f32 0.17677669, %v2806_v59 }
 0xddb   :  { %v2413_v33 = vadd.f32 %v2412_v31, %v2411_v41 }
 0xddd   :  { %v2414_v56 = vrot.slane %v2413_v33, 2 }
 0xddf   :  { %v3152_v53 = vpop.xlane.xlu0 %3151  ;;  %v2415_v22 = vadd.f32 %v2414_v56, %v2413_v33  ;;  %v3147_v33 = vsel %vm399_vm8, %v7737_v4, -inf  ;;  %v7741_v56 = vmul.f32 0.17677669, %v2878_v45 }
 0xde0   :  { %v3192_v15 = vsub.f32 %v7645_v30, %v3152_v53 }
 0xde1   :  { %v2416_v11 = vrot.slane %v2415_v22, 1  ;;  %v3156_v31 = vsel %vm399_vm8, %v7741_v56, -inf }
 0xde2   :  { %v3211_v16 = vmul.f32 1.442695, %v3192_v15  ;;  %v7748_v15 = vpop.f32.mrf.mxu1 }
 0xde3   :  { %v2417_v49 = vadd.f32 %v2416_v11, %v2415_v22  ;;  %v7803_v12 = vmul.f32 0.17677669, %v7748_v15 }
 0xde4   :  { %6347 = vpow2.f32 %v3211_v16 }
 0xde5   :  { %2525 = vperm.xlu2 %6241, %v2417_v49  }
 0xde9   :  { %v3026_v9 = vpop.f32.mrf.mxu0 }
 0xdea   :  { %v7733_v60 = vpop.eup %6347  ;;  %v7814_v47 = vmul.f32 0.17677669, %v3026_v9 }
 0xdeb   :  { %v3246_v17 = vsel %vm399_vm8, %v7733_v60, 0.0 }
 0xdec   :  { %3247 = vadd.xlane.f32.xlu1 %v3246_v17  ;;  %v2253_v17 = vpop.xlane.xlu1 %2252 }
 0xdf2   :  { %v2331_v41 = vpop.xlane.xlu2 %2330 }
 0xdf3   :  { %6349 = vrcp.f32 %v2331_v41  ;;  %v7750_v41 = vpop.xlane.xlu0 %2336 }
 0xdf4   :  { %3148 = vmax.xlane.f32.xlu1 %v3147_v33 }
 0xdf9   :  { %v6350_v11 = vpop.eup %6349 }
 0xdfa   :  { %v2385_v16 = vmul.f32 %v6350_v11, %v7664_v19  ;;  %v2250_v22 = vpop.xlane.xlu2 %2249  ;;  %v2279_v19 = vsub.f32 %v7632_v54, %v2253_v17 }
 0xdfb   :  { %v2278_v30 = vsub.f32 %v7672_v25, %v2250_v22 }
 0xdfc   :  { %3157 = vmax.xlane.f32.xlu1 %v3156_v31  ;;  %v2425_v59 = vsel %vm399_vm8, %v2385_v16, 0.0  ;;  %v3050_v16 = vpop.f32.mrf.mxu1  ;;  %v2305_v31 = vmul.f32 1.442695, %v2279_v19  ;;  %v2262_v19 = vpop.xlane.xlu1 %2261 }
 0xdfd   :  { %v2303_v53 = vmul.f32 1.442695, %v2278_v30  ;;  %v2426_v49 = vrot.slane %v2425_v59, 4  ;;  %v3002_v30 = vpop.f32.mrf.mxu3  ;;  %v7760_v38 = vmul.f32 0.17677669, %v3050_v16  ;;  %v3074_v16 = vpop.f32.mrf.mxu2 }
 0xdfe   :  { %v7758_v63 = vmul.f32 0.17677669, %v3002_v30  ;;  %v2282_v30 = vsub.f32 %v7642_v24, %v2262_v19 }
 0xdff   :  { %6351 = vpow2.f32 %v2303_v53  ;;  %v2427_v33 = vadd.f32 %v2426_v49, %v2425_v59  ;;  %v2247_v59 = vpop.xlane.xlu0 %2246 }
 0xe00   :  { %6353 = vpow2.f32 %v2305_v31  ;;  %v3171_v49 = vsel %vm399_vm8, %v7758_v63, -inf }
 0xe01   :  { %v2428_v53 = vrot.slane %v2427_v33, 2 }
 0xe02   :  { %v2259_v45 = vpop.xlane.xlu2 %2258 }
 0xe03   :  { %v2281_v25 = vsub.f32 %v7680_v7, %v2259_v45  ;;  %v2429_v54 = vadd.f32 %v2428_v53, %v2427_v33  ;;  %v3177_v7 = vsel %vm399_vm8, %v7760_v38, -inf  ;;  %v2311_v53 = vmul.f32 1.442695, %v2282_v30 }
 0xe05   :  { %v7753_v11 = vpop.eup %6351  ;;  %v2309_v10 = vmul.f32 1.442695, %v2281_v25  ;;  %v2430_v17 = vrot.slane %v2429_v54, 1 }
 0xe06   :  { %v2344_v22 = vsel %vm399_vm8, %v7753_v11, 0.0  ;;  %v7766_v45 = vpop.eup %6353 }
 0xe07   :  { %2345 = vadd.xlane.f32.xlu0 %v2344_v22  ;;  %6355 = vpow2.f32 %v2309_v10  ;;  %v2431_v22 = vadd.f32 %v2430_v17, %v2429_v54  ;;  %v2347_v33 = vsel %vm399_vm8, %v7766_v45, 0.0  ;;  %v2256_v31 = vpop.xlane.xlu0 %2255 }
 0xe08   :  { %6357 = vpow2.f32 %v2311_v53 }
 0xe0d   :  { %v7768_v25 = vpop.eup %6355 }
 0xe0e   :  { %3172 = vmax.xlane.f32.xlu2 %v3171_v49  ;;  %v2353_v10 = vsel %vm399_vm8, %v7768_v25, 0.0  ;;  %v2268_v49 = vpop.xlane.xlu2 %2267  ;;  %v7782_v19 = vpop.eup %6357 }
 0xe0f   :  { %3178 = vmax.xlane.f32.xlu0 %v3177_v7  ;;  %v7775_v7 = vmul.f32 0.17677669, %v3074_v16  ;;  %v2284_v54 = vsub.f32 %v7686_v48, %v2268_v49  ;;  %v7780_v17 = vpop.xlane.xlu0 %2264  ;;  %v2356_v30 = vsel %vm399_vm8, %v7782_v19, 0.0 }
 0xe11   :  { %v3180_v24 = vsel %vm399_vm8, %v7775_v7, -inf }
 0xe15   :  { %2537 = vperm.xlu1 %6242, %v2431_v22   ;;  %v2315_v22 = vmul.f32 1.442695, %v2284_v54 }
 0xe16   :  { %2348 = vadd.xlane.f32.xlu2 %v2347_v33  ;;  %v3146_v44 = vpop.xlane.xlu2 %3145 }
 0xe17   :  { %2354 = vadd.xlane.f32.xlu0 %v2353_v10  ;;  %6359 = vpow2.f32 %v2315_v22  ;;  %v3190_v16 = vsub.f32 %v7692_v50, %v3146_v44 }
 0xe19   :  { %v3207_v49 = vmul.f32 1.442695, %v3190_v16 }
 0xe1e   :  { %3181 = vmax.xlane.f32.xlu2 %v3180_v24  ;;  %v7791_v24 = vpop.eup %6359 }
 0xe24   :  { %v3122_v10 = vpop.f32.mrf.mxu0 }
 0xe25   :  { %v7784_v33 = vmul.f32 0.17677669, %v3122_v10  ;;  %v2362_v10 = vsel %vm399_vm8, %v7791_v24, 0.0 }
 0xe26   :  { %2357 = vadd.xlane.f32.xlu2 %v2356_v30  ;;  %v2277_v30 = vsub.f32 %v7662_v52, %v2247_v59 }
 0xe27   :  { %v3186_v48 = vsel %vm399_vm8, %v7784_v33, -inf }
 0xe28   :  { %3187 = vmax.xlane.f32.xlu0 %v3186_v48 }
 0xe29   :  { %v3251_v53 = vpop.xlane.xlu0 %3250 }
 0xe2a   :  { %6361 = vrcp.f32 %v3251_v53 }
 0xe2b   :  { %6363 = vpow2.f32 %v3207_v49  ;;  %v2301_v49 = vmul.f32 1.442695, %v2277_v30 }
 0xe30   :  { %v6362_v54 = vpop.eup %6361  ;;  %2363 = vadd.xlane.f32.xlu0 %v2362_v10 }
 0xe31   :  { %v3305_v39 = vmul.f32 %v6362_v54, %v7705_v35  ;;  %v3143_v22 = vpop.xlane.xlu0 %3142  ;;  %v7797_v50 = vpop.eup %6363 }
 0xe32   :  { %v3240_v16 = vsel %vm399_vm8, %v7797_v50, 0.0 }
 0xe33   :  { %v3345_v44 = vsel %vm399_vm8, %v3305_v39, 0.0  ;;  %v3165_v39 = vsel %vm399_vm8, %v7803_v12, -inf }
 0xe34   :  { %v3346_v48 = vrot.slane %v3345_v44, 4 }
 0xe36   :  { %v3347_v35 = vadd.f32 %v3346_v48, %v3345_v44 }
 0xe38   :  { %3241 = vadd.xlane.f32.xlu0 %v3240_v16  ;;  %v3348_v54 = vrot.slane %v3347_v35, 2  ;;  %v2280_v16 = vsub.f32 %v7670_v62, %v2256_v31 }
 0xe39   :  { %v3260_v53 = vpop.xlane.xlu0 %3259 }
 0xe3a   :  { %6365 = vrcp.f32 %v3260_v53  ;;  %v3349_v46 = vadd.f32 %v3348_v54, %v3347_v35  ;;  %v3174_v35 = vsel %vm399_vm8, %v7814_v47, -inf }
 0xe3b   :  { %6367 = vpow2.f32 %v2301_v49  ;;  %v2307_v49 = vmul.f32 1.442695, %v2280_v16 }
 0xe3c   :  { %v3350_v48 = vrot.slane %v3349_v46, 1 }
 0xe3d   :  { %6369 = vpow2.f32 %v2307_v49 }
 0xe3f   :  { %3166 = vmax.xlane.f32.xlu1 %v3165_v39  ;;  %v3351_v39 = vadd.f32 %v3350_v48, %v3349_v46 }
 0xe40   :  { %v6366_v10 = vpop.eup %6365 }
 0xe41   :  { %v3308_v52 = vmul.f32 %v6366_v10, %v7714_v18  ;;  %v7809_v43 = vpop.eup %6367  ;;  %v2283_v10 = vsub.f32 %v7678_v0, %v7780_v17  ;;  %v3161_v48 = vpop.xlane.xlu0 %3160 }
 0xe42   :  { %v2341_v44 = vsel %vm399_vm8, %v7809_v43, 0.0  ;;  %v3195_v0 = vsub.f32 %v7718_v34, %v3161_v48 }
 0xe43   :  { %v3366_v59 = vsel %vm399_vm8, %v3308_v52, 0.0  ;;  %v7818_v31 = vpop.eup %6369  ;;  %v3098_v52 = vpop.f32.mrf.mxu3  ;;  %v2313_v46 = vmul.f32 1.442695, %v2283_v10 }
 0xe44   :  { %v3367_v30 = vrot.slane %v3366_v59, 4  ;;  %v2350_v9 = vsel %vm399_vm8, %v7818_v31, 0.0 }
 0xe45   :  { %6371 = vpow2.f32 %v2313_v46 }
 0xe46   :  { %v3368_v15 = vadd.f32 %v3367_v30, %v3366_v59  ;;  %v7824_v59 = vmul.f32 0.17677669, %v3098_v52  ;;  %v3189_v30 = vsub.f32 %v7710_v40, %v3143_v22  ;;  %v3217_v22 = vmul.f32 1.442695, %v3195_v0 }
 0xe47   :  { %2342 = vadd.xlane.f32.xlu1 %v2341_v44 }
 0xe48   :  { %v3369_v53 = vrot.slane %v3368_v15, 2  ;;  %v3183_v16 = vsel %vm399_vm8, %v7824_v59, -inf  ;;  %v3205_v44 = vmul.f32 1.442695, %v3189_v30 }
 0xe4a   :  { %v3370_v18 = vadd.f32 %v3369_v53, %v3368_v15  ;;  %6373 = vpow2.f32 %v3205_v44 }
 0xe4b   :  { %v7829_v53 = vpop.eup %6371 }
 0xe4c   :  { %3457 = vperm.xlu0 %6240, %v3351_v39   ;;  %v3371_v54 = vrot.slane %v3370_v18, 1  ;;  %v2359_v17 = vsel %vm399_vm8, %v7829_v53, 0.0  ;;  %v3170_v39 = vpop.xlane.xlu0 %3169 }
 0xe4e   :  { %v3372_v62 = vadd.f32 %v3371_v54, %v3370_v18 }
 0xe4f   :  { %3175 = vmax.xlane.f32.xlu1 %v3174_v35 }
 0xe50   :  { %v7835_v35 = vpop.eup %6373 }
 0xe51   :  { %v3237_v34 = vsel %vm399_vm8, %v7835_v35, 0.0 }
 0xe54   :  { %3475 = vperm.xlu0 %6240, %v3372_v62   ;;  %v3198_v62 = vsub.f32 %v7723_v42, %v3170_v39 }
 0xe57   :  { %2351 = vadd.xlane.f32.xlu1 %v2350_v9  ;;  %v3223_v9 = vmul.f32 1.442695, %v3198_v62 }
 0xe5f   :  { %v3248_v15 = vpop.xlane.xlu1 %3247  ;;  %3184 = vmax.xlane.f32.xlu1 %v3183_v16 }
 0xe60   :  { %6375 = vrcp.f32 %v3248_v15  ;;  %v7850_v15 = vpop.permute.xlu2 %2525 }
 0xe61   :  { %8925 = vst [vmem:[#allocation64_spill] sm:$0xff] %v7850_v15 }
 0xe66   :  { %v6376_v54 = vpop.eup %6375 }
 0xe67   :  { %v3149_v49 = vpop.xlane.xlu1 %3148  ;;  %2360 = vadd.xlane.f32.xlu1 %v2359_v17  ;;  %v3304_v10 = vmul.f32 %v6376_v54, %v7733_v60 }
 0xe68   :  { %v3191_v40 = vsub.f32 %v7737_v4, %v3149_v49 }
 0xe69   :  { %v3338_v46 = vsel %vm399_vm8, %v3304_v10, 0.0 }
 0xe6a   :  { %v3209_v18 = vmul.f32 1.442695, %v3191_v40  ;;  %v3339_v16 = vrot.slane %v3338_v46, 4 }
 0xe6c   :  { %6377 = vpow2.f32 %v3209_v18  ;;  %v3340_v44 = vadd.f32 %v3339_v16, %v3338_v46 }
 0xe6d   :  { %6379 = vpow2.f32 %v3217_v22 }
 0xe6e   :  { %6381 = vpow2.f32 %v3223_v9  ;;  %v3341_v17 = vrot.slane %v3340_v44, 2 }
 0xe6f   :  { %3238 = vadd.xlane.f32.xlu1 %v3237_v34 }
 0xe70   :  { %v3342_v18 = vadd.f32 %v3341_v17, %v3340_v44 }
 0xe72   :  { %v7841_v52 = vpop.eup %6377  ;;  %v3343_v34 = vrot.slane %v3342_v18, 1 }
 0xe73   :  { %v7843_v4 = vpop.eup %6379  ;;  %v3243_v30 = vsel %vm399_vm8, %v7841_v52, 0.0 }
 0xe74   :  { %3244 = vadd.xlane.f32.xlu2 %v3243_v30  ;;  %v3255_v42 = vsel %vm399_vm8, %v7843_v4, 0.0  ;;  %v7854_v48 = vpop.eup %6381  ;;  %v3344_v9 = vadd.f32 %v3343_v34, %v3342_v18  ;;  %v3158_v18 = vpop.xlane.xlu1 %3157 }
 0xe75   :  { %v3264_v0 = vsel %vm399_vm8, %v7854_v48, 0.0 }
 0xe77   :  { %3256 = vadd.xlane.f32.xlu1 %v3255_v42 }
 0xe7a   :  { %v7852_v60 = vpop.xlane.xlu0 %2345 }
 0xe7f   :  { %3265 = vadd.xlane.f32.xlu1 %v3264_v0 }
 0xe81   :  { %v3173_v40 = vpop.xlane.xlu2 %3172 }
 0xe82   :  { %v3179_v49 = vpop.xlane.xlu0 %3178  ;;  %v3199_v39 = vsub.f32 %v7758_v63, %v3173_v40 }
 0xe83   :  { %v3201_v22 = vsub.f32 %v7760_v38, %v3179_v49 }
 0xe84   :  { %v3225_v62 = vmul.f32 1.442695, %v3199_v39 }
 0xe85   :  { %v3229_v54 = vmul.f32 1.442695, %v3201_v22 }
 0xe87   :  { %6383 = vpow2.f32 %v3229_v54  ;;  %v3194_v54 = vsub.f32 %v7741_v56, %v3158_v18 }
 0xe88   :  { %6385 = vpow2.f32 %v3225_v62 }
 0xe89   :  { %v7860_v10 = vpop.xlane.xlu2 %2348  ;;  %v3215_v34 = vmul.f32 1.442695, %v3194_v54 }
 0xe8a   :  { %v7871_v44 = vpop.xlane.xlu0 %2354 }
 0xe8c   :  { %3451 = vperm.xlu2 %6241, %v3344_v9  }
 0xe8d   :  { %v7862_v46 = vpop.eup %6383 }
 0xe8e   :  { %v7864_v30 = vpop.eup %6385  ;;  %v3273_v16 = vsel %vm399_vm8, %v7862_v46, 0.0 }
 0xe8f   :  { %3274 = vadd.xlane.f32.xlu1 %v3273_v16  ;;  %v3267_v38 = vsel %vm399_vm8, %v7864_v30, 0.0  ;;  %v7885_v16 = vpop.permute.xlu1 %2537 }
 0xe90   :  { %3268 = vadd.xlane.f32.xlu0 %v3267_v38  ;;  %8926 = vst [vmem:[#allocation65_spill] sm:$0xff] %v7885_v16 }
 0xe91   :  { %v3182_v63 = vpop.xlane.xlu2 %3181 }
 0xe92   :  { %v3202_v42 = vsub.f32 %v7775_v7, %v3182_v63 }
 0xe94   :  { %v3231_v0 = vmul.f32 1.442695, %v3202_v42 }
 0xe96   :  { %6387 = vpow2.f32 %v3231_v0 }
 0xe9b   :  { %v3188_v17 = vpop.xlane.xlu0 %3187 }
 0xe9c   :  { %v7873_v49 = vpop.eup %6387  ;;  %v3204_v40 = vsub.f32 %v7784_v33, %v3188_v17 }
 0xe9d   :  { %v3276_v22 = vsel %vm399_vm8, %v7873_v49, 0.0 }
 0xe9e   :  { %v3235_v39 = vmul.f32 1.442695, %v3204_v40  ;;  %3277 = vadd.xlane.f32.xlu0 %v3276_v22 }
 0xea0   :  { %6389 = vpow2.f32 %v3235_v39 }
 0xea1   :  { %6391 = vpow2.f32 %v3215_v34 }
 0xea3   :  { %v7879_v62 = vpop.xlane.xlu0 %2363 }
 0xea6   :  { %v7881_v7 = vpop.eup %6389 }
 0xea7   :  { %v3282_v9 = vsel %vm399_vm8, %v7881_v7, 0.0  ;;  %v7887_v38 = vpop.eup %6391 }
 0xea8   :  { %3283 = vadd.xlane.f32.xlu1 %v3282_v9  ;;  %v3252_v17 = vsel %vm399_vm8, %v7887_v38, 0.0 }
 0xeab   :  { %v3242_v33 = vpop.xlane.xlu0 %3241 }
 0xeac   :  { %6393 = vrcp.f32 %v3242_v33 }
 0xeb2   :  { %v6394_v63 = vpop.eup %6393  ;;  %v3167_v42 = vpop.xlane.xlu1 %3166 }
 0xeb3   :  { %v3302_v56 = vmul.f32 %v6394_v63, %v7797_v50  ;;  %v3197_v0 = vsub.f32 %v7803_v12, %v3167_v42 }
 0xeb5   :  { %v3324_v40 = vsel %vm399_vm8, %v3302_v56, 0.0  ;;  %v3221_v22 = vmul.f32 1.442695, %v3197_v0  ;;  %3253 = vadd.xlane.f32.xlu2 %v3252_v17 }
 0xeb6   :  { %v3325_v39 = vrot.slane %v3324_v40, 4 }
 0xeb7   :  { %6395 = vpow2.f32 %v3221_v22 }
 0xeb8   :  { %v3326_v18 = vadd.f32 %v3325_v39, %v3324_v40 }
 0xeba   :  { %v7894_v54 = vpop.xlane.xlu1 %2342  ;;  %v3327_v34 = vrot.slane %v3326_v18, 2 }
 0xebc   :  { %v3328_v9 = vadd.f32 %v3327_v34, %v3326_v18 }
 0xebd   :  { %v7896_v33 = vpop.eup %6395 }
 0xebe   :  { %v3261_v50 = vsel %vm399_vm8, %v7896_v33, 0.0  ;;  %v3329_v12 = vrot.slane %v3328_v9, 1  ;;  %v7919_v15 = vpop.permute.xlu0 %3457 }
 0xebf   :  { %3262 = vadd.xlane.f32.xlu2 %v3261_v50  ;;  %8927 = vst [vmem:[#allocation66_spill] sm:$0xff] %v7919_v15 }
 0xec0   :  { %v3330_v63 = vadd.f32 %v3329_v12, %v3328_v9  ;;  %v7914_v12 = vpop.xlane.xlu2 %2357 }
 0xec2   :  { %v3176_v42 = vpop.xlane.xlu1 %3175  ;;  %3439 = vperm.xlu1 %6242, %v3330_v63  }
 0xec3   :  { %v3200_v56 = vsub.f32 %v7814_v47, %v3176_v42 }
 0xec5   :  { %v3227_v0 = vmul.f32 1.442695, %v3200_v56 }
 0xec7   :  { %6397 = vpow2.f32 %v3227_v0 }
 0xeca   :  { %v7901_v17 = vpop.xlane.xlu1 %2351 }
 0xecd   :  { %v7903_v40 = vpop.eup %6397 }
 0xece   :  { %v3270_v22 = vsel %vm399_vm8, %v7903_v40, 0.0 }
 0xecf   :  { %3271 = vadd.xlane.f32.xlu2 %v3270_v22 }
 0xed2   :  { %v3185_v39 = vpop.xlane.xlu1 %3184 }
 0xed3   :  { %v3203_v18 = vsub.f32 %v7824_v59, %v3185_v39 }
 0xed5   :  { %v3233_v34 = vmul.f32 1.442695, %v3203_v18 }
 0xed7   :  { %6399 = vpow2.f32 %v3233_v34 }
 0xeda   :  { %v7908_v9 = vpop.xlane.xlu1 %2360 }
 0xedd   :  { %v7910_v50 = vpop.eup %6399 }
 0xede   :  { %v3279_v47 = vsel %vm399_vm8, %v7910_v50, 0.0 }
 0xedf   :  { %3280 = vadd.xlane.f32.xlu2 %v3279_v47 }
 0xee2   :  { %v3239_v63 = vpop.xlane.xlu1 %3238 }
 0xee3   :  { %6401 = vrcp.f32 %v3239_v63 }
 0xee7   :  { %v3245_v42 = vpop.xlane.xlu2 %3244 }
 0xee8   :  { %6403 = vrcp.f32 %v3245_v42 }
 0xee9   :  { %v6402_v56 = vpop.eup %6401 }
 0xeea   :  { %v3301_v0 = vmul.f32 %v6402_v56, %v7835_v35  ;;  %v3257_v59 = vpop.xlane.xlu1 %3256 }
 0xeeb   :  { %6405 = vrcp.f32 %v3257_v59 }
 0xeec   :  { %v3317_v22 = vsel %vm399_vm8, %v3301_v0, 0.0 }
 0xeed   :  { %v3318_v39 = vrot.slane %v3317_v22, 4 }
 0xeee   :  { %v6404_v18 = vpop.eup %6403 }
 0xeef   :  { %v3303_v34 = vmul.f32 %v6404_v18, %v7841_v52  ;;  %v3319_v16 = vadd.f32 %v3318_v39, %v3317_v22 }
 0xef1   :  { %v6406_v1 = vpop.eup %6405  ;;  %v3331_v47 = vsel %vm399_vm8, %v3303_v34, 0.0  ;;  %v3320_v63 = vrot.slane %v3319_v16, 2  ;;  %v7924_v34 = vpop.permute.xlu0 %3475 }
 0xef2   :  { %v3332_v57 = vrot.slane %v3331_v47, 4  ;;  %v3307_v42 = vmul.f32 %v6406_v1, %v7843_v4  ;;  %v3266_v51 = vpop.xlane.xlu1 %3265 }
 0xef3   :  { %6407 = vrcp.f32 %v3266_v51  ;;  %v3321_v35 = vadd.f32 %v3320_v63, %v3319_v16 }
 0xef4   :  { %v3359_v56 = vsel %vm399_vm8, %v3307_v42, 0.0  ;;  %v3333_v0 = vadd.f32 %v3332_v57, %v3331_v47 }
 0xef5   :  { %v3360_v59 = vrot.slane %v3359_v56, 4  ;;  %v3322_v14 = vrot.slane %v3321_v35, 1 }
 0xef6   :  { %v3334_v37 = vrot.slane %v3333_v0, 2 }
 0xef7   :  { %v3323_v52 = vadd.f32 %v3322_v14, %v3321_v35  ;;  %v3361_v22 = vadd.f32 %v3360_v59, %v3359_v56 }
 0xef8   :  { %v3335_v39 = vadd.f32 %v3334_v37, %v3333_v0 }
 0xef9   :  { %v6408_v18 = vpop.eup %6407  ;;  %3433 = vperm.xlu2 %6241, %v3323_v52   ;;  %v3362_v15 = vrot.slane %v3361_v22, 2 }
 0xefa   :  { %v3310_v32 = vmul.f32 %v6408_v18, %v7854_v48  ;;  %v3336_v1 = vrot.slane %v3335_v39, 1 }
 0xefb   :  { %v3363_v4 = vadd.f32 %v3362_v15, %v3361_v22 }
 0xefc   :  { %v3380_v51 = vsel %vm399_vm8, %v3310_v32, 0.0  ;;  %v3337_v16 = vadd.f32 %v3336_v1, %v3335_v39 }
 0xefd   :  { %v3381_v63 = vrot.slane %v3380_v51, 4  ;;  %v3364_v57 = vrot.slane %v3363_v4, 1 }
 0xefe   :  { %3445 = vperm.xlu0 %6240, %v3337_v16  }
 0xeff   :  { %v3365_v47 = vadd.f32 %v3364_v57, %v3363_v4  ;;  %v3382_v42 = vadd.f32 %v3381_v63, %v3380_v51 }
 0xf01   :  { %3469 = vperm.xlu2 %6241, %v3365_v47   ;;  %v3383_v37 = vrot.slane %v3382_v42, 2 }
 0xf02   :  { %v3275_v14 = vpop.xlane.xlu1 %3274 }
 0xf03   :  { %6409 = vrcp.f32 %v3275_v14  ;;  %v3269_v35 = vpop.xlane.xlu0 %3268  ;;  %v3384_v56 = vadd.f32 %v3383_v37, %v3382_v42 }
 0xf04   :  { %6411 = vrcp.f32 %v3269_v35 }
 0xf05   :  { %v3385_v0 = vrot.slane %v3384_v56, 1  ;;  %6413 = vrcp.f32 %v7750_v41 }
 0xf06   :  { %6415 = vrcp.f32 %v7852_v60 }
 0xf07   :  { %v3386_v59 = vadd.f32 %v3385_v0, %v3384_v56 }
 0xf09   :  { %v6410_v48 = vpop.eup %6409  ;;  %3487 = vperm.xlu2 %6241, %v3386_v59  }
 0xf0a   :  { %v6412_v52 = vpop.eup %6411  ;;  %v3313_v15 = vmul.f32 %v6410_v48, %v7862_v46 }
 0xf0b   :  { %v3311_v32 = vmul.f32 %v6412_v52, %v7864_v30  ;;  %v6414_v16 = vpop.eup %6413 }
 0xf0c   :  { %v3401_v22 = vsel %vm399_vm8, %v3313_v15, 0.0  ;;  %v2387_v41 = vmul.f32 %v6414_v16, %v7655_v8  ;;  %v6416_v35 = vpop.eup %6415 }
 0xf0d   :  { %v3402_v39 = vrot.slane %v3401_v22, 4  ;;  %v3387_v18 = vsel %vm399_vm8, %v3311_v32, 0.0  ;;  %v2390_v8 = vmul.f32 %v6416_v35, %v7753_v11 }
 0xf0e   :  { %v3388_v1 = vrot.slane %v3387_v18, 4  ;;  %v2439_v56 = vsel %vm399_vm8, %v2387_v41, 0.0 }
 0xf0f   :  { %v3403_v4 = vadd.f32 %v3402_v39, %v3401_v22  ;;  %v2440_v52 = vrot.slane %v2439_v56, 4 }
 0xf10   :  { %v3389_v51 = vadd.f32 %v3388_v1, %v3387_v18 }
 0xf11   :  { %v3404_v63 = vrot.slane %v3403_v4, 2  ;;  %v3278_v57 = vpop.xlane.xlu0 %3277  ;;  %v2441_v18 = vadd.f32 %v2440_v52, %v2439_v56 }
 0xf12   :  { %v3390_v47 = vrot.slane %v3389_v51, 2  ;;  %6417 = vrcp.f32 %v3278_v57 }
 0xf13   :  { %v3405_v46 = vadd.f32 %v3404_v63, %v3403_v4  ;;  %6419 = vrcp.f32 %v7894_v54  ;;  %v7944_v4 = vpop.permute.xlu2 %3451  ;;  %v2442_v57 = vrot.slane %v2441_v18, 2 }
 0xf14   :  { %v3391_v42 = vadd.f32 %v3390_v47, %v3389_v51  ;;  %6421 = vrcp.f32 %v7871_v44 }
 0xf15   :  { %v3406_v30 = vrot.slane %v3405_v46, 1  ;;  %6423 = vrcp.f32 %v7901_v17  ;;  %v2443_v35 = vadd.f32 %v2442_v57, %v2441_v18 }
 0xf16   :  { %v3392_v14 = vrot.slane %v3391_v42, 1 }
 0xf17   :  { %v3407_v37 = vadd.f32 %v3406_v30, %v3405_v46  ;;  %v2444_v52 = vrot.slane %v2443_v35, 1 }
 0xf18   :  { %v3393_v0 = vadd.f32 %v3392_v14, %v3391_v42  ;;  %v6418_v59 = vpop.eup %6417 }
 0xf19   :  { %3505 = vperm.xlu2 %6241, %v3407_v37   ;;  %v3314_v60 = vmul.f32 %v6418_v59, %v7873_v49  ;;  %v6420_v48 = vpop.eup %6419  ;;  %v2460_v49 = vsel %vm399_vm8, %v2390_v8, 0.0  ;;  %v2445_v18 = vadd.f32 %v2444_v52, %v2443_v35 }
 0xf1a   :  { %3493 = vperm.xlu0 %6240, %v3393_v0   ;;  %v2389_v22 = vmul.f32 %v6420_v48, %v7809_v43  ;;  %v6422_v1 = vpop.eup %6421  ;;  %v2461_v17 = vrot.slane %v2460_v49, 4 }
 0xf1b   :  { %v3408_v54 = vsel %vm399_vm8, %v3314_v60, 0.0  ;;  %v3284_v15 = vpop.xlane.xlu1 %3283  ;;  %v6424_v44 = vpop.eup %6423  ;;  %v2393_v47 = vmul.f32 %v6422_v1, %v7768_v25 }
 0xf1c   :  { %v3409_v32 = vrot.slane %v3408_v54, 4  ;;  %6425 = vrcp.f32 %v3284_v15  ;;  %v2453_v11 = vsel %vm399_vm8, %v2389_v22, 0.0  ;;  %v2392_v42 = vmul.f32 %v6424_v44, %v7818_v31 }
 0xf1d   :  { %6427 = vrcp.f32 %v7879_v62  ;;  %v2454_v46 = vrot.slane %v2453_v11, 4  ;;  %v2462_v56 = vadd.f32 %v2461_v17, %v2460_v49  ;;  %v2481_v62 = vsel %vm399_vm8, %v2393_v47, 0.0 }
 0xf1e   :  { %v3410_v39 = vadd.f32 %v3409_v32, %v3408_v54  ;;  %6429 = vrcp.f32 %v7908_v9  ;;  %v2482_v48 = vrot.slane %v2481_v62, 4 }
 0xf1f   :  { %v2455_v60 = vadd.f32 %v2454_v46, %v2453_v11  ;;  %v2463_v8 = vrot.slane %v2462_v56, 2 }
 0xf20   :  { %v3411_v51 = vrot.slane %v3410_v39, 2 }
 0xf21   :  { %v2456_v22 = vrot.slane %v2455_v60, 2  ;;  %v2464_v1 = vadd.f32 %v2463_v8, %v2462_v56 }
 0xf22   :  { %v6426_v16 = vpop.eup %6425  ;;  %v3412_v63 = vadd.f32 %v3411_v51, %v3410_v39  ;;  %v2483_v51 = vadd.f32 %v2482_v48, %v2481_v62 }
 0xf23   :  { %v3316_v43 = vmul.f32 %v6426_v16, %v7881_v7  ;;  %v6428_v0 = vpop.eup %6427  ;;  %v2474_v7 = vsel %vm399_vm8, %v2392_v42, 0.0 }
 0xf24   :  { %v3413_v41 = vrot.slane %v3412_v63, 1  ;;  %v6430_v9 = vpop.eup %6429  ;;  %v2396_v54 = vmul.f32 %v6428_v0, %v7791_v24  ;;  %v2475_v15 = vrot.slane %v2474_v7, 4 }
 0xf25   :  { %v3422_v30 = vsel %vm399_vm8, %v3316_v43, 0.0  ;;  %v2395_v39 = vmul.f32 %v6430_v9, %v7829_v53  ;;  %v2465_v53 = vrot.slane %v2464_v1, 1 }
 0xf26   :  { %v3423_v14 = vrot.slane %v3422_v30, 4  ;;  %v3414_v37 = vadd.f32 %v3413_v41, %v3412_v63  ;;  %v2502_v11 = vsel %vm399_vm8, %v2396_v54, 0.0  ;;  %v2457_v63 = vadd.f32 %v2456_v22, %v2455_v60 }
 0xf27   :  { %v2476_v57 = vadd.f32 %v2475_v15, %v2474_v7  ;;  %v2495_v24 = vsel %vm399_vm8, %v2395_v39, 0.0  ;;  %v2503_v47 = vrot.slane %v2502_v11, 4  ;;  %v2484_v41 = vrot.slane %v2483_v51, 2 }
 0xf28   :  { %v3254_v59 = vpop.xlane.xlu2 %3253  ;;  %3511 = vperm.xlu0 %6240, %v3414_v37   ;;  %v3424_v25 = vadd.f32 %v3423_v14, %v3422_v30  ;;  %v2496_v30 = vrot.slane %v2495_v24, 4  ;;  %v2458_v14 = vrot.slane %v2457_v63, 1 }
 0xf29   :  { %6431 = vrcp.f32 %v3254_v59  ;;  %v2477_v37 = vrot.slane %v2476_v57, 2  ;;  %v2485_v56 = vadd.f32 %v2484_v41, %v2483_v51  ;;  %v2504_v62 = vadd.f32 %v2503_v47, %v2502_v11 }
 0xf2a   :  { %v3425_v31 = vrot.slane %v3424_v25, 2  ;;  %v2459_v59 = vadd.f32 %v2458_v14, %v2457_v63  ;;  %v2497_v60 = vadd.f32 %v2496_v30, %v2495_v24 }
 0xf2b   :  { %v2486_v52 = vrot.slane %v2485_v56, 1 }
 0xf2c   :  { %v3426_v32 = vadd.f32 %v3425_v31, %v3424_v25  ;;  %v2478_v25 = vadd.f32 %v2477_v37, %v2476_v57  ;;  %v2505_v31 = vrot.slane %v2504_v62, 2 }
 0xf2e   :  { %v3427_v49 = vrot.slane %v3426_v32, 1  ;;  %v2479_v15 = vrot.slane %v2478_v25, 1 }
 0xf2f   :  { %v6432_v44 = vpop.eup %6431 }
 0xf30   :  { %v3306_v16 = vmul.f32 %v6432_v44, %v7887_v38  ;;  %2549 = vperm.xlu0 %6240, %v2445_v18   ;;  %v3428_v17 = vadd.f32 %v3427_v49, %v3426_v32  ;;  %v2466_v38 = vadd.f32 %v2465_v53, %v2464_v1  ;;  %v2498_v32 = vrot.slane %v2497_v60, 2 }
 0xf31   :  { %v2487_v18 = vadd.f32 %v2486_v52, %v2485_v56  ;;  %v2506_v49 = vadd.f32 %v2505_v31, %v2504_v62  ;;  %v2480_v51 = vadd.f32 %v2479_v15, %v2478_v25 }
 0xf32   :  { %v3352_v43 = vsel %vm399_vm8, %v3306_v16, 0.0  ;;  %v3263_v46 = vpop.xlane.xlu2 %3262  ;;  %3523 = vperm.xlu2 %6241, %v3428_v17   ;;  %v2499_v44 = vadd.f32 %v2498_v32, %v2497_v60 }
 0xf33   :  { %v3353_v42 = vrot.slane %v3352_v43, 4  ;;  %6433 = vrcp.f32 %v3263_v46 }
 0xf34   :  { %v2500_v63 = vrot.slane %v2499_v44, 1 }
 0xf35   :  { %v3354_v35 = vadd.f32 %v3353_v42, %v3352_v43 }
 0xf36   :  { %v2501_v43 = vadd.f32 %v2500_v63, %v2499_v44 }
 0xf37   :  { %v3355_v0 = vrot.slane %v3354_v35, 2 }
 0xf38   :  { %2567 = vperm.xlu0 %6240, %v2466_v38  }
 0xf39   :  { %v6434_v7 = vpop.eup %6433  ;;  %v3356_v9 = vadd.f32 %v3355_v0, %v3354_v35 }
 0xf3a   :  { %v3309_v48 = vmul.f32 %v6434_v7, %v7896_v33  ;;  %2561 = vperm.xlu2 %6241, %v2459_v59   ;;  %v2507_v33 = vrot.slane %v2506_v49, 1 }
 0xf3b   :  { %v3357_v8 = vrot.slane %v3356_v9, 1 }
 0xf3c   :  { %v3373_v54 = vsel %vm399_vm8, %v3309_v48, 0.0  ;;  %v2508_v24 = vadd.f32 %v2507_v33, %v2506_v49 }
 0xf3d   :  { %v3374_v22 = vrot.slane %v3373_v54, 4  ;;  %v3358_v39 = vadd.f32 %v3357_v8, %v3356_v9 }
 0xf3f   :  { %3463 = vperm.xlu1 %6242, %v3358_v39   ;;  %v3375_v1 = vadd.f32 %v3374_v22, %v3373_v54 }
 0xf40   :  { %2585 = vperm.xlu0 %6240, %v2487_v18  }
 0xf41   :  { %v3376_v11 = vrot.slane %v3375_v1, 2 }
 0xf42   :  { %v3272_v16 = vpop.xlane.xlu2 %3271  ;;  %2579 = vperm.xlu2 %6241, %v2480_v51  }
 0xf43   :  { %6435 = vrcp.f32 %v3272_v16  ;;  %v3377_v17 = vadd.f32 %v3376_v11, %v3375_v1 }
 0xf44   :  { %6437 = vrcp.f32 %v7622_v36 }
 0xf45   :  { %v3378_v57 = vrot.slane %v3377_v17, 1  ;;  %6439 = vrcp.f32 %v7860_v10 }
 0xf47   :  { %v3379_v47 = vadd.f32 %v3378_v57, %v3377_v17 }
 0xf48   :  { %2603 = vperm.xlu0 %6240, %v2508_v24  }
 0xf49   :  { %v6436_v46 = vpop.eup %6435  ;;  %3481 = vperm.xlu1 %6242, %v3379_v47  }
 0xf4a   :  { %v3312_v53 = vmul.f32 %v6436_v46, %v7903_v40  ;;  %2597 = vperm.xlu2 %6241, %v2501_v43   ;;  %v6438_v14 = vpop.eup %6437 }
 0xf4b   :  { %v2388_v38 = vmul.f32 %v6438_v14, %v7562_v58  ;;  %v6440_v62 = vpop.eup %6439 }
 0xf4c   :  { %v3394_v41 = vsel %vm399_vm8, %v3312_v53, 0.0  ;;  %v2391_v60 = vmul.f32 %v6440_v62, %v7766_v45 }
 0xf4d   :  { %v3395_v42 = vrot.slane %v3394_v41, 4  ;;  %v2446_v0 = vsel %vm399_vm8, %v2388_v38, 0.0 }
 0xf4e   :  { %v2447_v10 = vrot.slane %v2446_v0, 4  ;;  %v2467_v52 = vsel %vm399_vm8, %v2391_v60, 0.0 }
 0xf4f   :  { %v3396_v30 = vadd.f32 %v3395_v42, %v3394_v41  ;;  %v8003_v42 = vld [vmem:[%s8928_s18] ss:$0 sm:$0xff] }
 0xf50   :  { %3927 = vrot.lane.b32.xlu0 %v7392_v23, %s6824_s17  ;;  %v2448_v48 = vadd.f32 %v2447_v10, %v2446_v0  ;;  %v8009_v14 = vadd.f32 %v8003_v42, %v7520_v21  ;;  %v8019_v38 = vadd.f32 %v8003_v42, %v7528_v27  ;;  %v1829_v0 = vld [vmem:[#allocation8] sm:$0xff] }
 0xf51   :  { %v3397_v37 = vrot.slane %v3396_v30, 2  ;;  %3771 = vmatpush.msra.mxu2 %v1829_v0  ;;  %v8939_v0 = vld [vmem:[#allocation49_spill] sm:$0xff] }
 0xf52   :  { %v3281_v35 = vpop.xlane.xlu2 %3280  ;;  %3779 = vrot.lane.b32.xlu2 %v7213_v61, %s6824_s17  ;;  %v2449_v15 = vrot.slane %v2448_v48, 2 }
 0xf53   :  { %6441 = vrcp.f32 %v3281_v35  ;;  %v3398_v40 = vadd.f32 %v3397_v37, %v3396_v30  ;;  %v8013_v35 = vadd.f32 %v8003_v42, %v7530_v28  ;;  %v8930_v28 = vld [vmem:[#allocation47_spill] sm:$0xff] }
 0xf54   :  { %6443 = vrcp.f32 %v7914_v12  ;;  %v2450_v39 = vadd.f32 %v2449_v15, %v2448_v48  ;;  %v8934_v48 = vld [vmem:[#allocation36_spill] sm:$0xff] }
 0xf55   :  { %v3399_v36 = vrot.slane %v3398_v40, 1  ;;  %8929 = vst [vmem:[#allocation67_spill] sm:$0xff] %v8013_v35 }
 0xf56   :  { %v2451_v51 = vrot.slane %v2450_v39, 1 }
 0xf57   :  { %v3400_v56 = vadd.f32 %v3399_v36, %v3398_v40  ;;  %v3440_v40 = vpop.permute.xlu1 %3439 }
 0xf58   :  { %v2452_v11 = vadd.f32 %v2451_v51, %v2450_v39  ;;  %v3526_v21 = vmul.f32 %v3440_v40, %v8019_v38 }
 0xf59   :  { %v6442_v59 = vpop.eup %6441  ;;  %3499 = vperm.xlu1 %6242, %v3400_v56  }
 0xf5a   :  { %v3315_v25 = vmul.f32 %v6442_v59, %v7910_v50  ;;  %3831 = vrot.lane.b32.xlu2 %v7348_v6, %s6824_s17  ;;  %v6444_v31 = vpop.eup %6443  ;;  %v2468_v50 = vrot.slane %v2467_v52, 4  ;;  %v3434_v22 = vpop.permute.xlu2 %3433  ;;  %v8028_v59 = vadd.f32 %v8003_v42, %v8930_v28  ;;  %v3549_v60 = vsel %vm3541_vm9, %v3526_v21, 0.0 }
 0xf5b   :  { %v2394_v32 = vmul.f32 %v6444_v31, %v7782_v19  ;;  %v3525_v36 = vmul.f32 %v3434_v22, %v8009_v14  ;;  %v8935_v31 = vld [vmem:[#allocation50_spill] sm:$0xff]  ;;  %v3550_v15 = vrot.slane %v3549_v60, 4  ;;  %v8066_v28 = vadd.f32 %v8003_v42, %v8939_v0 }
 0xf5c   :  { %v3415_v7 = vsel %vm399_vm8, %v3315_v25, 0.0  ;;  %v2469_v18 = vadd.f32 %v2468_v50, %v2467_v52  ;;  %8931 = vst [vmem:[#allocation47_spill] sm:$0xff] %v8028_v59  ;;  %v3528_v10 = vmul.f32 %v7944_v4, %v8028_v59  ;;  %v8936_v50 = vld [vmem:[#allocation66_spill] sm:$0xff]  ;;  %v8937_v4 = vld [vmem:[#allocation51_spill] sm:$0xff] }
 0xf5d   :  { %v3416_v58 = vrot.slane %v3415_v7, 4  ;;  %v2488_v49 = vsel %vm399_vm8, %v2394_v32, 0.0  ;;  %v3542_v25 = vsel %vm3541_vm9, %v3525_v36, 0.0  ;;  %v8049_v32 = vadd.f32 %v8003_v42, %v8937_v4  ;;  %8940 = vst [vmem:[#allocation50_spill] sm:$0xff] %v8066_v28 }
 0xf5e   :  { %v2489_v1 = vrot.slane %v2488_v49, 4  ;;  %v2470_v44 = vrot.slane %v2469_v18, 2 }
 0xf5f   :  { %v3417_v9 = vadd.f32 %v3416_v58, %v3415_v7  ;;  %v8932_v7 = vld [vmem:[#allocation48_spill] sm:$0xff] }
 0xf60   :  { %v2471_v16 = vadd.f32 %v2470_v44, %v2469_v18  ;;  %v2490_v33 = vadd.f32 %v2489_v1, %v2488_v49  ;;  %v8037_v58 = vadd.f32 %v8003_v42, %v8932_v7  ;;  %v3532_v18 = vmul.f32 %v7924_v34, %v8049_v32 }
 0xf61   :  { %v3418_v8 = vrot.slane %v3417_v9, 2  ;;  %v3551_v44 = vadd.f32 %v3550_v15, %v3549_v60  ;;  %v8941_v60 = vld [vmem:[#allocation42_spill] sm:$0xff] }
 0xf62   :  { %3903 = vrot.lane.b32.xlu2 %v7381_v20, %s6824_s17  ;;  %v3470_v17 = vpop.permute.xlu2 %3469  ;;  %v2472_v19 = vrot.slane %v2471_v16, 1  ;;  %v2491_v63 = vrot.slane %v2490_v33, 2  ;;  %8933 = vst [vmem:[#allocation48_spill] sm:$0xff] %v8037_v58 }
 0xf63   :  { %v3419_v54 = vadd.f32 %v3418_v8, %v3417_v9  ;;  %v3543_v9 = vrot.slane %v3542_v25, 4  ;;  %v8043_v8 = vadd.f32 %v8003_v42, %v8935_v31 }
 0xf64   :  { %v2473_v57 = vadd.f32 %v2472_v19, %v2471_v16  ;;  %v2492_v24 = vadd.f32 %v2491_v63, %v2490_v33  ;;  %v8938_v33 = vld [vmem:[#allocation41_spill] sm:$0xff]  ;;  %v3591_v63 = vsel %vm3541_vm9, %v3532_v18, 0.0 }
 0xf65   :  { %v3420_v12 = vrot.slane %v3419_v54, 1  ;;  %v3531_v39 = vmul.f32 %v3470_v17, %v8043_v8  ;;  %v3552_v17 = vrot.slane %v3551_v44, 2  ;;  %v3592_v34 = vrot.slane %v3591_v63, 4 }
 0xf66   :  { %v2493_v43 = vrot.slane %v2492_v24, 1 }
 0xf67   :  { %v3421_v45 = vadd.f32 %v3420_v12, %v3419_v54  ;;  %v3529_v54 = vmul.f32 %v8936_v50, %v8037_v58  ;;  %v3563_v12 = vsel %vm3541_vm9, %v3528_v10, 0.0  ;;  %v3584_v16 = vsel %vm3541_vm9, %v3531_v39, 0.0 }
 0xf68   :  { %v2494_v46 = vadd.f32 %v2493_v43, %v2492_v24  ;;  %v3564_v51 = vrot.slane %v3563_v12, 4  ;;  %v3585_v43 = vrot.slane %v3584_v16, 4  ;;  %v3553_v21 = vadd.f32 %v3552_v17, %v3551_v44 }
 0xf69   :  { %3517 = vperm.xlu1 %6242, %v3421_v45   ;;  %v3544_v45 = vadd.f32 %v3543_v9, %v3542_v25  ;;  %v3570_v1 = vsel %vm3541_vm9, %v3529_v54, 0.0 }
 0xf6a   :  { %3951 = vrot.lane.b32.xlu2 %v7403_v26, %s6824_s17  ;;  %v7988_v47 = vpop.permute.xlu2 %3487  ;;  %v3571_v19 = vrot.slane %v3570_v1, 4  ;;  %v3565_v24 = vadd.f32 %v3564_v51, %v3563_v12  ;;  %v3586_v25 = vadd.f32 %v3585_v43, %v3584_v16  ;;  %v3554_v54 = vrot.slane %v3553_v21, 1 }
 0xf6c   :  { %v3572_v40 = vadd.f32 %v3571_v19, %v3570_v1  ;;  %v3587_v15 = vrot.slane %v3586_v25, 2  ;;  %v8942_v19 = vld [vmem:[#allocation61_spill] sm:$0xff] }
 0xf6e   :  { %v3573_v9 = vrot.slane %v3572_v40, 2 }
 0xf70   :  { %v3446_v37 = vpop.permute.xlu0 %3445  ;;  %v3574_v1 = vadd.f32 %v3573_v9, %v3572_v40 }
 0xf71   :  { %2555 = vperm.xlu1 %6242, %v2452_v11   ;;  %v3527_v56 = vmul.f32 %v3446_v37, %v8013_v35  ;;  %v3545_v11 = vrot.slane %v3544_v45, 2 }
 0xf72   :  { %3975 = vrot.lane.b32.xlu2 %v7228_v29, %s6824_s17 }
 0xf73   :  { %v7994_v53 = vpop.permute.xlu2 %3505  ;;  %v3556_v27 = vsel %vm3541_vm9, %v3527_v56, 0.0  ;;  %v3546_v37 = vadd.f32 %v3545_v11, %v3544_v45  ;;  %v3566_v56 = vrot.slane %v3565_v24, 2  ;;  %v3555_v11 = vadd.f32 %v3554_v54, %v3553_v21  ;;  %v8945_v54 = vld [vmem:[#allocation52_spill] sm:$0xff] }
 0xf74   :  { %v3557_v52 = vrot.slane %v3556_v27, 4 }
 0xf75   :  { %v3547_v10 = vrot.slane %v3546_v37, 1  ;;  %v3567_v50 = vadd.f32 %v3566_v56, %v3565_v24 }
 0xf76   :  { %v3558_v49 = vadd.f32 %v3557_v52, %v3556_v27  ;;  %v3593_v27 = vadd.f32 %v3592_v34, %v3591_v63  ;;  %v2606_v63 = vmul.f32 %v8942_v19, %v8019_v38  ;;  %v8943_v34 = vld [vmem:[#allocation43_spill] sm:$0xff] }
 0xf77   :  { %v3548_v39 = vadd.f32 %v3547_v10, %v3546_v37  ;;  %v3568_v44 = vrot.slane %v3567_v50, 1  ;;  %v3575_v37 = vrot.slane %v3574_v1, 1 }
 0xf78   :  { %v3594_v45 = vrot.slane %v3593_v27, 2  ;;  %v2628_v10 = vsel %vm399_vm8, %v2606_v63, 0.0 }
 0xf79   :  { %2573 = vperm.xlu1 %6242, %v2473_v57   ;;  %v3559_v57 = vrot.slane %v3558_v49, 2  ;;  %v3671_v17 = vsel %vm3670_vm13, %v3555_v11, %v3548_v39  ;;  %v3569_v21 = vadd.f32 %v3568_v44, %v3567_v50 }
 0xf7a   :  { %4099 = vrot.lane.b32.xlu2 %v7476_v55, %s6824_s17  ;;  %v3595_v24 = vadd.f32 %v3594_v45, %v3593_v27  ;;  %v3576_v45 = vadd.f32 %v3575_v37, %v3574_v1 }
 0xf7b   :  { %v3560_v36 = vadd.f32 %v3559_v57, %v3558_v49  ;;  %v3588_v57 = vadd.f32 %v3587_v15, %v3586_v25  ;;  %v8087_v15 = vadd.f32 %v8003_v42, %v8945_v54 }
 0xf7c   :  { %v3596_v27 = vrot.slane %v3595_v24, 1 }
 0xf7d   :  { %v3561_v52 = vrot.slane %v3560_v36, 1  ;;  %v3589_v25 = vrot.slane %v3588_v57, 1 }
 0xf7e   :  { %v3597_v63 = vadd.f32 %v3596_v27, %v3595_v24  ;;  %v8950_v27 = vld [vmem:[#allocation56_spill] sm:$0xff] }
 0xf7f   :  { %v3562_v51 = vadd.f32 %v3561_v52, %v3560_v36  ;;  %v8944_v36 = vld [vmem:[#allocation60_spill] sm:$0xff]  ;;  %v3590_v11 = vadd.f32 %v3589_v25, %v3588_v57 }
 0xf80   :  { %v2605_v56 = vmul.f32 %v8944_v36, %v8009_v14  ;;  %v8948_v36 = vld [vmem:[#allocation64_spill] sm:$0xff] }
 0xf81   :  { %2591 = vperm.xlu1 %6242, %v2494_v46   ;;  %v3673_v40 = vsel %vm3672_vm14, %v3562_v51, %v3671_v17  ;;  %v2629_v51 = vrot.slane %v2628_v10, 4 }
 0xf82   :  { %4147 = vrot.lane.b32.xlu2 %v7496_v2, %s6824_s17 }
 0xf83   :  { %v2630_v25 = vadd.f32 %v2629_v51, %v2628_v10  ;;  %v8951_v51 = vld [vmem:[#allocation55_spill] sm:$0xff] }
 0xf89   :  { %3781 = vrot.lane.b32.xlu1 %v7328_v3, %s6824_s17 }
 0xf8c   :  { %v7998_v41 = vpop.permute.xlu2 %3523  ;;  %v3494_v18 = vpop.permute.xlu0 %3493 }
 0xf91   :  { %3807 = vrot.lane.b32.xlu1 %v7337_v5, %s6824_s17 }
 0xf94   :  { %v8005_v30 = vpop.permute.xlu2 %2561 }
 0xf99   :  { %3855 = vrot.lane.b32.xlu1 %v7359_v13, %s6824_s17 }
 0xf9a   :  { %v3512_v9 = vpop.permute.xlu0 %3511 }
 0xf9c   :  { %v8024_v62 = vpop.permute.xlu2 %2579 }
 0xfa1   :  { %3879 = vrot.lane.b32.xlu1 %v8934_v48, %s6824_s17 }
 0xfa4   :  { %v8052_v22 = vpop.permute.xlu2 %2597 }
 0xfa9   :  { %4027 = vrot.lane.b32.xlu1 %v8938_v33, %s6824_s17 }
 0xfac   :  { %v8062_v46 = vpop.permute.xlu2 %3779 }
 0xfb1   :  { %4051 = vrot.lane.b32.xlu1 %v8941_v60, %s6824_s17  ;;  %v3464_v7 = vpop.permute.xlu1 %3463 }
 0xfb2   :  { %v3530_v31 = vmul.f32 %v3464_v7, %v8066_v28 }
 0xfb4   :  { %v3577_v4 = vsel %vm3541_vm9, %v3530_v31, 0.0  ;;  %v8072_v12 = vpop.permute.xlu2 %3831  ;;  %v3675_v31 = vsel %vm3674_vm15, %v3569_v21, %v3673_v40 }
 0xfb5   :  { %v3578_v49 = vrot.slane %v3577_v4, 4 }
 0xfb7   :  { %v3579_v16 = vadd.f32 %v3578_v49, %v3577_v4  ;;  %v8946_v4 = vld [vmem:[#allocation53_spill] sm:$0xff]  ;;  %v2621_v49 = vsel %vm399_vm8, %v2605_v56, 0.0  ;;  %v2607_v56 = vmul.f32 %v8948_v36, %v8013_v35  ;;  %v8956_v35 = vld [vmem:[#allocation58_spill] sm:$0xff] }
 0xfb8   :  { %v8091_v50 = vadd.f32 %v8003_v42, %v8946_v4  ;;  %v2622_v40 = vrot.slane %v2621_v49, 4 }
 0xfb9   :  { %v3580_v43 = vrot.slane %v3579_v16, 2  ;;  %4075 = vrot.lane.b32.xlu1 %v8943_v34, %s6824_s17  ;;  %v2635_v4 = vsel %vm399_vm8, %v2607_v56, 0.0  ;;  %v8955_v56 = vld [vmem:[#allocation65_spill] sm:$0xff] }
 0xfba   :  { %v3534_v57 = vmul.f32 %v7988_v47, %v8091_v50  ;;  %v2623_v47 = vadd.f32 %v2622_v40, %v2621_v49  ;;  %v8954_v40 = vld [vmem:[#allocation59_spill] sm:$0xff] }
 0xfbb   :  { %v3581_v0 = vadd.f32 %v3580_v43, %v3579_v16  ;;  %v3482_v39 = vpop.permute.xlu1 %3481  ;;  %v3677_v16 = vsel %vm3676_vm1, %v3576_v45, %v3675_v31  ;;  %v8947_v43 = vld [vmem:[#allocation62_spill] sm:$0xff] }
 0xfbc   :  { %v3904_v7 = vpop.permute.xlu2 %3903  ;;  %v3533_v19 = vmul.f32 %v3482_v39, %v8087_v15  ;;  %v2608_v1 = vmul.f32 %v8947_v43, %v8028_v59  ;;  %v3605_v45 = vsel %vm3541_vm9, %v3534_v57, 0.0  ;;  %v2550_v39 = vpop.permute.xlu0 %2549  ;;  %v2636_v43 = vrot.slane %v2635_v4, 4 }
 0xfbd   :  { %v3582_v52 = vrot.slane %v3581_v0, 1  ;;  %6132 = vmatpush.xpose.msk.msrb.mxu2 %vm399_vm8, %v3904_v7  ;;  %v2624_v36 = vrot.slane %v2623_v47, 2  ;;  %v2609_v57 = vmul.f32 %v8955_v56, %v8037_v58 }
 0xfbe   :  { %v3598_v7 = vsel %vm3541_vm9, %v3533_v19, 0.0  ;;  %v2642_v31 = vsel %vm399_vm8, %v2608_v1, 0.0  ;;  %v3606_v1 = vrot.slane %v3605_v45, 4  ;;  %v2637_v33 = vadd.f32 %v2636_v43, %v2635_v4 }
 0xfbf   :  { %v3583_v44 = vadd.f32 %v3582_v52, %v3581_v0  ;;  %v8949_v0 = vld [vmem:[#allocation54_spill] sm:$0xff]  ;;  %v8113_v52 = vadd.f32 %v8003_v42, %v8950_v27  ;;  %v3599_v10 = vrot.slane %v3598_v7, 4  ;;  %v2643_v19 = vrot.slane %v2642_v31, 4 }
 0xfc0   :  { %v8107_v24 = vadd.f32 %v8003_v42, %v8949_v0 }
 0xfc1   :  { %v3679_v17 = vsel %vm3678_vm2, %v3583_v44, %v3677_v16  ;;  %v3537_v44 = vmul.f32 %v7994_v53, %v8113_v52  ;;  %v2631_v16 = vrot.slane %v2630_v25, 2  ;;  %v8134_v53 = vadd.f32 %v8003_v42, %v8954_v40 }
 0xfc2   :  { %v3681_v37 = vsel %vm3680_vm4, %v3590_v11, %v3679_v17  ;;  %v3535_v54 = vmul.f32 %v3494_v18, %v8107_v24  ;;  %v8123_v11 = vadd.f32 %v8003_v42, %v8951_v51  ;;  %v8953_v18 = vld [vmem:[#allocation57_spill] sm:$0xff]  ;;  %v3600_v51 = vadd.f32 %v3599_v10, %v3598_v7 }
 0xfc3   :  { %v3683_v21 = vsel %vm3682_vm3, %v3597_v63, %v3681_v37  ;;  %v8952_v63 = vld [vmem:[#allocation63_spill] sm:$0xff]  ;;  %v8129_v49 = vadd.f32 %v8003_v42, %v8953_v18  ;;  %v3626_v0 = vsel %vm3541_vm9, %v3537_v44, 0.0  ;;  %v2632_v18 = vadd.f32 %v2631_v16, %v2630_v25 }
 0xfc4   :  { %3691 = vrot.lane.b32.xlu0 %v3683_v21, %s6823_s13  ;;  %v2610_v17 = vmul.f32 %v8952_v63, %v8066_v28  ;;  %v3612_v37 = vsel %vm3541_vm9, %v3535_v54, 0.0  ;;  %v2644_v55 = vadd.f32 %v2643_v19, %v2642_v31  ;;  %v3607_v40 = vadd.f32 %v3606_v1, %v3605_v45  ;;  %v2568_v19 = vpop.permute.xlu0 %2567 }
 0xfc5   :  { %v3538_v27 = vmul.f32 %v3512_v9, %v8129_v49  ;;  %v3613_v34 = vrot.slane %v3612_v37, 4  ;;  %v3540_v60 = vmul.f32 %v7998_v41, %v8134_v53  ;;  %v3627_v29 = vrot.slane %v3626_v0, 4 }
 0xfc6   :  { %v2656_v54 = vsel %vm399_vm8, %v2610_v17, 0.0  ;;  %v2625_v44 = vadd.f32 %v2624_v36, %v2623_v47  ;;  %v2649_v9 = vsel %vm399_vm8, %v2609_v57, 0.0  ;;  %v3601_v10 = vrot.slane %v3600_v51, 2 }
 0xfc7   :  { %v3633_v7 = vsel %vm3541_vm9, %v3538_v27, 0.0  ;;  %v2633_v25 = vrot.slane %v2632_v18, 1  ;;  %v2657_v31 = vrot.slane %v2656_v54, 4  ;;  %v3614_v16 = vadd.f32 %v3613_v34, %v3612_v37 }
 0xfc8   :  { %v2645_v4 = vrot.slane %v2644_v55, 2  ;;  %v2638_v45 = vrot.slane %v2637_v33, 2  ;;  %v3608_v43 = vrot.slane %v3607_v40, 2  ;;  %v3647_v41 = vsel %vm3541_vm9, %v3540_v60, 0.0 }
 0xfc9   :  { %v2650_v1 = vrot.slane %v2649_v9, 4  ;;  %v2611_v47 = vmul.f32 %v2550_v39, %v8043_v8  ;;  %v2626_v36 = vrot.slane %v2625_v44, 1  ;;  %v3602_v57 = vadd.f32 %v3601_v10, %v3600_v51 }
 0xfca   :  { %v2658_v27 = vadd.f32 %v2657_v31, %v2656_v54  ;;  %v3615_v28 = vrot.slane %v3614_v16, 2  ;;  %v3648_v48 = vrot.slane %v3647_v41, 4  ;;  %v2634_v3 = vadd.f32 %v2633_v25, %v2632_v18 }
 0xfcb   :  { %v3500_v21 = vpop.permute.xlu1 %3499  ;;  %v2646_v34 = vadd.f32 %v2645_v4, %v2644_v55  ;;  %v2639_v37 = vadd.f32 %v2638_v45, %v2637_v33  ;;  %v2663_v60 = vsel %vm399_vm8, %v2611_v47, 0.0  ;;  %v2627_v26 = vadd.f32 %v2626_v36, %v2625_v44 }
 0xfcc   :  { %v3536_v63 = vmul.f32 %v3500_v21, %v8123_v11  ;;  %v3628_v21 = vadd.f32 %v3627_v29, %v3626_v0  ;;  %v3603_v29 = vrot.slane %v3602_v57, 1  ;;  %v8152_v39 = vadd.f32 %v8003_v42, %v8956_v35  ;;  %v2586_v4 = vpop.permute.xlu0 %2585 }
 0xfcd   :  { %v2659_v51 = vrot.slane %v2658_v27, 2  ;;  %v3616_v54 = vadd.f32 %v3615_v28, %v3614_v16  ;;  %v3649_v10 = vadd.f32 %v3648_v48, %v3647_v41  ;;  %v3738_v18 = vsel %vm3670_vm13, %v2634_v3, %v2627_v26 }
 0xfce   :  { %v3619_v56 = vsel %vm3541_vm9, %v3536_v63, 0.0  ;;  %v3634_v63 = vrot.slane %v3633_v7, 4  ;;  %v3629_v2 = vrot.slane %v3628_v21, 2  ;;  %v2640_v55 = vrot.slane %v2639_v37, 1 }
 0xfcf   :  { %v3620_v20 = vrot.slane %v3619_v56, 4  ;;  %v8157_v35 = vadd.f32 %v2659_v51, %v2658_v27  ;;  %v3617_v48 = vrot.slane %v3616_v54, 1  ;;  %v3650_v28 = vrot.slane %v3649_v10, 2 }
 0xfd0   :  { %v3635_v59 = vadd.f32 %v3634_v63, %v3633_v7  ;;  %v3630_v7 = vadd.f32 %v3629_v2, %v3628_v21  ;;  %v2613_v3 = vmul.f32 %v8005_v30, %v8087_v15  ;;  %v2641_v26 = vadd.f32 %v2640_v55, %v2639_v37 }
 0xfd1   :  { %v3621_v17 = vadd.f32 %v3620_v20, %v3619_v56  ;;  %v3609_v20 = vadd.f32 %v3608_v43, %v3607_v40  ;;  %v2651_v56 = vadd.f32 %v2650_v1, %v2649_v9  ;;  %v2664_v40 = vrot.slane %v2663_v60, 4 }
 0xfd2   :  { %v2647_v9 = vrot.slane %v2646_v34, 1  ;;  %v3636_v31 = vrot.slane %v3635_v59, 2  ;;  %v3631_v21 = vrot.slane %v3630_v7, 1  ;;  %v3618_v27 = vadd.f32 %v3617_v48, %v3616_v54 }
 0xfd3   :  { %v3622_v58 = vrot.slane %v3621_v17, 2  ;;  %v3610_v33 = vrot.slane %v3609_v20, 1  ;;  %v2652_v25 = vrot.slane %v2651_v56, 2  ;;  %v2665_v43 = vadd.f32 %v2664_v40, %v2663_v60 }
 0xfd4   :  { %v2648_v41 = vadd.f32 %v2647_v9, %v2646_v34  ;;  %v3637_v63 = vadd.f32 %v3636_v31, %v3635_v59  ;;  %v2677_v51 = vsel %vm399_vm8, %v2613_v3, 0.0  ;;  %v2661_v37 = vrot.slane %v8157_v35, 1 }
 0xfd5   :  { %v3623_v0 = vadd.f32 %v3622_v58, %v3621_v17  ;;  %v2614_v58 = vmul.f32 %v2568_v19, %v8091_v50  ;;  %v3604_v17 = vadd.f32 %v3603_v29, %v3602_v57  ;;  %v3611_v16 = vadd.f32 %v3610_v33, %v3609_v20 }
 0xfd6   :  { %v2653_v1 = vadd.f32 %v2652_v25, %v2651_v56  ;;  %v3651_v29 = vadd.f32 %v3650_v28, %v3649_v10  ;;  %v3739_v20 = vsel %vm3672_vm14, %v2641_v26, %v3738_v18  ;;  %v2616_v34 = vmul.f32 %v8024_v62, %v8123_v11 }
 0xfd7   :  { %v3624_v45 = vrot.slane %v3623_v0, 1  ;;  %v2684_v47 = vsel %vm399_vm8, %v2614_v58, 0.0  ;;  %v3684_v36 = vsel %vm3670_vm13, %v3611_v16, %v3604_v17  ;;  %v2666_v56 = vrot.slane %v2665_v43, 2 }
 0xfd8   :  { %v2654_v60 = vrot.slane %v2653_v1, 1  ;;  %v2685_v59 = vrot.slane %v2684_v47, 4  ;;  %v3685_v40 = vsel %vm3672_vm14, %v3618_v27, %v3684_v36  ;;  %v3638_v54 = vrot.slane %v3637_v63, 1 }
 0xfd9   :  { %v3625_v57 = vadd.f32 %v3624_v45, %v3623_v0  ;;  %v2678_v0 = vrot.slane %v2677_v51, 4  ;;  %v3632_v25 = vadd.f32 %v3631_v21, %v3630_v7  ;;  %v3652_v31 = vrot.slane %v3651_v29, 1 }
 0xfda   :  { %v2617_v18 = vmul.f32 %v2586_v4, %v8113_v52  ;;  %v2698_v62 = vsel %vm399_vm8, %v2616_v34, 0.0  ;;  %v2667_v17 = vadd.f32 %v2666_v56, %v2665_v43  ;;  %v2619_v45 = vmul.f32 %v8052_v22, %v8152_v39 }
 0xfdb   :  { %v3518_v44 = vpop.permute.xlu1 %3517  ;;  %v3686_v9 = vsel %vm3674_vm15, %v3625_v57, %v3685_v40  ;;  %v2686_v48 = vadd.f32 %v2685_v59, %v2684_v47  ;;  %v2655_v16 = vadd.f32 %v2654_v60, %v2653_v1  ;;  %v2679_v7 = vadd.f32 %v2678_v0, %v2677_v51 }
 0xfdc   :  { %v3539_v42 = vmul.f32 %v3518_v44, %v8152_v39  ;;  %v2604_v44 = vpop.permute.xlu0 %2603  ;;  %v3687_v26 = vsel %vm3676_vm1, %v3632_v25, %v3686_v9  ;;  %v2699_v21 = vrot.slane %v2698_v62, 4  ;;  %v3740_v57 = vsel %vm3674_vm15, %v2648_v41, %v3739_v20 }
 0xfdd   :  { %v2620_v4 = vmul.f32 %v2604_v44, %v8134_v53  ;;  %v2668_v22 = vrot.slane %v2667_v17, 1  ;;  %v3653_v27 = vadd.f32 %v3652_v31, %v3651_v29  ;;  %v2687_v34 = vrot.slane %v2686_v48, 2  ;;  %v1830_v44 = vld [vmem:[#allocation8 + $0x8] sm:$0xff] }
 0xfde   :  { %v3640_v2 = vsel %vm3541_vm9, %v3539_v42, 0.0  ;;  %v3741_v41 = vsel %vm3676_vm1, %v2655_v16, %v3740_v57  ;;  %v2680_v20 = vrot.slane %v2679_v7, 2  ;;  %v2700_v29 = vadd.f32 %v2699_v21, %v2698_v62  ;;  %3714 = vmatpush.msra.mxu1 %v1830_v44 }
 0xfdf   :  { %v3641_v19 = vrot.slane %v3640_v2, 4  ;;  %v2726_v60 = vsel %vm399_vm8, %v2620_v4, 0.0  ;;  %v2662_v40 = vadd.f32 %v2661_v37, %v8157_v35  ;;  %v2669_v0 = vadd.f32 %v2668_v22, %v2667_v17 }
 0xfe0   :  { %v2688_v9 = vadd.f32 %v2687_v34, %v2686_v48  ;;  %v2727_v25 = vrot.slane %v2726_v60, 4  ;;  %v2701_v62 = vrot.slane %v2700_v29, 2 }
 0xfe1   :  { %v3642_v30 = vadd.f32 %v3641_v19, %v3640_v2  ;;  %v3639_v2 = vadd.f32 %v3638_v54, %v3637_v63  ;;  %v2705_v19 = vsel %vm399_vm8, %v2617_v18, 0.0 }
 0xfe2   :  { %v2706_v51 = vrot.slane %v2705_v19, 4  ;;  %v2689_v37 = vrot.slane %v2688_v9, 1  ;;  %v2728_v17 = vadd.f32 %v2727_v25, %v2726_v60 }
 0xfe3   :  { %v3643_v55 = vrot.slane %v3642_v30, 2  ;;  %v2556_v33 = vpop.permute.xlu1 %2555  ;;  %v3688_v47 = vsel %vm3678_vm2, %v3639_v2, %v3687_v26 }
 0xfe4   :  { %v2612_v10 = vmul.f32 %v2556_v33, %v8049_v32 }
 0xfe5   :  { %v3644_v58 = vadd.f32 %v3643_v55, %v3642_v30  ;;  %v2719_v30 = vsel %vm399_vm8, %v2619_v45, 0.0  ;;  %v3742_v45 = vsel %vm3678_vm2, %v2662_v40, %v3741_v41 }
 0xfe6   :  { %v2670_v42 = vsel %vm399_vm8, %v2612_v10, 0.0  ;;  %v2720_v54 = vrot.slane %v2719_v30, 4  ;;  %v3743_v35 = vsel %vm3680_vm4, %v2669_v0, %v3742_v45 }
 0xfe7   :  { %v3645_v28 = vrot.slane %v3644_v58, 1  ;;  %v2671_v3 = vrot.slane %v2670_v42, 4 }
 0xfe8   :  { %v2721_v26 = vadd.f32 %v2720_v54, %v2719_v30 }
 0xfe9   :  { %v3646_v36 = vadd.f32 %v3645_v28, %v3644_v58  ;;  %v2672_v43 = vadd.f32 %v2671_v3, %v2670_v42  ;;  %v2707_v58 = vadd.f32 %v2706_v51, %v2705_v19  ;;  %v2681_v42 = vadd.f32 %v2680_v20, %v2679_v7 }
 0xfea   :  { %v2722_v57 = vrot.slane %v2721_v26, 2 }
 0xfeb   :  { %v2673_v56 = vrot.slane %v2672_v43, 2  ;;  %v2574_v1 = vpop.permute.xlu1 %2573  ;;  %v3689_v63 = vsel %vm3680_vm4, %v3646_v36, %v3688_v47  ;;  %v2708_v4 = vrot.slane %v2707_v58, 2  ;;  %v2682_v19 = vrot.slane %v2681_v42, 1 }
 0xfec   :  { %v2615_v59 = vmul.f32 %v2574_v1, %v8107_v24  ;;  %v3690_v55 = vsel %vm3682_vm3, %v3653_v27, %v3689_v63  ;;  %v2702_v36 = vadd.f32 %v2701_v62, %v2700_v29  ;;  %v2690_v27 = vadd.f32 %v2689_v37, %v2688_v9 }
 0xfed   :  { %v2674_v33 = vadd.f32 %v2673_v56, %v2672_v43  ;;  %3693 = vrot.lane.b32.xlu0 %v3690_v55, %s6823_s13  ;;  %v8957_v43 = vld [vmem:[#allocation40_spill] sm:$0xff]  ;;  %v2729_v47 = vrot.slane %v2728_v17, 2  ;;  %v2709_v56 = vadd.f32 %v2708_v4, %v2707_v58  ;;  %v2683_v1 = vadd.f32 %v2682_v19, %v2681_v42 }
 0xfee   :  { %v2691_v10 = vsel %vm399_vm8, %v2615_v59, 0.0  ;;  %v2703_v63 = vrot.slane %v2702_v36, 1  ;;  %v2723_v59 = vadd.f32 %v2722_v57, %v2721_v26 }
 0xfef   :  { %v2675_v31 = vrot.slane %v2674_v33, 1  ;;  %v2692_v18 = vrot.slane %v2691_v10, 4  ;;  %v3745_v55 = vsel %vm3670_vm13, %v2690_v27, %v2683_v1  ;;  %v2730_v41 = vadd.f32 %v2729_v47, %v2728_v17  ;;  %v3952_v17 = vpop.permute.xlu2 %3951 }
 0xff0   :  { %v2704_v0 = vadd.f32 %v2703_v63, %v2702_v36  ;;  %v2724_v9 = vrot.slane %v2723_v59, 1 }
 0xff1   :  { %v2676_v28 = vadd.f32 %v2675_v31, %v2674_v33  ;;  %v2693_v3 = vadd.f32 %v2692_v18, %v2691_v10  ;;  %v2710_v33 = vrot.slane %v2709_v56, 1  ;;  %v8958_v10 = vld [vmem:[#allocation39_spill] sm:$0xff]  ;;  %v2731_v25 = vrot.slane %v2730_v41, 1  ;;  %v3928_v31 = vpop.permute.xlu0 %3927 }
 0xff2   :  { %v2725_v42 = vadd.f32 %v2724_v9, %v2723_v59 }
 0xff3   :  { %v2694_v16 = vrot.slane %v2693_v3, 2  ;;  %v2592_v2 = vpop.permute.xlu1 %2591  ;;  %v3744_v48 = vsel %vm3682_vm3, %v2676_v28, %v3743_v35  ;;  %v2711_v58 = vadd.f32 %v2710_v33, %v2709_v56  ;;  %v8959_v35 = vld [vmem:[#allocation45_spill] sm:$0xff] }
 0xff4   :  { %v2618_v21 = vmul.f32 %v2592_v2, %v8129_v49  ;;  %6120 = vmatmul.msk.f32.vlgmr.msra.gmra.mxu2 %vm399_vm8, %v3744_v48 }
 0xff5   :  { %v2695_v7 = vadd.f32 %v2694_v16, %v2693_v3  ;;  %4003 = vrot.lane.b32.xlu0 %v8957_v43, %s6824_s17 }
 0xff6   :  { %v2712_v22 = vsel %vm399_vm8, %v2618_v21, 0.0 }
 0xff7   :  { %v2696_v30 = vrot.slane %v2695_v7, 1  ;;  %v2713_v34 = vrot.slane %v2712_v22, 4  ;;  %v3976_v2 = vpop.permute.xlu2 %3975 }
 0xff9   :  { %v2697_v51 = vadd.f32 %v2696_v30, %v2695_v7  ;;  %v2714_v60 = vadd.f32 %v2713_v34, %v2712_v22 }
 0xffb   :  { %v2715_v20 = vrot.slane %v2714_v60, 2  ;;  %v3782_v29 = vpop.permute.xlu1 %3781  ;;  %v3746_v40 = vsel %vm3672_vm14, %v2697_v51, %v3745_v55 }
 0xffc   :  { %6122 = vmatpush.xpose.msk.msrb.mxu3 %vm399_vm8, %v3782_v29  ;;  %v3747_v44 = vsel %vm3674_vm15, %v2704_v0, %v3746_v40 }
 0xffd   :  { %v2716_v54 = vadd.f32 %v2715_v20, %v2714_v60  ;;  %3977 = vrot.lane.b32.xlu0 %v8958_v10, %s6824_s17  ;;  %v3748_v62 = vsel %vm3676_vm1, %v2711_v58, %v3747_v44 }
 0xfff   :  { %v2717_v18 = vrot.slane %v2716_v54, 1  ;;  %6123 = vmatmul.msk.f32.vlgmr.msrb.gmra.mxu3 %vm399_vm8, %v8062_v46  ;;  %v4100_v4 = vpop.permute.xlu2 %4099 }
0x1000   :  { %6126 = vmatpush.xpose.msk.msra.mxu3 %vm399_vm8, %v8072_v12  ;;  %v2732_v12 = vadd.f32 %v2731_v25, %v2730_v41 }
0x1001   :  { %v2718_v45 = vadd.f32 %v2717_v18, %v2716_v54 }
0x1003   :  { %v3808_v28 = vpop.permute.xlu1 %3807  ;;  %v3749_v3 = vsel %vm3678_vm2, %v2718_v45, %v3748_v62 }
0x1004   :  { %6134 = vmatpush.xpose.msk.msrb.mxu3 %vm399_vm8, %v3928_v31  ;;  %6124 = vmatpush.xpose.msk.msra.mxu0 %vm399_vm8, %v3808_v28  ;;  %v3750_v26 = vsel %vm3680_vm4, %v2725_v42, %v3749_v3 }
0x1005   :  { %4123 = vrot.lane.b32.xlu0 %v8959_v35, %s6824_s17  ;;  %v3751_v37 = vsel %vm3682_vm3, %v2732_v12, %v3750_v26 }
0x1006   :  { %6121 = vmatmul.msk.f32.gmra.mxu2 %vm399_vm8, %v3751_v37 }
0x1007   :  { %6125 = vmatmul.msk.f32.vlgmr.msra.gmra.mxu0 %vm399_vm8, %v8062_v46  ;;  %6127 = vmatmul.msk.f32.vlgmr.msra.gmra.mxu3 %vm399_vm8, %v8062_v46  ;;  %v4148_v36 = vpop.permute.xlu2 %4147 }
0x100b   :  { %v3856_v16 = vpop.permute.xlu1 %3855 }
0x100c   :  { %6128 = vmatpush.xpose.msk.msrb.mxu0 %vm399_vm8, %v3856_v16 }
0x100e   :  { %6133 = vmatmul.msk.f32.vlgmr.msrb.gmra.mxu2 %vm399_vm8, %v8062_v46 }
0x100f   :  { %6129 = vmatmul.msk.f32.vlgmr.msrb.gmra.mxu0 %vm399_vm8, %v8062_v46  ;;  %6135 = vmatmul.msk.f32.vlgmr.msrb.gmra.mxu3 %vm399_vm8, %v8062_v46 }
0x1010   :  { %6136 = vmatpush.xpose.msk.msra.mxu0 %vm399_vm8, %v3952_v17 }
0x1013   :  { %v3880_v48 = vpop.permute.xlu1 %3879 }
0x1014   :  { %6130 = vmatpush.xpose.msk.msrb.mxu1 %vm399_vm8, %v3880_v48 }
0x1017   :  { %6137 = vmatmul.msk.f32.vlgmr.msra.gmra.mxu0 %vm399_vm8, %v8062_v46 }
0x101b   :  { %v4028_v21 = vpop.permute.xlu1 %4027 }
0x101c   :  { %6142 = vmatpush.xpose.msk.msra.mxu3 %vm399_vm8, %v4028_v21 }
0x101f   :  { %6143 = vmatmul.msk.f32.vlgmr.msra.gmra.mxu3 %vm399_vm8, %v3976_v2 }
0x1023   :  { %v4052_v19 = vpop.permute.xlu1 %4051 }
0x1024   :  { %6144 = vmatpush.xpose.msk.msrb.mxu0 %vm399_vm8, %v4052_v19 }
0x1027   :  { %6145 = vmatmul.msk.f32.vlgmr.msrb.gmra.mxu0 %vm399_vm8, %v3976_v2 }
0x1028   :  { %6152 = vmatpush.xpose.msk.msra.mxu0 %vm399_vm8, %v4148_v36 }
0x102b   :  { %v4076_v47 = vpop.permute.xlu1 %4075 }
0x102f   :  { %6153 = vmatmul.msk.f32.vlgmr.msra.gmra.mxu0 %vm399_vm8, %v3976_v2 }
0x1036   :  { %v3692_v7 = vpop.permute.xlu0 %3691 }
0x1037   :  { %6118 = vmatmul.msk.f32.vlgmr.msra.gmra.mxu1 %vm399_vm8, %v3692_v7 }
0x105f   :  { %v3694_v57 = vpop.permute.xlu0 %3693 }
0x1060   :  { %6119 = vmatmul.msk.f32.gmra.mxu1 %vm399_vm8, %v3694_v57 }
0x1067   :  { %v4004_v22 = vpop.permute.xlu0 %4003 }
0x1068   :  { %6131 = vmatmul.msk.f32.vlgmr.msrb.gmra.mxu1 %vm399_vm8, %v8062_v46  ;;  %6140 = vmatpush.xpose.msk.msra.mxu2 %vm399_vm8, %v4004_v22 }
0x106b   :  { %6141 = vmatmul.msk.f32.vlgmr.msra.gmra.mxu2 %vm399_vm8, %v3976_v2 }
0x106c   :  { %6148 = vmatpush.xpose.msk.msrb.mxu2 %vm399_vm8, %v4100_v4 }
0x106f   :  { %v3978_v27 = vpop.permute.xlu0 %3977 }
0x1070   :  { %6138 = vmatpush.xpose.msk.msra.mxu1 %vm399_vm8, %v3978_v27 }
0x1073   :  { %6139 = vmatmul.msk.f32.vlgmr.msra.gmra.mxu1 %vm399_vm8, %v3976_v2  ;;  %6149 = vmatmul.msk.f32.vlgmr.msrb.gmra.mxu2 %vm399_vm8, %v3976_v2 }
0x1074   :  { %6146 = vmatpush.xpose.msk.msrb.mxu1 %vm399_vm8, %v4076_v47 }
0x1077   :  { %v4124_v30 = vpop.permute.xlu0 %4123  ;;  %v3773_v3 = vpop.f32.mrf.mxu2 }
0x1078   :  { %6150 = vmatpush.xpose.msk.msrb.mxu3 %vm399_vm8, %v4124_v30 }
0x107b   :  { %6147 = vmatmul.msk.f32.vlgmr.msrb.gmra.mxu1 %vm399_vm8, %v3976_v2  ;;  %6151 = vmatmul.msk.f32.vlgmr.msrb.gmra.mxu3 %vm399_vm8, %v3976_v2 }
0x1082   :  { %v3804_v46 = vpop.f32.mrf.mxu3 }
0x1083   :  { %v4171_v34 = vmul.f32 0.17677669, %v3804_v46 }
0x1084   :  { %v3828_v56 = vpop.f32.mrf.mxu0 }
0x1085   :  { %v4172_v1 = vmul.f32 0.17677669, %v3828_v56  ;;  %v4187_v63 = vsel %vm399_vm8, %v4171_v34, -inf }
0x1086   :  { %4188 = vmax.xlane.f32.xlu0 %v4187_v63 }
0x1087   :  { %v4190_v51 = vsel %vm399_vm8, %v4172_v1, -inf }
0x1088   :  { %4191 = vmax.xlane.f32.xlu1 %v4190_v51 }
0x108a   :  { %v3852_v60 = vpop.f32.mrf.mxu3 }
0x108b   :  { %v4173_v59 = vmul.f32 0.17677669, %v3852_v60 }
0x108c   :  { %v3876_v55 = vpop.f32.mrf.mxu0 }
0x108d   :  { %v4174_v41 = vmul.f32 0.17677669, %v3876_v55  ;;  %v4193_v20 = vsel %vm399_vm8, %v4173_v59, -inf }
0x108e   :  { %4194 = vmax.xlane.f32.xlu2 %v4193_v20 }
0x108f   :  { %v4196_v29 = vsel %vm399_vm8, %v4174_v41, -inf }
0x1090   :  { %4197 = vmax.xlane.f32.xlu0 %v4196_v29 }
0x1092   :  { %v3948_v33 = vpop.f32.mrf.mxu3 }
0x1093   :  { %v4177_v40 = vmul.f32 0.17677669, %v3948_v33 }
0x1094   :  { %v3972_v0 = vpop.f32.mrf.mxu0 }
0x1095   :  { %v4178_v54 = vmul.f32 0.17677669, %v3972_v0  ;;  %v4205_v25 = vsel %vm399_vm8, %v4177_v40, -inf }
0x1097   :  { %v4208_v9 = vsel %vm399_vm8, %v4178_v54, -inf }
0x1098   :  { %4209 = vmax.xlane.f32.xlu1 %v4208_v9  ;;  %4206 = vmax.xlane.f32.xlu0 %v4205_v25  ;;  %v8293_v25 = vpop.f32.mrf.mxu2 }
0x10a2   :  { %v4048_v31 = vpop.f32.mrf.mxu3 }
0x10a3   :  { %v8259_v18 = vmul.f32 0.17677669, %v4048_v31 }
0x10a4   :  { %v4072_v44 = vpop.f32.mrf.mxu0 }
0x10a5   :  { %v8261_v58 = vmul.f32 0.17677669, %v4072_v44  ;;  %v4217_v45 = vsel %vm399_vm8, %v8259_v18, -inf }
0x10a6   :  { %4218 = vmax.xlane.f32.xlu1 %v4217_v45 }
0x10a7   :  { %v4220_v42 = vsel %vm399_vm8, %v8261_v58, -inf }
0x10a8   :  { %4221 = vmax.xlane.f32.xlu2 %v4220_v42 }
0x10ac   :  { %v4168_v62 = vpop.f32.mrf.mxu0 }
0x10ad   :  { %v8267_v12 = vmul.f32 0.17677669, %v4168_v62 }
0x10af   :  { %v4232_v28 = vsel %vm399_vm8, %v8267_v12, -inf }
0x10b0   :  { %4233 = vmax.xlane.f32.xlu0 %v4232_v28 }
0x10b4   :  { %v3716_v26 = vpop.f32.mrf.mxu1 }
0x10b5   :  { %v8271_v37 = vadd.f32 %v3773_v3, %v3716_v26  ;;  %v3924_v26 = vpop.f32.mrf.mxu2 }
0x10f9   :  { %v4189_v17 = vpop.xlane.xlu0 %4188 }
0x10fa   :  { %v4235_v16 = vsub.f32 %v4171_v34, %v4189_v17 }
0x10fb   :  { %v4192_v2 = vpop.xlane.xlu1 %4191 }
0x10fc   :  { %v4251_v48 = vmul.f32 1.442695, %v4235_v16  ;;  %v4236_v4 = vsub.f32 %v4172_v1, %v4192_v2 }
0x10fe   :  { %6445 = vpow2.f32 %v4251_v48  ;;  %v4253_v21 = vmul.f32 1.442695, %v4236_v4  ;;  %v4144_v19 = vpop.f32.mrf.mxu3 }
0x10ff   :  { %v8273_v36 = vmul.f32 0.17677669, %v4144_v19  ;;  %v4024_v19 = vpop.f32.mrf.mxu2 }
0x1100   :  { %6447 = vpow2.f32 %v4253_v21 }
0x1101   :  { %v4195_v7 = vpop.xlane.xlu2 %4194  ;;  %v4229_v57 = vsel %vm399_vm8, %v8273_v36, -inf }
0x1102   :  { %v4237_v22 = vsub.f32 %v4173_v59, %v4195_v7  ;;  %4230 = vmax.xlane.f32.xlu2 %v4229_v57  ;;  %v4176_v7 = vmul.f32 0.17677669, %v3924_v26 }
0x1103   :  { %v4198_v27 = vpop.xlane.xlu0 %4197 }
0x1104   :  { %v8277_v47 = vpop.eup %6445  ;;  %v4255_v30 = vmul.f32 1.442695, %v4237_v22  ;;  %v4238_v46 = vsub.f32 %v4174_v41, %v4198_v27  ;;  %v4202_v57 = vsel %vm399_vm8, %v4176_v7, -inf }
0x1105   :  { %v4283_v34 = vsel %vm399_vm8, %v8277_v47, 0.0 }
0x1106   :  { %v8281_v56 = vpop.eup %6447  ;;  %6449 = vpow2.f32 %v4255_v30  ;;  %v4257_v1 = vmul.f32 1.442695, %v4238_v46  ;;  %4284 = vadd.xlane.f32.xlu1 %v4283_v34 }
0x1107   :  { %v4286_v63 = vsel %vm399_vm8, %v8281_v56, 0.0  ;;  %v4120_v27 = vpop.f32.mrf.mxu2 }
0x1108   :  { %6451 = vpow2.f32 %v4257_v1  ;;  %v4184_v30 = vmul.f32 0.17677669, %v4120_v27 }
0x110a   :  { %4287 = vadd.xlane.f32.xlu2 %v4286_v63  ;;  %v4226_v46 = vsel %vm399_vm8, %v4184_v30, -inf }
0x110b   :  { %v4210_v51 = vpop.xlane.xlu1 %4209  ;;  %v4207_v60 = vpop.xlane.xlu0 %4206 }
0x110c   :  { %v8285_v59 = vpop.eup %6449  ;;  %v4242_v55 = vsub.f32 %v4178_v54, %v4210_v51  ;;  %v4241_v20 = vsub.f32 %v4177_v40, %v4207_v60 }
0x110d   :  { %v4289_v41 = vsel %vm399_vm8, %v8285_v59, 0.0 }
0x110e   :  { %v8289_v29 = vpop.eup %6451  ;;  %v4265_v33 = vmul.f32 1.442695, %v4242_v55  ;;  %v4263_v0 = vmul.f32 1.442695, %v4241_v20  ;;  %4290 = vadd.xlane.f32.xlu0 %v4289_v41  ;;  %v4180_v55 = vmul.f32 0.17677669, %v4024_v19 }
0x110f   :  { %v4292_v9 = vsel %vm399_vm8, %v8289_v29, 0.0 }
0x1110   :  { %6453 = vpow2.f32 %v4265_v33  ;;  %4293 = vadd.xlane.f32.xlu1 %v4292_v9  ;;  %v4214_v33 = vsel %vm399_vm8, %v4180_v55, -inf }
0x1111   :  { %6455 = vpow2.f32 %v4263_v0 }
0x1116   :  { %v8295_v31 = vpop.eup %6453 }
0x1117   :  { %v8297_v54 = vpop.eup %6455  ;;  %v4304_v40 = vsel %vm399_vm8, %v8295_v31, 0.0 }
0x1118   :  { %4305 = vadd.xlane.f32.xlu2 %v4304_v40  ;;  %v4301_v44 = vsel %vm399_vm8, %v8297_v54, 0.0  ;;  %v8330_v40 = vpop.f32.mrf.mxu1 }
0x1119   :  { %4302 = vadd.xlane.f32.xlu1 %v4301_v44  ;;  %v4219_v45 = vpop.xlane.xlu1 %4218 }
0x111a   :  { %v4245_v42 = vsub.f32 %v8259_v18, %v4219_v45 }
0x111b   :  { %v4222_v62 = vpop.xlane.xlu2 %4221 }
0x111c   :  { %v4271_v28 = vmul.f32 1.442695, %v4245_v42  ;;  %v4246_v3 = vsub.f32 %v8261_v58, %v4222_v62 }
0x111e   :  { %6457 = vpow2.f32 %v4271_v28  ;;  %v4273_v17 = vmul.f32 1.442695, %v4246_v3 }
0x1120   :  { %6459 = vpow2.f32 %v4273_v17  ;;  %v3900_v45 = vpop.f32.mrf.mxu1 }
0x1123   :  { %v4234_v16 = vpop.xlane.xlu0 %4233 }
0x1124   :  { %v8305_v2 = vpop.eup %6457  ;;  %v4250_v48 = vsub.f32 %v8267_v12, %v4234_v16 }
0x1125   :  { %v4313_v4 = vsel %vm399_vm8, %v8305_v2, 0.0 }
0x1126   :  { %v8310_v21 = vpop.eup %6459  ;;  %v4281_v18 = vmul.f32 1.442695, %v4250_v48  ;;  %4314 = vadd.xlane.f32.xlu2 %v4313_v4 }
0x1127   :  { %v4316_v58 = vsel %vm399_vm8, %v8310_v21, 0.0 }
0x1128   :  { %6461 = vpow2.f32 %v4281_v18  ;;  %4317 = vadd.xlane.f32.xlu0 %v4316_v58  ;;  %v4000_v3 = vpop.f32.mrf.mxu1 }
0x112e   :  { %v8315_v22 = vpop.eup %6461  ;;  %4203 = vmax.xlane.f32.xlu2 %v4202_v57 }
0x112f   :  { %v4328_v12 = vsel %vm399_vm8, %v8315_v22, 0.0 }
0x1130   :  { %4329 = vadd.xlane.f32.xlu1 %v4328_v12  ;;  %v4096_v58 = vpop.f32.mrf.mxu1 }
0x1138   :  { %4227 = vmax.xlane.f32.xlu1 %v4226_v46 }
0x1175   :  { %v4231_v34 = vpop.xlane.xlu2 %4230 }
0x1176   :  { %v4249_v1 = vsub.f32 %v8273_v36, %v4231_v34 }
0x1178   :  { %v4279_v63 = vmul.f32 1.442695, %v4249_v1 }
0x1179   :  { %v4285_v20 = vpop.xlane.xlu1 %4284 }
0x117a   :  { %6463 = vpow2.f32 %v4279_v63  ;;  %v4179_v63 = vmul.f32 0.17677669, %v4000_v3 }
0x117d   :  { %v4288_v41 = vpop.xlane.xlu2 %4287 }
0x117e   :  { %6465 = vrcp.f32 %v4288_v41 }
0x1180   :  { %v8321_v51 = vpop.eup %6463 }
0x1181   :  { %v4325_v60 = vsel %vm399_vm8, %v8321_v51, 0.0  ;;  %v4291_v3 = vpop.xlane.xlu0 %4290 }
0x1182   :  { %4326 = vadd.xlane.f32.xlu0 %v4325_v60 }
0x1183   :  { %v8326_v0 = vpop.xlane.xlu1 %4293 }
0x1184   :  { %v6466_v17 = vpop.eup %6465 }
0x1185   :  { %v4348_v19 = vmul.f32 %v6466_v17, %v8281_v56 }
0x1187   :  { %v4370_v12 = vsel %vm399_vm8, %v4348_v19, 0.0 }
0x1188   :  { %v4371_v27 = vrot.slane %v4370_v12, 4 }
0x118a   :  { %4215 = vmax.xlane.f32.xlu0 %v4214_v33  ;;  %v4372_v1 = vadd.f32 %v4371_v27, %v4370_v12 }
0x118b   :  { %v8328_v9 = vpop.xlane.xlu2 %4305 }
0x118c   :  { %v8334_v44 = vpop.xlane.xlu1 %4302  ;;  %v4373_v41 = vrot.slane %v4372_v1, 2 }
0x1199   :  { %v8332_v36 = vpop.xlane.xlu2 %4314 }
0x11a1   :  { %v4204_v42 = vpop.xlane.xlu2 %4203 }
0x11a2   :  { %v4240_v62 = vsub.f32 %v4176_v7, %v4204_v42  ;;  %v8343_v7 = vmul.f32 0.17677669, %v4096_v58  ;;  %v4374_v42 = vadd.f32 %v4373_v41, %v4372_v1 }
0x11a3   :  { %v8336_v28 = vpop.xlane.xlu1 %4329 }
0x11a4   :  { %v4261_v26 = vmul.f32 1.442695, %v4240_v62  ;;  %v4223_v46 = vsel %vm399_vm8, %v8343_v7, -inf }
0x11a6   :  { %6467 = vpow2.f32 %v4261_v26  ;;  %v4375_v26 = vrot.slane %v4374_v42, 1 }
0x11ab   :  { %v4228_v16 = vpop.xlane.xlu1 %4227 }
0x11ac   :  { %v8338_v48 = vpop.eup %6467  ;;  %v4248_v4 = vsub.f32 %v4184_v30, %v4228_v16  ;;  %v4376_v16 = vadd.f32 %v4375_v26, %v4374_v42 }
0x11ad   :  { %v4298_v18 = vsel %vm399_vm8, %v8338_v48, 0.0 }
0x11ae   :  { %v4277_v57 = vmul.f32 1.442695, %v4248_v4  ;;  %4299 = vadd.xlane.f32.xlu0 %v4298_v18 }
0x11b0   :  { %6469 = vpow2.f32 %v4277_v57  ;;  %v4318_v57 = vpop.xlane.xlu0 %4317 }
0x11b1   :  { %6471 = vrcp.f32 %v4285_v20  ;;  %v4211_v20 = vsel %vm399_vm8, %v4179_v63, -inf }
0x11b6   :  { %v8348_v34 = vpop.eup %6469  ;;  %4224 = vmax.xlane.f32.xlu0 %v4223_v46 }
0x11b7   :  { %v4322_v56 = vsel %vm399_vm8, %v8348_v34, 0.0  ;;  %v6472_v30 = vpop.eup %6471 }
0x11b8   :  { %4323 = vadd.xlane.f32.xlu2 %v4322_v56  ;;  %v4347_v60 = vmul.f32 %v6472_v30, %v8277_v47 }
0x11ba   :  { %v4363_v33 = vsel %vm399_vm8, %v4347_v60, 0.0  ;;  %v8361_v60 = vmul.f32 0.17677669, %v3900_v45 }
0x11bb   :  { %v4364_v62 = vrot.slane %v4363_v33, 4 }
0x11bd   :  { %v4365_v17 = vadd.f32 %v4364_v62, %v4363_v33  ;;  %v4199_v33 = vsel %vm399_vm8, %v8361_v60, -inf }
0x11bf   :  { %v4366_v4 = vrot.slane %v4365_v17, 2 }
0x11c0   :  { %4212 = vmax.xlane.f32.xlu2 %v4211_v20 }
0x11c1   :  { %v4367_v19 = vadd.f32 %v4366_v4, %v4365_v17 }
0x11c3   :  { %v4368_v18 = vrot.slane %v4367_v19, 1 }
0x11c5   :  { %v4369_v58 = vadd.f32 %v4368_v18, %v4367_v19 }
0x11ca   :  { %4485 = vperm.xlu0 %6240, %v4376_v16  }
0x11d8   :  { %4479 = vperm.xlu2 %6241, %v4369_v58  }
0x11f5   :  { %v8355_v47 = vpop.xlane.xlu0 %4326 }
0x11fd   :  { %v4216_v12 = vpop.xlane.xlu0 %4215 }
0x11fe   :  { %v4244_v27 = vsub.f32 %v4180_v55, %v4216_v12 }
0x1200   :  { %v4269_v46 = vmul.f32 1.442695, %v4244_v27 }
0x1202   :  { %6473 = vpow2.f32 %v4269_v46 }
0x1203   :  { %6475 = vrcp.f32 %v4291_v3 }
0x1204   :  { %6477 = vrcp.f32 %v8328_v9 }
0x1208   :  { %v8357_v56 = vpop.eup %6473 }
0x1209   :  { %v4310_v30 = vsel %vm399_vm8, %v8357_v56, 0.0  ;;  %v6476_v1 = vpop.eup %6475 }
0x120a   :  { %4311 = vadd.xlane.f32.xlu1 %v4310_v30  ;;  %v4349_v41 = vmul.f32 %v6476_v1, %v8285_v59  ;;  %v6478_v19 = vpop.eup %6477 }
0x120b   :  { %v4354_v3 = vmul.f32 %v6478_v19, %v8295_v31 }
0x120c   :  { %v4377_v20 = vsel %vm399_vm8, %v4349_v41, 0.0 }
0x120d   :  { %v4378_v55 = vrot.slane %v4377_v20, 4  ;;  %v4412_v12 = vsel %vm399_vm8, %v4354_v3, 0.0 }
0x120e   :  { %v4413_v46 = vrot.slane %v4412_v12, 4 }
0x120f   :  { %v4379_v42 = vadd.f32 %v4378_v55, %v4377_v20 }
0x1210   :  { %v4414_v41 = vadd.f32 %v4413_v46, %v4412_v12 }
0x1211   :  { %v4380_v62 = vrot.slane %v4379_v42, 2 }
0x1212   :  { %4200 = vmax.xlane.f32.xlu1 %v4199_v33  ;;  %v4415_v33 = vrot.slane %v4414_v41, 2 }
0x1213   :  { %v4381_v26 = vadd.f32 %v4380_v62, %v4379_v42 }
0x1214   :  { %v4416_v20 = vadd.f32 %v4415_v33, %v4414_v41 }
0x1215   :  { %v4382_v17 = vrot.slane %v4381_v26, 1 }
0x1216   :  { %v4417_v55 = vrot.slane %v4416_v20, 1 }
0x1217   :  { %v4383_v16 = vadd.f32 %v4382_v17, %v4381_v26 }
0x1218   :  { %v4418_v26 = vadd.f32 %v4417_v55, %v4416_v20 }
0x1221   :  { %v4300_v18 = vpop.xlane.xlu0 %4299 }
0x1229   :  { %v4225_v1 = vpop.xlane.xlu0 %4224 }
0x122a   :  { %v4247_v9 = vsub.f32 %v8343_v7, %v4225_v1 }
0x122b   :  { %v8367_v4 = vpop.xlane.xlu2 %4323  ;;  %4491 = vperm.xlu1 %6242, %v4383_v16  }
0x1233   :  { %v4213_v45 = vpop.xlane.xlu2 %4212 }
0x1234   :  { %v4243_v59 = vsub.f32 %v4179_v63, %v4213_v45  ;;  %v4275_v63 = vmul.f32 1.442695, %v4247_v9 }
0x1236   :  { %v4267_v58 = vmul.f32 1.442695, %v4243_v59 }
0x1238   :  { %6479 = vpow2.f32 %v4267_v58 }
0x1239   :  { %6481 = vrcp.f32 %v4300_v18 }
0x123a   :  { %6483 = vpow2.f32 %v4275_v63 }
0x123b   :  { %6485 = vrcp.f32 %v4318_v57 }
0x123c   :  { %6487 = vrcp.f32 %v8326_v0 }
0x123e   :  { %v8372_v27 = vpop.eup %6479 }
0x123f   :  { %v4307_v30 = vsel %vm399_vm8, %v8372_v27, 0.0  ;;  %v6482_v31 = vpop.eup %6481 }
0x1240   :  { %4308 = vadd.xlane.f32.xlu0 %v4307_v30  ;;  %v8377_v42 = vpop.eup %6483  ;;  %v4352_v62 = vmul.f32 %v6482_v31, %v8338_v48 }
0x1241   :  { %v4319_v17 = vsel %vm399_vm8, %v8377_v42, 0.0  ;;  %v6486_v7 = vpop.eup %6485 }
0x1242   :  { %v4398_v16 = vsel %vm399_vm8, %v4352_v62, 0.0  ;;  %v4358_v19 = vmul.f32 %v6486_v7, %v8310_v21  ;;  %v6488_v31 = vpop.eup %6487 }
0x1243   :  { %v4399_v45 = vrot.slane %v4398_v16, 4  ;;  %v4350_v55 = vmul.f32 %v6488_v31, %v8289_v29 }
0x1244   :  { %v4440_v18 = vsel %vm399_vm8, %v4358_v19, 0.0 }
0x1245   :  { %v4400_v59 = vadd.f32 %v4399_v45, %v4398_v16  ;;  %v4441_v57 = vrot.slane %v4440_v18, 4 }
0x1247   :  { %v4401_v58 = vrot.slane %v4400_v59, 2  ;;  %v4442_v3 = vadd.f32 %v4441_v57, %v4440_v18 }
0x1249   :  { %v4402_v12 = vadd.f32 %v4401_v58, %v4400_v59  ;;  %v4443_v46 = vrot.slane %v4442_v3, 2 }
0x124b   :  { %v4403_v48 = vrot.slane %v4402_v12, 1  ;;  %v4444_v1 = vadd.f32 %v4443_v46, %v4442_v3 }
0x124d   :  { %v4404_v30 = vadd.f32 %v4403_v48, %v4402_v12  ;;  %v4445_v41 = vrot.slane %v4444_v1, 1 }
0x124f   :  { %v4446_v9 = vadd.f32 %v4445_v41, %v4444_v1 }
0x1254   :  { %4521 = vperm.xlu0 %6240, %v4418_v26   ;;  %v4384_v26 = vsel %vm399_vm8, %v4350_v55, 0.0 }
0x1255   :  { %4320 = vadd.xlane.f32.xlu1 %v4319_v17  ;;  %v4385_v0 = vrot.slane %v4384_v26, 4 }
0x1257   :  { %v4386_v7 = vadd.f32 %v4385_v0, %v4384_v26 }
0x1259   :  { %v4387_v59 = vrot.slane %v4386_v7, 2 }
0x125b   :  { %v4388_v57 = vadd.f32 %v4387_v59, %v4386_v7 }
0x125d   :  { %v4389_v12 = vrot.slane %v4388_v57, 1 }
0x126e   :  { %4509 = vperm.xlu1 %6242, %v4404_v30   ;;  %v4390_v30 = vadd.f32 %v4389_v12, %v4388_v57 }
0x1276   :  { %4545 = vperm.xlu1 %6242, %v4446_v9  }
0x127d   :  { %v4312_v33 = vpop.xlane.xlu1 %4311 }
0x1285   :  { %v4201_v63 = vpop.xlane.xlu1 %4200 }
0x1286   :  { %v4239_v21 = vsub.f32 %v8361_v60, %v4201_v63 }
0x1288   :  { %v4259_v20 = vmul.f32 1.442695, %v4239_v21 }
0x128a   :  { %6489 = vpow2.f32 %v4259_v20 }
0x128b   :  { %6491 = vrcp.f32 %v8334_v44 }
0x128c   :  { %6493 = vrcp.f32 %v4312_v33 }
0x128d   :  { %6495 = vrcp.f32 %v8355_v47 }
0x1290   :  { %v8389_v62 = vpop.eup %6489 }
0x1291   :  { %v4295_v17 = vsel %vm399_vm8, %v8389_v62, 0.0  ;;  %v6492_v16 = vpop.eup %6491 }
0x1292   :  { %4296 = vadd.xlane.f32.xlu2 %v4295_v17  ;;  %v4353_v60 = vmul.f32 %v6492_v16, %v8297_v54  ;;  %v6494_v19 = vpop.eup %6493  ;;  %v8398_v54 = vpop.permute.xlu0 %4485 }
0x1293   :  { %v4356_v29 = vmul.f32 %v6494_v19, %v8357_v56  ;;  %v6496_v56 = vpop.eup %6495 }
0x1294   :  { %v4405_v45 = vsel %vm399_vm8, %v4353_v60, 0.0  ;;  %v4361_v31 = vmul.f32 %v6496_v56, %v8321_v51 }
0x1295   :  { %v4406_v44 = vrot.slane %v4405_v45, 4  ;;  %v4426_v58 = vsel %vm399_vm8, %v4356_v29, 0.0 }
0x1296   :  { %v4427_v3 = vrot.slane %v4426_v58, 4  ;;  %v4461_v26 = vsel %vm399_vm8, %v4361_v31, 0.0 }
0x1297   :  { %v4407_v18 = vadd.f32 %v4406_v44, %v4405_v45  ;;  %v4462_v0 = vrot.slane %v4461_v26, 4 }
0x1298   :  { %v4428_v46 = vadd.f32 %v4427_v3, %v4426_v58 }
0x1299   :  { %v4408_v48 = vrot.slane %v4407_v18, 2  ;;  %v4463_v7 = vadd.f32 %v4462_v0, %v4461_v26  ;;  %v8960_v0 = vld [vmem:[#allocation67_spill] sm:$0xff] }
0x129a   :  { %v4429_v9 = vrot.slane %v4428_v46, 2 }
0x129b   :  { %v4409_v1 = vadd.f32 %v4408_v48, %v4407_v18  ;;  %v4464_v29 = vrot.slane %v4463_v7, 2 }
0x129c   :  { %v4430_v63 = vadd.f32 %v4429_v9, %v4428_v46 }
0x129d   :  { %v4410_v41 = vrot.slane %v4409_v1, 1  ;;  %v4492_v45 = vpop.permute.xlu1 %4491  ;;  %v4465_v3 = vadd.f32 %v4464_v29, %v4463_v7 }
0x129e   :  { %v4431_v20 = vrot.slane %v4430_v63, 1 }
0x129f   :  { %v4411_v33 = vadd.f32 %v4410_v41, %v4409_v1  ;;  %v4466_v12 = vrot.slane %v4465_v3, 1 }
0x12a0   :  { %v4432_v55 = vadd.f32 %v4431_v20, %v4430_v63 }
0x12a1   :  { %v4467_v1 = vadd.f32 %v4466_v12, %v4465_v3 }
0x12aa   :  { %4497 = vperm.xlu2 %6241, %v4390_v30  }
0x12b2   :  { %4515 = vperm.xlu2 %6241, %v4411_v33  }
0x12b3   :  { %v4309_v21 = vpop.xlane.xlu0 %4308 }
0x12b4   :  { %6497 = vrcp.f32 %v4309_v21 }
0x12b5   :  { %6499 = vrcp.f32 %v8336_v28 }
0x12ba   :  { %v6498_v17 = vpop.eup %6497  ;;  %4533 = vperm.xlu2 %6241, %v4432_v55  }
0x12bb   :  { %v4355_v16 = vmul.f32 %v6498_v17, %v8372_v27  ;;  %v6500_v18 = vpop.eup %6499 }
0x12bc   :  { %v4362_v27 = vmul.f32 %v6500_v18, %v8315_v22 }
0x12bd   :  { %v4419_v47 = vsel %vm399_vm8, %v4355_v16, 0.0  ;;  %v4572_v16 = vmul.f32 %v8398_v54, %v8019_v38 }
0x12be   :  { %v4420_v60 = vrot.slane %v4419_v47, 4  ;;  %v4468_v48 = vsel %vm399_vm8, %v4362_v27, 0.0 }
0x12bf   :  { %v4469_v28 = vrot.slane %v4468_v48, 4 }
0x12c0   :  { %v4421_v19 = vadd.f32 %v4420_v60, %v4419_v47  ;;  %v8961_v47 = vld [vmem:[#allocation38_spill] sm:$0xff] }
0x12c1   :  { %v4470_v33 = vadd.f32 %v4469_v28, %v4468_v48 }
0x12c2   :  { %v4422_v44 = vrot.slane %v4421_v19, 2 }
0x12c3   :  { %v4471_v20 = vrot.slane %v4470_v33, 2 }
0x12c4   :  { %v4423_v59 = vadd.f32 %v4422_v44, %v4421_v19 }
0x12c5   :  { %v4472_v55 = vadd.f32 %v4471_v20, %v4470_v33 }
0x12c6   :  { %v4424_v51 = vrot.slane %v4423_v59, 1 }
0x12c7   :  { %v4473_v26 = vrot.slane %v4472_v55, 1 }
0x12c8   :  { %v4321_v57 = vpop.xlane.xlu1 %4320  ;;  %v4425_v58 = vadd.f32 %v4424_v51, %v4423_v59 }
0x12c9   :  { %6501 = vrcp.f32 %v4321_v57 }
0x12ca   :  { %4527 = vperm.xlu1 %6242, %v4425_v58   ;;  %6503 = vrcp.f32 %v8332_v36 }
0x12cb   :  { %6505 = vrcp.f32 %v8367_v4 }
0x12cf   :  { %v6502_v46 = vpop.eup %6501 }
0x12d0   :  { %v4359_v30 = vmul.f32 %v6502_v46, %v8377_v42  ;;  %v4474_v42 = vadd.f32 %v4473_v26, %v4472_v55  ;;  %v6504_v19 = vpop.eup %6503  ;;  %v8962_v46 = vld [vmem:[#allocation47_spill] sm:$0xff] }
0x12d1   :  { %v6506_v51 = vpop.eup %6505 }
0x12d2   :  { %v4447_v41 = vsel %vm399_vm8, %v4359_v30, 0.0  ;;  %4563 = vperm.xlu1 %6242, %v4467_v1  }
0x12d3   :  { %v4448_v9 = vrot.slane %v4447_v41, 4 }
0x12d5   :  { %v4449_v63 = vadd.f32 %v4448_v9, %v4447_v41 }
0x12d7   :  { %v4450_v56 = vrot.slane %v4449_v63, 2 }
0x12d9   :  { %v4451_v21 = vadd.f32 %v4450_v56, %v4449_v63 }
0x12da   :  { %4763 = vrot.lane.b32.xlu1 %v7213_v61, %s6825_s21  ;;  %v4480_v61 = vpop.permute.xlu2 %4479 }
0x12db   :  { %v4452_v22 = vrot.slane %v4451_v21, 1  ;;  %v4571_v17 = vmul.f32 %v4480_v61, %v8009_v14 }
0x12dd   :  { %v4453_v31 = vadd.f32 %v4452_v22, %v4451_v21 }
0x12df   :  { %4551 = vperm.xlu2 %6241, %v4453_v31  }
0x12e2   :  { %4839 = vrot.lane.b32.xlu1 %v7359_v13, %s6825_s21  ;;  %v4573_v13 = vmul.f32 %v4492_v45, %v8960_v0  ;;  %v4357_v45 = vmul.f32 %v6504_v19, %v8305_v2  ;;  %v4360_v2 = vmul.f32 %v6506_v51, %v8348_v34 }
0x12e4   :  { %v4433_v18 = vsel %vm399_vm8, %v4357_v45, 0.0  ;;  %v4454_v21 = vsel %vm399_vm8, %v4360_v2, 0.0  ;;  %v8964_v2 = vld [vmem:[#allocation35_spill] sm:$0xff] }
0x12e5   :  { %v4434_v48 = vrot.slane %v4433_v18, 4 }
0x12e7   :  { %4569 = vperm.xlu2 %6241, %v4474_v42   ;;  %v4435_v56 = vadd.f32 %v4434_v48, %v4433_v18  ;;  %v4455_v42 = vrot.slane %v4454_v21, 4 }
0x12ea   :  { %4911 = vrot.lane.b32.xlu1 %v7392_v23, %s6825_s21  ;;  %v4588_v23 = vsel %vm4587_vm5, %v4571_v17, 0.0  ;;  %v4436_v17 = vrot.slane %v4435_v56, 2 }
0x12eb   :  { %v4589_v60 = vrot.slane %v4588_v23, 4 }
0x12ec   :  { %v4437_v19 = vadd.f32 %v4436_v17, %v4435_v56 }
0x12ed   :  { %v4590_v36 = vadd.f32 %v4589_v60, %v4588_v23  ;;  %v4456_v60 = vadd.f32 %v4455_v42, %v4454_v21 }
0x12ef   :  { %4791 = vrot.lane.b32.xlu2 %v7337_v5, %s6825_s21  ;;  %v4595_v5 = vsel %vm4587_vm5, %v4572_v16, 0.0  ;;  %v4591_v57 = vrot.slane %v4590_v36, 2 }
0x12f0   :  { %v4596_v7 = vrot.slane %v4595_v5, 4 }
0x12f1   :  { %v4592_v1 = vadd.f32 %v4591_v57, %v4590_v36 }
0x12f2   :  { %v4597_v59 = vadd.f32 %v4596_v7, %v4595_v5 }
0x12f3   :  { %v4593_v20 = vrot.slane %v4592_v1, 1 }
0x12f4   :  { %v4598_v58 = vrot.slane %v4597_v59, 2 }
0x12f5   :  { %v4594_v16 = vadd.f32 %v4593_v20, %v4592_v1 }
0x12f6   :  { %v4599_v28 = vadd.f32 %v4598_v58, %v4597_v59  ;;  %v4438_v59 = vrot.slane %v4437_v19, 1 }
0x12f7   :  { %4815 = vrot.lane.b32.xlu2 %v7348_v6, %s6825_s21  ;;  %v4602_v6 = vsel %vm4587_vm5, %v4573_v13, 0.0 }
0x12f8   :  { %v4603_v44 = vrot.slane %v4602_v6, 4  ;;  %v4600_v22 = vrot.slane %v4599_v28, 1  ;;  %v4439_v18 = vadd.f32 %v4438_v59, %v4437_v19 }
0x12fa   :  { %v4604_v29 = vadd.f32 %v4603_v44, %v4602_v6 }
0x12fc   :  { %v4605_v27 = vrot.slane %v4604_v29, 2 }
0x12fe   :  { %v4606_v41 = vadd.f32 %v4605_v27, %v4604_v29  ;;  %v4457_v29 = vrot.slane %v4456_v60, 2 }
0x12ff   :  { %4935 = vrot.lane.b32.xlu2 %v8961_v47, %s6825_s21  ;;  %v8963_v47 = vld [vmem:[#allocation46_spill] sm:$0xff] }
0x1300   :  { %v4607_v34 = vrot.slane %v4606_v41, 1  ;;  %v4458_v57 = vadd.f32 %v4457_v29, %v4456_v60  ;;  %v4522_v60 = vpop.permute.xlu0 %4521 }
0x1302   :  { %v4608_v23 = vadd.f32 %v4607_v34, %v4606_v41  ;;  %v4459_v58 = vrot.slane %v4458_v57, 1 }
0x1304   :  { %v4460_v27 = vadd.f32 %v4459_v58, %v4458_v57 }
0x1305   :  { %v4297_v54 = vpop.xlane.xlu2 %4296 }
0x1306   :  { %6507 = vrcp.f32 %v4297_v54 }
0x1307   :  { %4961 = vrot.lane.b32.xlu2 %v8958_v10, %s6825_s21 }
0x130c   :  { %v6508_v3 = vpop.eup %6507 }
0x130d   :  { %v4351_v12 = vmul.f32 %v6508_v3, %v8389_v62  ;;  %v4498_v4 = vpop.permute.xlu2 %4497  ;;  %v4510_v3 = vpop.permute.xlu1 %4509 }
0x130e   :  { %v4574_v30 = vmul.f32 %v4498_v4, %v8962_v46 }
0x130f   :  { %v4391_v10 = vsel %vm399_vm8, %v4351_v12, 0.0  ;;  %4987 = vrot.lane.b32.xlu2 %v8957_v43, %s6825_s21  ;;  %v4601_v43 = vadd.f32 %v4600_v22, %v4599_v28 }
0x1310   :  { %v4392_v9 = vrot.slane %v4391_v10, 4  ;;  %v4609_v33 = vsel %vm4587_vm5, %v4574_v30, 0.0 }
0x1311   :  { %v4610_v63 = vrot.slane %v4609_v33, 4  ;;  %v4716_v44 = vsel %vm3670_vm13, %v4601_v43, %v4594_v16 }
0x1312   :  { %v4393_v62 = vadd.f32 %v4392_v9, %v4391_v10  ;;  %v4717_v45 = vsel %vm3672_vm14, %v4608_v23, %v4716_v44  ;;  %v1831_v10 = vld [vmem:[#allocation8 + $0x10] sm:$0xff] }
0x1313   :  { %v4611_v31 = vadd.f32 %v4610_v63, %v4609_v33  ;;  %4753 = vmatpush.msra.mxu1 %v1831_v10  ;;  %v8965_v9 = vld [vmem:[#allocation36_spill] sm:$0xff] }
0x1314   :  { %v4394_v55 = vrot.slane %v4393_v62, 2  ;;  %v8967_v10 = vld [vmem:[#allocation48_spill] sm:$0xff] }
0x1315   :  { %v4612_v26 = vrot.slane %v4611_v31, 2  ;;  %v4516_v51 = vpop.permute.xlu2 %4515  ;;  %v4546_v30 = vpop.permute.xlu1 %4545 }
0x1316   :  { %v4395_v61 = vadd.f32 %v4394_v55, %v4393_v62  ;;  %v4577_v44 = vmul.f32 %v4516_v51, %v8043_v8  ;;  %v4582_v58 = vmul.f32 %v4546_v30, %v8123_v11 }
0x1317   :  { %v4613_v13 = vadd.f32 %v4612_v26, %v4611_v31  ;;  %5131 = vrot.lane.b32.xlu2 %v8963_v47, %s6825_s21 }
0x1318   :  { %v4396_v5 = vrot.slane %v4395_v61, 1  ;;  %v4630_v59 = vsel %vm4587_vm5, %v4577_v44, 0.0 }
0x1319   :  { %v4614_v6 = vrot.slane %v4613_v13, 1  ;;  %v4631_v57 = vrot.slane %v4630_v59, 4 }
0x131a   :  { %v4397_v7 = vadd.f32 %v4396_v5, %v4395_v61 }
0x131b   :  { %v4615_v54 = vadd.f32 %v4614_v6, %v4613_v13 }
0x131c   :  { %4503 = vperm.xlu0 %6240, %v4397_v7   ;;  %v8966_v7 = vld [vmem:[#allocation50_spill] sm:$0xff] }
0x131d   :  { %v8448_v36 = vsel %vm3674_vm15, %v4615_v54, %v4717_v45  ;;  %v4534_v12 = vpop.permute.xlu2 %4533  ;;  %v4576_v19 = vmul.f32 %v4510_v3, %v8966_v7  ;;  %v4578_v54 = vmul.f32 %v4522_v60, %v8049_v32  ;;  %v4665_v3 = vsel %vm4587_vm5, %v4582_v58, 0.0 }
0x131e   :  { %v4580_v4 = vmul.f32 %v4534_v12, %v8091_v50 }
0x131f   :  { %v4623_v45 = vsel %vm4587_vm5, %v4576_v19, 0.0  ;;  %v4637_v29 = vsel %vm4587_vm5, %v4578_v54, 0.0 }
0x1320   :  { %v4651_v48 = vsel %vm4587_vm5, %v4580_v4, 0.0 }
0x1321   :  { %v4652_v1 = vrot.slane %v4651_v48, 4 }
0x1323   :  { %v4653_v41 = vadd.f32 %v4652_v1, %v4651_v48  ;;  %v4632_v48 = vadd.f32 %v4631_v57, %v4630_v59 }
0x1324   :  { %4539 = vperm.xlu0 %6240, %v4439_v18   ;;  %v4624_v18 = vrot.slane %v4623_v45, 4 }
0x1325   :  { %v4654_v56 = vrot.slane %v4653_v41, 2 }
0x1326   :  { %v4625_v4 = vadd.f32 %v4624_v18, %v4623_v45 }
0x1327   :  { %v4655_v22 = vadd.f32 %v4654_v56, %v4653_v41 }
0x1329   :  { %v4656_v26 = vrot.slane %v4655_v22, 1 }
0x132b   :  { %v4657_v16 = vadd.f32 %v4656_v26, %v4655_v22 }
0x132c   :  { %4557 = vperm.xlu0 %6240, %v4460_v27   ;;  %v4638_v27 = vrot.slane %v4637_v29, 4 }
0x1334   :  { %4765 = vrot.lane.b32.xlu0 %v8964_v2, %s6825_s21  ;;  %v4639_v2 = vadd.f32 %v4638_v27, %v4637_v29 }
0x1339   :  { %v4552_v28 = vpop.permute.xlu2 %4551 }
0x133a   :  { %v4583_v12 = vmul.f32 %v4552_v28, %v8113_v52  ;;  %v4640_v28 = vrot.slane %v4639_v2, 2 }
0x133c   :  { %4863 = vrot.lane.b32.xlu0 %v8965_v9, %s6825_s21  ;;  %v4528_v33 = vpop.permute.xlu1 %4527  ;;  %v4672_v1 = vsel %vm4587_vm5, %v4583_v12, 0.0  ;;  %v4626_v9 = vrot.slane %v4625_v4, 2 }
0x133d   :  { %v4579_v63 = vmul.f32 %v4528_v33, %v8087_v15  ;;  %v4666_v33 = vrot.slane %v4665_v3, 4 }
0x133f   :  { %v4644_v62 = vsel %vm4587_vm5, %v4579_v63, 0.0  ;;  %v4633_v63 = vrot.slane %v4632_v48, 2  ;;  %v4667_v26 = vadd.f32 %v4666_v33, %v4665_v3 }
0x1340   :  { %v4645_v21 = vrot.slane %v4644_v62, 4 }
0x1341   :  { %v4570_v20 = vpop.permute.xlu2 %4569  ;;  %v4668_v44 = vrot.slane %v4667_v26, 2 }
0x1342   :  { %v4646_v31 = vadd.f32 %v4645_v21, %v4644_v62  ;;  %v4673_v62 = vrot.slane %v4672_v1, 4  ;;  %v4586_v22 = vmul.f32 %v4570_v20, %v8134_v53 }
0x1344   :  { %v4647_v34 = vrot.slane %v4646_v31, 2  ;;  %v4564_v55 = vpop.permute.xlu1 %4563 }
0x1345   :  { %v4585_v30 = vmul.f32 %v4564_v55, %v8152_v39 }
0x1346   :  { %v4648_v42 = vadd.f32 %v4647_v34, %v4646_v31  ;;  %v4627_v31 = vadd.f32 %v4626_v9, %v4625_v4 }
0x1348   :  { %v4649_v61 = vrot.slane %v4648_v42, 1  ;;  %v4628_v19 = vrot.slane %v4627_v31, 1 }
0x1349   :  { %v4792_v17 = vpop.permute.xlu2 %4791 }
0x134a   :  { %v4650_v43 = vadd.f32 %v4649_v61, %v4648_v42  ;;  %6158 = vmatpush.xpose.msk.msra.mxu3 %vm399_vm8, %v4792_v17  ;;  %v4634_v42 = vadd.f32 %v4633_v63, %v4632_v48  ;;  %v4674_v61 = vadd.f32 %v4673_v62, %v4672_v1  ;;  %v4686_v17 = vsel %vm4587_vm5, %v4585_v30, 0.0 }
0x134b   :  { %v4687_v45 = vrot.slane %v4686_v17, 4  ;;  %v4629_v4 = vadd.f32 %v4628_v19, %v4627_v31  ;;  %v4669_v48 = vadd.f32 %v4668_v44, %v4667_v26 }
0x134c   :  { %v8460_v13 = vsel %vm3670_vm13, %v4657_v16, %v4650_v43  ;;  %v8462_v47 = vpop.permute.xlu1 %4763  ;;  %v4635_v54 = vrot.slane %v4634_v42, 1  ;;  %v4675_v59 = vrot.slane %v4674_v61, 2 }
0x134d   :  { %6159 = vmatmul.msk.f32.vlgmr.msra.gmra.mxu3 %vm399_vm8, %v8462_v47 }
0x134e   :  { %v4636_v3 = vadd.f32 %v4635_v54, %v4634_v42 }
0x1351   :  { %v4816_v23 = vpop.permute.xlu2 %4815 }
0x1352   :  { %6160 = vmatpush.xpose.msk.msrb.mxu0 %vm399_vm8, %v4816_v23  ;;  %v4641_v23 = vadd.f32 %v4640_v28, %v4639_v2  ;;  %v4676_v2 = vadd.f32 %v4675_v59, %v4674_v61  ;;  %v4670_v28 = vrot.slane %v4669_v48, 1 }
0x1354   :  { %v8467_v5 = vpop.permute.xlu1 %4839  ;;  %v4642_v58 = vrot.slane %v4641_v23, 1  ;;  %v4677_v26 = vrot.slane %v4676_v2, 1 }
0x1355   :  { %6161 = vmatmul.msk.f32.vlgmr.msrb.gmra.mxu0 %vm399_vm8, %v8462_v47 }
0x1356   :  { %v4643_v63 = vadd.f32 %v4642_v58, %v4641_v23  ;;  %v8968_v58 = vld [vmem:[#allocation37_spill] sm:$0xff] }
0x135c   :  { %v4912_v6 = vpop.permute.xlu1 %4911 }
0x135d   :  { %6168 = vmatpush.xpose.msk.msrb.mxu1 %vm399_vm8, %v4912_v6  ;;  %v4693_v6 = vsel %vm4587_vm5, %v4586_v22, 0.0 }
0x135e   :  { %v4694_v29 = vrot.slane %v4693_v6, 4 }
0x1360   :  { %v4695_v1 = vadd.f32 %v4694_v29, %v4693_v6  ;;  %v4936_v6 = vpop.permute.xlu2 %4935 }
0x1362   :  { %v4696_v42 = vrot.slane %v4695_v1, 2 }
0x1364   :  { %v4697_v19 = vadd.f32 %v4696_v42, %v4695_v1  ;;  %v8970_v1 = vld [vmem:[#allocation42_spill] sm:$0xff] }
0x138e   :  { %v4504_v51 = vpop.permute.xlu0 %4503 }
0x138f   :  { %v4575_v41 = vmul.f32 %v4504_v51, %v8967_v10  ;;  %v4688_v51 = vadd.f32 %v4687_v45, %v4686_v17 }
0x1391   :  { %v4616_v56 = vsel %vm4587_vm5, %v4575_v41, 0.0  ;;  %v4689_v22 = vrot.slane %v4688_v51, 2 }
0x1392   :  { %v4617_v21 = vrot.slane %v4616_v56, 4 }
0x1393   :  { %v4690_v23 = vadd.f32 %v4689_v22, %v4688_v51 }
0x1394   :  { %v4618_v34 = vadd.f32 %v4617_v21, %v4616_v56 }
0x1395   :  { %v4691_v29 = vrot.slane %v4690_v23, 1 }
0x1396   :  { %v4619_v16 = vrot.slane %v4618_v34, 2  ;;  %v4540_v43 = vpop.permute.xlu0 %4539 }
0x1397   :  { %v4581_v60 = vmul.f32 %v4540_v43, %v8107_v24  ;;  %v4671_v43 = vadd.f32 %v4670_v28, %v4669_v48 }
0x1398   :  { %v4620_v55 = vadd.f32 %v4619_v16, %v4618_v34 }
0x1399   :  { %v4658_v20 = vsel %vm4587_vm5, %v4581_v60, 0.0  ;;  %v4678_v60 = vadd.f32 %v4677_v26, %v4676_v2  ;;  %v8969_v2 = vld [vmem:[#allocation34_spill] sm:$0xff] }
0x139a   :  { %v4621_v18 = vrot.slane %v4620_v55, 1  ;;  %v4659_v57 = vrot.slane %v4658_v20, 4 }
0x139c   :  { %v4622_v27 = vadd.f32 %v4621_v18, %v4620_v55  ;;  %v4660_v12 = vadd.f32 %v4659_v57, %v4658_v20  ;;  %v4698_v18 = vrot.slane %v4697_v19, 1 }
0x139e   :  { %v4661_v41 = vrot.slane %v4660_v12, 2  ;;  %v4558_v9 = vpop.permute.xlu0 %4557  ;;  %v4719_v33 = vsel %vm3676_vm1, %v4622_v27, %v8448_v36  ;;  %v4692_v27 = vadd.f32 %v4691_v29, %v4690_v23 }
0x139f   :  { %v4584_v56 = vmul.f32 %v4558_v9, %v8129_v49  ;;  %v4720_v62 = vsel %vm3678_vm2, %v4629_v4, %v4719_v33  ;;  %v8972_v9 = vld [vmem:[#allocation43_spill] sm:$0xff]  ;;  %v8973_v33 = vld [vmem:[#allocation44_spill] sm:$0xff] }
0x13a0   :  { %v4662_v30 = vadd.f32 %v4661_v41, %v4660_v12  ;;  %v4721_v21 = vsel %vm3680_vm4, %v4636_v3, %v4720_v62  ;;  %v4699_v12 = vadd.f32 %v4698_v18, %v4697_v19  ;;  %v8971_v41 = vld [vmem:[#allocation41_spill] sm:$0xff] }
0x13a1   :  { %v4679_v31 = vsel %vm4587_vm5, %v4584_v56, 0.0  ;;  %v4722_v34 = vsel %vm3682_vm3, %v4643_v63, %v4721_v21 }
0x13a2   :  { %v4663_v61 = vrot.slane %v4662_v30, 1  ;;  %v4680_v17 = vrot.slane %v4679_v31, 4  ;;  %4730 = vrot.lane.b32.xlu0 %v4722_v34, %s6824_s17 }
0x13a4   :  { %v4664_v36 = vadd.f32 %v4663_v61, %v4662_v30  ;;  %v4681_v16 = vadd.f32 %v4680_v17, %v4679_v31 }
0x13a6   :  { %v4724_v55 = vsel %vm3672_vm14, %v4664_v36, %v8460_v13  ;;  %v4682_v44 = vrot.slane %v4681_v16, 2  ;;  %v4766_v54 = vpop.permute.xlu0 %4765 }
0x13a7   :  { %6156 = vmatpush.xpose.msk.msra.mxu2 %vm399_vm8, %v4766_v54  ;;  %v4725_v45 = vsel %vm3674_vm15, %v4671_v43, %v4724_v55 }
0x13a8   :  { %v4683_v20 = vadd.f32 %v4682_v44, %v4681_v16  ;;  %v4726_v59 = vsel %vm3676_vm1, %v4678_v60, %v4725_v45 }
0x13aa   :  { %v4684_v57 = vrot.slane %v4683_v20, 1  ;;  %4887 = vrot.lane.b32.xlu0 %v8968_v58, %s6825_s21  ;;  %6157 = vmatmul.msk.f32.vlgmr.msra.gmra.mxu2 %vm399_vm8, %v8462_v47 }
0x13ab   :  { %6162 = vmatpush.xpose.msk.msrb.mxu2 %vm399_vm8, %v8467_v5  ;;  %v4962_v5 = vpop.permute.xlu2 %4961 }
0x13ac   :  { %v4685_v13 = vadd.f32 %v4684_v57, %v4683_v20 }
0x13ae   :  { %v4864_v4 = vpop.permute.xlu0 %4863  ;;  %v4727_v48 = vsel %vm3678_vm2, %v4685_v13, %v4726_v59 }
0x13af   :  { %6170 = vmatpush.xpose.msk.msra.mxu2 %vm399_vm8, %v4936_v6  ;;  %6164 = vmatpush.xpose.msk.msrb.mxu3 %vm399_vm8, %v4864_v4  ;;  %v4728_v3 = vsel %vm3680_vm4, %v4692_v27, %v4727_v48  ;;  %v3777_v27 = vadd.f32 %v8293_v25, %v8330_v40 }
0x13b0   :  { %v4729_v51 = vsel %vm3682_vm3, %v4699_v12, %v4728_v3 }
0x13b1   :  { %4732 = vrot.lane.b32.xlu1 %v4729_v51, %s6824_s17 }
0x13b2   :  { %4959 = vrot.lane.b32.xlu0 %v8969_v2, %s6825_s21  ;;  %6163 = vmatmul.msk.f32.vlgmr.msrb.gmra.mxu2 %vm399_vm8, %v8462_v47 }
0x13b3   :  { %6172 = vmatpush.xpose.msk.msra.mxu3 %vm399_vm8, %v4962_v5  ;;  %v4988_v34 = vpop.permute.xlu2 %4987 }
0x13b4   :  { %6165 = vmatmul.msk.f32.vlgmr.msrb.gmra.mxu3 %vm399_vm8, %v8462_v47 }
0x13b9   :  { %5035 = vrot.lane.b32.xlu1 %v8970_v1, %s6825_s21 }
0x13ba   :  { %5011 = vrot.lane.b32.xlu0 %v8971_v41, %s6825_s21  ;;  %6171 = vmatmul.msk.f32.vlgmr.msra.gmra.mxu2 %vm399_vm8, %v8462_v47 }
0x13bb   :  { %v5132_v61 = vpop.permute.xlu2 %5131 }
0x13c1   :  { %5059 = vrot.lane.b32.xlu1 %v8972_v9, %s6825_s21 }
0x13c2   :  { %5083 = vrot.lane.b32.xlu0 %v8973_v33, %s6825_s21 }
0x13c9   :  { %5107 = vrot.lane.b32.xlu1 %v8959_v35, %s6825_s21 }
0x13d0   :  { %v4812_v63 = vpop.f32.mrf.mxu3 }
0x13d1   :  { %v8534_v56 = vmul.f32 0.17677669, %v4812_v63 }
0x13d2   :  { %v4836_v62 = vpop.f32.mrf.mxu0 }
0x13d3   :  { %v5174_v30 = vsel %vm399_vm8, %v8534_v56, -inf  ;;  %v8538_v21 = vmul.f32 0.17677669, %v4836_v62 }
0x13d5   :  { %v5177_v28 = vsel %vm399_vm8, %v8538_v21, -inf }
0x13ec   :  { %5175 = vmax.xlane.f32.xlu0 %v5174_v30 }
0x13f3   :  { %5178 = vmax.xlane.f32.xlu1 %v5177_v28 }
0x1414   :  { %v4731_v22 = vpop.permute.xlu0 %4730 }
0x1415   :  { %6154 = vmatmul.msk.f32.vlgmr.msra.gmra.mxu1 %vm399_vm8, %v4731_v22 }
0x141c   :  { %v4888_v31 = vpop.permute.xlu0 %4887 }
0x141d   :  { %6166 = vmatpush.xpose.msk.msra.mxu0 %vm399_vm8, %v4888_v31 }
0x1420   :  { %6167 = vmatmul.msk.f32.vlgmr.msra.gmra.mxu0 %vm399_vm8, %v8462_v47 }
0x1421   :  { %6174 = vmatpush.xpose.msk.msrb.mxu0 %vm399_vm8, %v4988_v34 }
0x1423   :  { %v4733_v35 = vpop.permute.xlu1 %4732 }
0x1424   :  { %6155 = vmatmul.msk.f32.gmra.mxu1 %vm399_vm8, %v4733_v35  ;;  %v4960_v26 = vpop.permute.xlu0 %4959 }
0x1425   :  { %6173 = vmatmul.msk.f32.vlgmr.msra.gmra.mxu3 %vm399_vm8, %v4960_v26 }
0x1428   :  { %6175 = vmatmul.msk.f32.vlgmr.msrb.gmra.mxu0 %vm399_vm8, %v4960_v26 }
0x142b   :  { %v5036_v42 = vpop.permute.xlu1 %5035 }
0x142c   :  { %6169 = vmatmul.msk.f32.vlgmr.msrb.gmra.mxu1 %vm399_vm8, %v8462_v47  ;;  %6178 = vmatpush.xpose.msk.msrb.mxu2 %vm399_vm8, %v5036_v42  ;;  %v5012_v17 = vpop.permute.xlu0 %5011 }
0x142d   :  { %v4788_v36 = vpop.f32.mrf.mxu2  ;;  %6176 = vmatpush.xpose.msk.msra.mxu1 %vm399_vm8, %v5012_v17 }
0x142e   :  { %v5155_v16 = vmul.f32 0.17677669, %v4788_v36 }
0x142f   :  { %6179 = vmatmul.msk.f32.vlgmr.msrb.gmra.mxu2 %vm399_vm8, %v4960_v26 }
0x1430   :  { %6186 = vmatpush.xpose.msk.msra.mxu2 %vm399_vm8, %v5132_v61  ;;  %v5171_v43 = vsel %vm399_vm8, %v5155_v16, -inf }
0x1431   :  { %5172 = vmax.xlane.f32.xlu2 %v5171_v43 }
0x1433   :  { %v5060_v23 = vpop.permute.xlu1 %5059 }
0x1434   :  { %6177 = vmatmul.msk.f32.vlgmr.msra.gmra.mxu1 %vm399_vm8, %v4960_v26  ;;  %6180 = vmatpush.xpose.msk.msrb.mxu3 %vm399_vm8, %v5060_v23  ;;  %v5084_v47 = vpop.permute.xlu0 %5083 }
0x1435   :  { %v4860_v6 = vpop.f32.mrf.mxu2  ;;  %6182 = vmatpush.xpose.msk.msra.mxu0 %vm399_vm8, %v5084_v47 }
0x1436   :  { %v5158_v60 = vmul.f32 0.17677669, %v4860_v6 }
0x1437   :  { %v4884_v19 = vpop.f32.mrf.mxu3  ;;  %6181 = vmatmul.msk.f32.vlgmr.msrb.gmra.mxu3 %vm399_vm8, %v4960_v26  ;;  %6187 = vmatmul.msk.f32.vlgmr.msra.gmra.mxu2 %vm399_vm8, %v4960_v26 }
0x1438   :  { %v5159_v55 = vmul.f32 0.17677669, %v4884_v19  ;;  %6183 = vmatmul.msk.f32.vlgmr.msra.gmra.mxu0 %vm399_vm8, %v4960_v26  ;;  %v5180_v44 = vsel %vm399_vm8, %v5158_v60, -inf }
0x1439   :  { %5181 = vmax.xlane.f32.xlu2 %v5180_v44 }
0x143a   :  { %v5183_v54 = vsel %vm399_vm8, %v5159_v55, -inf }
0x143b   :  { %5184 = vmax.xlane.f32.xlu0 %v5183_v54  ;;  %v5108_v45 = vpop.permute.xlu1 %5107 }
0x143c   :  { %6184 = vmatpush.xpose.msk.msrb.mxu1 %vm399_vm8, %v5108_v45 }
0x143d   :  { %v4956_v20 = vpop.f32.mrf.mxu2 }
0x143e   :  { %v5162_v59 = vmul.f32 0.17677669, %v4956_v20 }
0x143f   :  { %6185 = vmatmul.msk.f32.vlgmr.msrb.gmra.mxu1 %vm399_vm8, %v4960_v26 }
0x1440   :  { %v5192_v29 = vsel %vm399_vm8, %v5162_v59, -inf }
0x1443   :  { %5193 = vmax.xlane.f32.xlu0 %v5192_v29 }
0x145f   :  { %v5176_v51 = vpop.xlane.xlu0 %5175 }
0x1460   :  { %v5220_v40 = vsub.f32 %v8534_v56, %v5176_v51 }
0x1462   :  { %v5237_v63 = vmul.f32 1.442695, %v5220_v40 }
0x1464   :  { %6509 = vpow2.f32 %v5237_v63 }
0x1466   :  { %v5179_v42 = vpop.xlane.xlu1 %5178 }
0x1467   :  { %v5221_v23 = vsub.f32 %v8538_v21, %v5179_v42 }
0x1469   :  { %v5239_v45 = vmul.f32 1.442695, %v5221_v23 }
0x1492   :  { %v4755_v18 = vpop.f32.mrf.mxu1 }
0x1493   :  { %v8569_v57 = vadd.f32 %v4755_v18, %v8271_v37 }
0x149d   :  { %v4908_v58 = vpop.f32.mrf.mxu0 }
0x149e   :  { %v8571_v13 = vmul.f32 0.17677669, %v4908_v58 }
0x14a0   :  { %v5186_v12 = vsel %vm399_vm8, %v8571_v13, -inf }
0x14a1   :  { %v4758_v4 = vpop.f32.mrf.mxu1  ;;  %5187 = vmax.xlane.f32.xlu1 %v5186_v12 }
0x14a2   :  { %v8577_v48 = vadd.f32 %v4758_v4, %v3777_v27 }
0x14a4   :  { %v5173_v41 = vpop.xlane.xlu2 %5172 }
0x14a5   :  { %v5008_v5 = vpop.f32.mrf.mxu0  ;;  %v5219_v9 = vsub.f32 %v5155_v16, %v5173_v41  ;;  %v8596_v16 = vpop.eup %6509 }
0x14a6   :  { %v8579_v3 = vmul.f32 0.17677669, %v5008_v5  ;;  %v5270_v44 = vsel %vm399_vm8, %v8596_v16, 0.0 }
0x14a7   :  { %v5235_v30 = vmul.f32 1.442695, %v5219_v9 }
0x14a8   :  { %v4984_v2 = vpop.f32.mrf.mxu3  ;;  %v5198_v37 = vsel %vm399_vm8, %v8579_v3, -inf }
0x14a9   :  { %v8583_v1 = vmul.f32 0.17677669, %v4984_v2  ;;  %5199 = vmax.xlane.f32.xlu2 %v5198_v37  ;;  %6511 = vpow2.f32 %v5235_v30 }
0x14ab   :  { %v5195_v25 = vsel %vm399_vm8, %v8583_v1, -inf }
0x14ac   :  { %5196 = vmax.xlane.f32.xlu1 %v5195_v25  ;;  %v5182_v22 = vpop.xlane.xlu2 %5181 }
0x14ad   :  { %v5222_v56 = vsub.f32 %v5158_v60, %v5182_v22 }
0x14ae   :  { %v5185_v33 = vpop.xlane.xlu0 %5184 }
0x14af   :  { %v5223_v31 = vsub.f32 %v5159_v55, %v5185_v33  ;;  %v5241_v47 = vmul.f32 1.442695, %v5222_v56  ;;  %v8601_v55 = vpop.eup %6511 }
0x14b0   :  { %v5267_v21 = vsel %vm399_vm8, %v8601_v55, 0.0 }
0x14b1   :  { %v5243_v61 = vmul.f32 1.442695, %v5223_v31 }
0x14b2   :  { %v5056_v62 = vpop.f32.mrf.mxu2 }
0x14b3   :  { %v8588_v28 = vmul.f32 0.17677669, %v5056_v62  ;;  %6513 = vpow2.f32 %v5243_v61 }
0x14b4   :  { %6515 = vpow2.f32 %v5241_v47 }
0x14b5   :  { %v5104_v34 = vpop.f32.mrf.mxu0  ;;  %v5204_v35 = vsel %vm399_vm8, %v8588_v28, -inf  ;;  %6517 = vpow2.f32 %v5239_v45 }
0x14b6   :  { %v8592_v26 = vmul.f32 0.17677669, %v5104_v34  ;;  %5205 = vmax.xlane.f32.xlu1 %v5204_v35  ;;  %v5194_v36 = vpop.xlane.xlu0 %5193  ;;  %v4932_v34 = vpop.f32.mrf.mxu1 }
0x14b7   :  { %v5226_v19 = vsub.f32 %v5162_v59, %v5194_v36 }
0x14b8   :  { %v5210_v17 = vsel %vm399_vm8, %v8592_v26, -inf }
0x14b9   :  { %5211 = vmax.xlane.f32.xlu0 %v5210_v17  ;;  %v5249_v20 = vmul.f32 1.442695, %v5226_v19  ;;  %v8611_v59 = vpop.eup %6513 }
0x14ba   :  { %v5080_v43 = vpop.f32.mrf.mxu3  ;;  %v5152_v54 = vpop.f32.mrf.mxu2  ;;  %v5279_v27 = vsel %vm399_vm8, %v8611_v59, 0.0 }
0x14bb   :  { %v8599_v6 = vmul.f32 0.17677669, %v5080_v43  ;;  %v8609_v29 = vmul.f32 0.17677669, %v5152_v54  ;;  %6519 = vpow2.f32 %v5249_v20  ;;  %v8613_v18 = vpop.eup %6515 }
0x14bc   :  { %v5276_v12 = vsel %vm399_vm8, %v8613_v18, 0.0  ;;  %v8621_v4 = vpop.eup %6517 }
0x14bd   :  { %v5207_v60 = vsel %vm399_vm8, %v8599_v6, -inf  ;;  %v5216_v58 = vsel %vm399_vm8, %v8609_v29, -inf  ;;  %v5273_v51 = vsel %vm399_vm8, %v8621_v4, 0.0 }
0x14be   :  { %5208 = vmax.xlane.f32.xlu2 %v5207_v60  ;;  %5271 = vadd.xlane.f32.xlu1 %v5270_v44  ;;  %v5032_v23 = vpop.f32.mrf.mxu1 }
0x14c1   :  { %5268 = vadd.xlane.f32.xlu0 %v5267_v21  ;;  %v8623_v5 = vpop.eup %6519 }
0x14c2   :  { %v5288_v2 = vsel %vm399_vm8, %v8623_v5, 0.0 }
0x14c6   :  { %5217 = vmax.xlane.f32.xlu2 %v5216_v58  ;;  %5280 = vadd.xlane.f32.xlu1 %v5279_v27  ;;  %v8655_v58 = vmul.f32 0.17677669, %v4932_v34 }
0x14c9   :  { %5277 = vadd.xlane.f32.xlu0 %v5276_v12 }
0x14ce   :  { %5274 = vadd.xlane.f32.xlu2 %v5273_v51  ;;  %5289 = vadd.xlane.f32.xlu1 %v5288_v2 }
0x1514   :  { %v5188_v37 = vpop.xlane.xlu1 %5187 }
0x1515   :  { %v5224_v41 = vsub.f32 %v8571_v13, %v5188_v37 }
0x1517   :  { %v5245_v25 = vmul.f32 1.442695, %v5224_v41 }
0x1519   :  { %6521 = vpow2.f32 %v5245_v25 }
0x151c   :  { %v5200_v40 = vpop.xlane.xlu2 %5199 }
0x151d   :  { %v5228_v9 = vsub.f32 %v8579_v3, %v5200_v40 }
0x151f   :  { %v8631_v33 = vpop.eup %6521  ;;  %v5253_v63 = vmul.f32 1.442695, %v5228_v9  ;;  %v5197_v62 = vpop.xlane.xlu1 %5196 }
0x1520   :  { %v5227_v30 = vsub.f32 %v8583_v1, %v5197_v62  ;;  %v5282_v22 = vsel %vm399_vm8, %v8631_v33, 0.0 }
0x1521   :  { %6523 = vpow2.f32 %v5253_v63  ;;  %5283 = vadd.xlane.f32.xlu2 %v5282_v22  ;;  %v5189_v63 = vsel %vm399_vm8, %v8655_v58, -inf }
0x1522   :  { %v5251_v31 = vmul.f32 1.442695, %v5227_v30 }
0x1524   :  { %6525 = vpow2.f32 %v5251_v31 }
0x1527   :  { %v8636_v13 = vpop.eup %6523 }
0x1528   :  { %v5294_v35 = vsel %vm399_vm8, %v8636_v13, 0.0 }
0x1529   :  { %v5206_v3 = vpop.xlane.xlu1 %5205  ;;  %5295 = vadd.xlane.f32.xlu0 %v5294_v35 }
0x152a   :  { %v8640_v56 = vpop.eup %6525  ;;  %v5230_v42 = vsub.f32 %v8588_v28, %v5206_v3 }
0x152b   :  { %v5291_v1 = vsel %vm399_vm8, %v8640_v56, 0.0 }
0x152c   :  { %v5257_v61 = vmul.f32 1.442695, %v5230_v42  ;;  %5292 = vadd.xlane.f32.xlu2 %v5291_v1  ;;  %v5212_v17 = vpop.xlane.xlu0 %5211 }
0x152d   :  { %v5232_v36 = vsub.f32 %v8592_v26, %v5212_v17 }
0x152e   :  { %6527 = vpow2.f32 %v5257_v61  ;;  %v8676_v61 = vmul.f32 0.17677669, %v5032_v23 }
0x152f   :  { %v5261_v43 = vmul.f32 1.442695, %v5232_v36 }
0x1531   :  { %6529 = vpow2.f32 %v5261_v43  ;;  %v5209_v47 = vpop.xlane.xlu2 %5208  ;;  %v5272_v19 = vpop.xlane.xlu1 %5271 }
0x1532   :  { %v5231_v60 = vsub.f32 %v8599_v6, %v5209_v47  ;;  %6531 = vrcp.f32 %v5272_v19  ;;  %v5128_v6 = vpop.f32.mrf.mxu1 }
0x1533   :  { %v8661_v41 = vmul.f32 0.17677669, %v5128_v6 }
0x1534   :  { %v8647_v44 = vpop.eup %6527  ;;  %v5259_v28 = vmul.f32 1.442695, %v5231_v60  ;;  %v5269_v54 = vpop.xlane.xlu0 %5268  ;;  %v5201_v60 = vsel %vm399_vm8, %v8676_v61, -inf }
0x1535   :  { %6533 = vrcp.f32 %v5269_v54  ;;  %v5300_v45 = vsel %vm399_vm8, %v8647_v44, 0.0  ;;  %v5213_v62 = vsel %vm399_vm8, %v8661_v41, -inf }
0x1536   :  { %6535 = vpow2.f32 %v5259_v28  ;;  %5301 = vadd.xlane.f32.xlu2 %v5300_v45 }
0x1537   :  { %v8651_v26 = vpop.eup %6529 }
0x1538   :  { %v6532_v20 = vpop.eup %6531  ;;  %v5306_v21 = vsel %vm399_vm8, %v8651_v26, 0.0 }
0x1539   :  { %v5332_v27 = vmul.f32 %v6532_v20, %v8596_v16  ;;  %v5218_v12 = vpop.xlane.xlu2 %5217  ;;  %5307 = vadd.xlane.f32.xlu1 %v5306_v21 }
0x153a   :  { %v5234_v51 = vsub.f32 %v8609_v29, %v5218_v12 }
0x153b   :  { %v6534_v2 = vpop.eup %6533  ;;  %v5354_v40 = vsel %vm399_vm8, %v5332_v27, 0.0 }
0x153c   :  { %v8659_v37 = vpop.eup %6535  ;;  %v5265_v25 = vmul.f32 1.442695, %v5234_v51  ;;  %v5331_v9 = vmul.f32 %v6534_v2, %v8601_v55  ;;  %v5355_v29 = vrot.slane %v5354_v40, 4  ;;  %v5281_v2 = vpop.xlane.xlu1 %5280 }
0x153d   :  { %v5303_v16 = vsel %vm399_vm8, %v8659_v37, 0.0 }
0x153e   :  { %6537 = vpow2.f32 %v5265_v25  ;;  %5190 = vmax.xlane.f32.xlu2 %v5189_v63  ;;  %5304 = vadd.xlane.f32.xlu0 %v5303_v16  ;;  %v5347_v30 = vsel %vm399_vm8, %v5331_v9, 0.0  ;;  %v5356_v55 = vadd.f32 %v5355_v29, %v5354_v40  ;;  %v5278_v25 = vpop.xlane.xlu0 %5277 }
0x153f   :  { %v5348_v34 = vrot.slane %v5347_v30, 4 }
0x1540   :  { %v5357_v1 = vrot.slane %v5356_v55, 2 }
0x1541   :  { %v5275_v22 = vpop.xlane.xlu2 %5274  ;;  %5214 = vmax.xlane.f32.xlu1 %v5213_v62  ;;  %v5349_v42 = vadd.f32 %v5348_v34, %v5347_v30 }
0x1542   :  { %6539 = vrcp.f32 %v5275_v22  ;;  %v5358_v47 = vadd.f32 %v5357_v1, %v5356_v55 }
0x1543   :  { %v5350_v19 = vrot.slane %v5349_v42, 2  ;;  %6541 = vrcp.f32 %v5278_v25 }
0x1544   :  { %v8672_v31 = vpop.eup %6537  ;;  %v5359_v54 = vrot.slane %v5358_v47, 1  ;;  %v5290_v9 = vpop.xlane.xlu1 %5289 }
0x1545   :  { %v5312_v35 = vsel %vm399_vm8, %v8672_v31, 0.0  ;;  %v5351_v45 = vadd.f32 %v5350_v19, %v5349_v42 }
0x1546   :  { %5313 = vadd.xlane.f32.xlu0 %v5312_v35  ;;  %v5360_v20 = vadd.f32 %v5359_v54, %v5358_v47 }
0x1547   :  { %v5352_v21 = vrot.slane %v5351_v45, 1 }
0x1548   :  { %v6540_v3 = vpop.eup %6539 }
0x1549   :  { %v5333_v17 = vmul.f32 %v6540_v3, %v8621_v4  ;;  %v5353_v23 = vadd.f32 %v5352_v21, %v5351_v45  ;;  %v6542_v22 = vpop.eup %6541 }
0x154a   :  { %v5334_v3 = vmul.f32 %v6542_v22, %v8613_v18 }
0x154b   :  { %v5361_v36 = vsel %vm399_vm8, %v5333_v17, 0.0 }
0x154c   :  { %v5362_v43 = vrot.slane %v5361_v36, 4 }
0x154e   :  { %5202 = vmax.xlane.f32.xlu0 %v5201_v60  ;;  %v5363_v28 = vadd.f32 %v5362_v43, %v5361_v36  ;;  %v5368_v36 = vsel %vm399_vm8, %v5334_v3, 0.0 }
0x1550   :  { %v5364_v6 = vrot.slane %v5363_v28, 2 }
0x1552   :  { %v5365_v27 = vadd.f32 %v5364_v6, %v5363_v28 }
0x1554   :  { %v5366_v4 = vrot.slane %v5365_v27, 1 }
0x1556   :  { %5469 = vperm.xlu2 %6241, %v5360_v20   ;;  %v5367_v12 = vadd.f32 %v5366_v4, %v5365_v27 }
0x155a   :  { %5463 = vperm.xlu1 %6242, %v5353_v23  }
0x1562   :  { %5475 = vperm.xlu0 %6240, %v5367_v12  }
0x1594   :  { %v5284_v51 = vpop.xlane.xlu2 %5283 }
0x1595   :  { %6543 = vrcp.f32 %v5284_v51 }
0x159b   :  { %v6544_v17 = vpop.eup %6543 }
0x159c   :  { %v5296_v63 = vpop.xlane.xlu0 %5295  ;;  %v5336_v60 = vmul.f32 %v6544_v17, %v8631_v33 }
0x159d   :  { %6545 = vrcp.f32 %v5296_v63 }
0x159e   :  { %v5382_v45 = vsel %vm399_vm8, %v5336_v60, 0.0 }
0x159f   :  { %v5293_v40 = vpop.xlane.xlu2 %5292  ;;  %v5383_v23 = vrot.slane %v5382_v45, 4 }
0x15a3   :  { %v6546_v47 = vpop.eup %6545 }
0x15a4   :  { %v5340_v28 = vmul.f32 %v6546_v47, %v8636_v13 }
0x15a6   :  { %v5410_v6 = vsel %vm399_vm8, %v5340_v28, 0.0 }
0x15a7   :  { %v5411_v27 = vrot.slane %v5410_v6, 4 }
0x15a9   :  { %v5302_v16 = vpop.xlane.xlu2 %5301  ;;  %v5412_v63 = vadd.f32 %v5411_v27, %v5410_v6 }
0x15ab   :  { %v5413_v3 = vrot.slane %v5412_v63, 2 }
0x15ac   :  { %v8682_v29 = vpop.xlane.xlu1 %5307 }
0x15b1   :  { %v5191_v62 = vpop.xlane.xlu2 %5190  ;;  %v8684_v30 = vpop.xlane.xlu0 %5304 }
0x15b2   :  { %v5225_v55 = vsub.f32 %v8655_v58, %v5191_v62  ;;  %v5369_v58 = vrot.slane %v5368_v36, 4 }
0x15b4   :  { %v5247_v34 = vmul.f32 1.442695, %v5225_v55  ;;  %v5215_v35 = vpop.xlane.xlu1 %5214  ;;  %v5370_v54 = vadd.f32 %v5369_v58, %v5368_v36  ;;  %v5414_v58 = vadd.f32 %v5413_v3, %v5412_v63 }
0x15b5   :  { %v5233_v42 = vsub.f32 %v8661_v41, %v5215_v35 }
0x15b6   :  { %6547 = vpow2.f32 %v5247_v34  ;;  %v5371_v51 = vrot.slane %v5370_v54, 2 }
0x15b7   :  { %v5263_v1 = vmul.f32 1.442695, %v5233_v42 }
0x15b9   :  { %6549 = vpow2.f32 %v5263_v1  ;;  %v8690_v43 = vpop.xlane.xlu0 %5313 }
0x15ba   :  { %6551 = vrcp.f32 %v5293_v40  ;;  %v5384_v40 = vadd.f32 %v5383_v23, %v5382_v45  ;;  %v5415_v45 = vrot.slane %v5414_v58, 1 }
0x15bb   :  { %6553 = vrcp.f32 %v5281_v2  ;;  %v5372_v2 = vadd.f32 %v5371_v51, %v5370_v54 }
0x15bc   :  { %v8692_v19 = vpop.eup %6547  ;;  %6555 = vrcp.f32 %v5302_v16  ;;  %v5416_v23 = vadd.f32 %v5415_v45, %v5414_v58 }
0x15bd   :  { %v5285_v18 = vsel %vm399_vm8, %v8692_v19, 0.0 }
0x15be   :  { %5286 = vadd.xlane.f32.xlu0 %v5285_v18 }
0x15bf   :  { %v8698_v41 = vpop.eup %6549 }
0x15c0   :  { %v5309_v20 = vsel %vm399_vm8, %v8698_v41, 0.0  ;;  %v6552_v21 = vpop.eup %6551 }
0x15c1   :  { %5310 = vadd.xlane.f32.xlu2 %v5309_v20  ;;  %v5203_v33 = vpop.xlane.xlu0 %5202  ;;  %v5339_v4 = vmul.f32 %v6552_v21, %v8640_v56  ;;  %v6554_v25 = vpop.eup %6553  ;;  %v5373_v56 = vrot.slane %v5372_v2, 1 }
0x15c2   :  { %v5229_v13 = vsub.f32 %v8676_v61, %v5203_v33  ;;  %v6556_v22 = vpop.eup %6555  ;;  %v5335_v55 = vmul.f32 %v6554_v25, %v8611_v59  ;;  %v5385_v61 = vrot.slane %v5384_v40, 2 }
0x15c3   :  { %v5403_v62 = vsel %vm399_vm8, %v5339_v4, 0.0  ;;  %v5342_v16 = vmul.f32 %v6556_v22, %v8647_v44  ;;  %v5374_v59 = vadd.f32 %v5373_v56, %v5372_v2 }
0x15c4   :  { %v5255_v12 = vmul.f32 1.442695, %v5229_v13  ;;  %v5404_v34 = vrot.slane %v5403_v62, 4  ;;  %v5375_v1 = vsel %vm399_vm8, %v5335_v55, 0.0  ;;  %v5386_v47 = vadd.f32 %v5385_v61, %v5384_v40 }
0x15c5   :  { %v5376_v60 = vrot.slane %v5375_v1, 4 }
0x15c6   :  { %6557 = vpow2.f32 %v5255_v12  ;;  %v5405_v36 = vadd.f32 %v5404_v34, %v5403_v62  ;;  %v5387_v18 = vrot.slane %v5386_v47, 1 }
0x15c7   :  { %6559 = vrcp.f32 %v5290_v9  ;;  %v5424_v9 = vsel %vm399_vm8, %v5342_v16, 0.0  ;;  %v5377_v20 = vadd.f32 %v5376_v60, %v5375_v1 }
0x15c8   :  { %v5425_v44 = vrot.slane %v5424_v9, 4  ;;  %v5406_v54 = vrot.slane %v5405_v36, 2  ;;  %v5388_v33 = vadd.f32 %v5387_v18, %v5386_v47  ;;  %6561 = vrcp.f32 %v8684_v30 }
0x15c9   :  { %v5378_v4 = vrot.slane %v5377_v20, 2  ;;  %6563 = vrcp.f32 %v8690_v43 }
0x15ca   :  { %v5426_v6 = vadd.f32 %v5425_v44, %v5424_v9  ;;  %v5407_v13 = vadd.f32 %v5406_v54, %v5405_v36 }
0x15cc   :  { %v8708_v35 = vpop.eup %6557  ;;  %v5408_v12 = vrot.slane %v5407_v13, 1  ;;  %v5427_v51 = vrot.slane %v5426_v6, 2  ;;  %v5464_v60 = vpop.permute.xlu1 %5463 }
0x15cd   :  { %v5297_v42 = vsel %vm399_vm8, %v8708_v35, 0.0  ;;  %v6560_v17 = vpop.eup %6559 }
0x15ce   :  { %5298 = vadd.xlane.f32.xlu1 %v5297_v42  ;;  %v5338_v28 = vmul.f32 %v6560_v17, %v8623_v5  ;;  %v5379_v5 = vadd.f32 %v5378_v4, %v5377_v20  ;;  %v5409_v40 = vadd.f32 %v5408_v12, %v5407_v13  ;;  %v5428_v63 = vadd.f32 %v5427_v51, %v5426_v6  ;;  %v8720_v42 = vpop.permute.xlu2 %5469  ;;  %v6562_v1 = vpop.eup %6561 }
0x15cf   :  { %v5343_v36 = vmul.f32 %v6562_v1, %v8659_v37  ;;  %v6564_v9 = vpop.eup %6563 }
0x15d0   :  { %v5396_v21 = vsel %vm399_vm8, %v5338_v28, 0.0  ;;  %v5380_v62 = vrot.slane %v5379_v5, 1  ;;  %v5429_v22 = vrot.slane %v5428_v63, 1  ;;  %v5346_v18 = vmul.f32 %v6564_v9, %v8672_v31 }
0x15d1   :  { %v5397_v27 = vrot.slane %v5396_v21, 4 }
0x15d2   :  { %5481 = vperm.xlu0 %6240, %v5374_v59   ;;  %v5381_v55 = vadd.f32 %v5380_v62, %v5379_v5  ;;  %v5430_v61 = vadd.f32 %v5429_v22, %v5428_v63  ;;  %v5431_v59 = vsel %vm399_vm8, %v5343_v36, 0.0  ;;  %v5452_v6 = vsel %vm399_vm8, %v5346_v18, 0.0 }
0x15d3   :  { %v5398_v25 = vadd.f32 %v5397_v27, %v5396_v21  ;;  %v5432_v44 = vrot.slane %v5431_v59, 4  ;;  %v5453_v4 = vrot.slane %v5452_v6, 4 }
0x15d4   :  { %v8717_v3 = vpop.permute.xlu0 %5475 }
0x15d5   :  { %v5399_v2 = vrot.slane %v5398_v25, 2  ;;  %v5433_v45 = vadd.f32 %v5432_v44, %v5431_v59  ;;  %v5454_v5 = vadd.f32 %v5453_v4, %v5452_v6  ;;  %v5556_v6 = vmul.f32 %v8720_v42, %v8019_v38 }
0x15d7   :  { %v5400_v34 = vadd.f32 %v5399_v2, %v5398_v25  ;;  %v5434_v31 = vrot.slane %v5433_v45, 2  ;;  %v5579_v4 = vsel %vm5571_vm6, %v5556_v6, 0.0 }
0x15d9   :  { %5493 = vperm.xlu2 %6241, %v5388_v33   ;;  %v5401_v16 = vrot.slane %v5400_v34, 1  ;;  %v5435_v63 = vadd.f32 %v5434_v31, %v5433_v45  ;;  %v5580_v31 = vrot.slane %v5579_v4, 4 }
0x15da   :  { %5517 = vperm.xlu0 %6240, %v5416_v23  }
0x15db   :  { %v5402_v56 = vadd.f32 %v5401_v16, %v5400_v34  ;;  %v5455_v16 = vrot.slane %v5454_v5, 2 }
0x15e1   :  { %5511 = vperm.xlu2 %6241, %v5409_v40  }
0x15e7   :  { %5487 = vperm.xlu1 %6242, %v5381_v55  }
0x15e9   :  { %5529 = vperm.xlu2 %6241, %v5430_v61   ;;  %v5436_v61 = vrot.slane %v5435_v63, 1 }
0x15eb   :  { %v5437_v36 = vadd.f32 %v5436_v61, %v5435_v63 }
0x15ef   :  { %5505 = vperm.xlu1 %6242, %v5402_v56  }
0x1631   :  { %v5287_v17 = vpop.xlane.xlu0 %5286 }
0x1632   :  { %6565 = vrcp.f32 %v5287_v17 }
0x1634   :  { %v5311_v47 = vpop.xlane.xlu2 %5310 }
0x1635   :  { %6567 = vrcp.f32 %v5311_v47  ;;  %v5456_v47 = vadd.f32 %v5455_v16, %v5454_v5 }
0x1636   :  { %6569 = vrcp.f32 %v8682_v29 }
0x1638   :  { %v6566_v58 = vpop.eup %6565 }
0x1639   :  { %v5337_v28 = vmul.f32 %v6566_v58, %v8692_v19  ;;  %v5457_v58 = vrot.slane %v5456_v47, 1 }
0x163b   :  { %v6568_v30 = vpop.eup %6567  ;;  %v5389_v43 = vsel %vm399_vm8, %v5337_v28, 0.0  ;;  %v5458_v18 = vadd.f32 %v5457_v58, %v5456_v47 }
0x163c   :  { %v5390_v54 = vrot.slane %v5389_v43, 4  ;;  %v5345_v37 = vmul.f32 %v6568_v30, %v8698_v41  ;;  %v6570_v19 = vpop.eup %6569 }
0x163d   :  { %v5344_v51 = vmul.f32 %v6570_v19, %v8651_v26 }
0x163e   :  { %v5391_v20 = vadd.f32 %v5390_v54, %v5389_v43  ;;  %v5445_v21 = vsel %vm399_vm8, %v5345_v37, 0.0 }
0x163f   :  { %v5446_v33 = vrot.slane %v5445_v21, 4  ;;  %v5438_v22 = vsel %vm399_vm8, %v5344_v51, 0.0 }
0x1640   :  { %v5392_v13 = vrot.slane %v5391_v20, 2  ;;  %v5439_v56 = vrot.slane %v5438_v22, 4 }
0x1641   :  { %v5447_v23 = vadd.f32 %v5446_v33, %v5445_v21  ;;  %v5299_v27 = vpop.xlane.xlu1 %5298  ;;  %v5555_v21 = vmul.f32 %v5464_v60, %v8009_v14  ;;  %v5557_v33 = vmul.f32 %v8717_v3, %v8960_v0 }
0x1642   :  { %6571 = vrcp.f32 %v5299_v27  ;;  %v5393_v29 = vadd.f32 %v5392_v13, %v5391_v20  ;;  %v5440_v9 = vadd.f32 %v5439_v56, %v5438_v22  ;;  %v5494_v27 = vpop.permute.xlu2 %5493 }
0x1643   :  { %v5448_v12 = vrot.slane %v5447_v23, 2  ;;  %v5560_v3 = vmul.f32 %v5494_v27, %v8966_v7 }
0x1644   :  { %v5394_v25 = vrot.slane %v5393_v29, 1  ;;  %v5441_v44 = vrot.slane %v5440_v9, 2  ;;  %v5482_v20 = vpop.permute.xlu0 %5481 }
0x1645   :  { %v5449_v41 = vadd.f32 %v5448_v12, %v5447_v23  ;;  %v5558_v13 = vmul.f32 %v5482_v20, %v8962_v46  ;;  %v5572_v23 = vsel %vm5571_vm6, %v5555_v21, 0.0  ;;  %v5607_v5 = vsel %vm5571_vm6, %v5560_v3, 0.0 }
0x1646   :  { %v5395_v40 = vadd.f32 %v5394_v25, %v5393_v29  ;;  %v5442_v43 = vadd.f32 %v5441_v44, %v5440_v9  ;;  %v5586_v29 = vsel %vm5571_vm6, %v5557_v33, 0.0  ;;  %v5573_v60 = vrot.slane %v5572_v23, 4 }
0x1647   :  { %v5450_v62 = vrot.slane %v5449_v41, 1  ;;  %v5593_v14 = vsel %vm5571_vm6, %v5558_v13, 0.0  ;;  %v5587_v0 = vrot.slane %v5586_v29, 4  ;;  %v5581_v25 = vadd.f32 %v5580_v31, %v5579_v4 }
0x1648   :  { %v6572_v2 = vpop.eup %6571  ;;  %5499 = vperm.xlu0 %6240, %v5395_v40   ;;  %v5443_v54 = vrot.slane %v5442_v43, 1  ;;  %v5594_v46 = vrot.slane %v5593_v14, 4  ;;  %v5574_v51 = vadd.f32 %v5573_v60, %v5572_v23 }
0x1649   :  { %v5341_v55 = vmul.f32 %v6572_v2, %v8708_v35  ;;  %v5451_v34 = vadd.f32 %v5450_v62, %v5449_v41  ;;  %v5588_v41 = vadd.f32 %v5587_v0, %v5586_v29  ;;  %v5582_v61 = vrot.slane %v5581_v25, 2 }
0x164a   :  { %v5444_v37 = vadd.f32 %v5443_v54, %v5442_v43  ;;  %v5595_v40 = vadd.f32 %v5594_v46, %v5593_v14  ;;  %v5512_v63 = vpop.permute.xlu2 %5511 }
0x164b   :  { %v5417_v1 = vsel %vm399_vm8, %v5341_v55, 0.0  ;;  %5547 = vperm.xlu2 %6241, %v5451_v34   ;;  %v5575_v55 = vrot.slane %v5574_v51, 2  ;;  %v5608_v34 = vrot.slane %v5607_v5, 4  ;;  %v5589_v16 = vrot.slane %v5588_v41, 2 }
0x164c   :  { %v5418_v26 = vrot.slane %v5417_v1, 4  ;;  %v5518_v62 = vpop.permute.xlu0 %5517  ;;  %v5596_v7 = vrot.slane %v5595_v40, 2 }
0x164d   :  { %v5564_v54 = vmul.f32 %v5518_v62, %v8091_v50  ;;  %v1832_v62 = vld [vmem:[#allocation8 + $0x18] sm:$0xff] }
0x164e   :  { %v5419_v17 = vadd.f32 %v5418_v26, %v5417_v1  ;;  %v5576_v26 = vadd.f32 %v5575_v55, %v5574_v51  ;;  %v5597_v47 = vadd.f32 %v5596_v7, %v5595_v40  ;;  %5737 = vmatpush.msra.mxu3 %v1832_v62 }
0x164f   :  { %v5635_v27 = vsel %vm5571_vm6, %v5564_v54, 0.0 }
0x1650   :  { %5535 = vperm.xlu0 %6240, %v5437_v36   ;;  %v5420_v59 = vrot.slane %v5419_v17, 2  ;;  %v5590_v36 = vadd.f32 %v5589_v16, %v5588_v41  ;;  %v5636_v3 = vrot.slane %v5635_v27, 4 }
0x1652   :  { %v5421_v28 = vadd.f32 %v5420_v59, %v5419_v17  ;;  %v5583_v17 = vadd.f32 %v5582_v61, %v5581_v25  ;;  %v5530_v43 = vpop.permute.xlu2 %5529 }
0x1653   :  { %v5566_v50 = vmul.f32 %v5530_v43, %v8123_v11 }
0x1654   :  { %v5422_v30 = vrot.slane %v5421_v28, 1 }
0x1655   :  { %v5649_v40 = vsel %vm5571_vm6, %v5566_v50, 0.0 }
0x1656   :  { %v5423_v35 = vadd.f32 %v5422_v30, %v5421_v28  ;;  %v5577_v28 = vrot.slane %v5576_v26, 1  ;;  %v5650_v16 = vrot.slane %v5649_v40, 4 }
0x1658   :  { %5553 = vperm.xlu0 %6240, %v5458_v18   ;;  %5523 = vperm.xlu1 %6242, %v5423_v35   ;;  %v5584_v18 = vrot.slane %v5583_v17, 1  ;;  %v5591_v35 = vrot.slane %v5590_v36, 1  ;;  %v5578_v13 = vadd.f32 %v5577_v28, %v5576_v26  ;;  %v5651_v28 = vadd.f32 %v5650_v16, %v5649_v40 }
0x1659   :  { %v5488_v45 = vpop.permute.xlu1 %5487 }
0x165a   :  { %v5559_v19 = vmul.f32 %v5488_v45, %v8967_v10  ;;  %v5598_v45 = vrot.slane %v5597_v47, 1  ;;  %v5592_v23 = vadd.f32 %v5591_v35, %v5590_v36 }
0x165c   :  { %v5600_v38 = vsel %vm5571_vm6, %v5559_v19, 0.0  ;;  %v5599_v14 = vadd.f32 %v5598_v45, %v5597_v47 }
0x165d   :  { %v5601_v12 = vrot.slane %v5600_v38, 4 }
0x165f   :  { %v5602_v2 = vadd.f32 %v5601_v12, %v5600_v38 }
0x1660   :  { %5541 = vperm.xlu1 %6242, %v5444_v37   ;;  %v5563_v37 = vmul.f32 %v5512_v63, %v8087_v15 }
0x1661   :  { %v5506_v42 = vpop.permute.xlu1 %5505  ;;  %v5603_v1 = vrot.slane %v5602_v2, 2 }
0x1662   :  { %v5562_v10 = vmul.f32 %v5506_v42, %v8049_v32  ;;  %v5609_v32 = vadd.f32 %v5608_v34, %v5607_v5  ;;  %v5628_v29 = vsel %vm5571_vm6, %v5563_v37, 0.0 }
0x1663   :  { %v5604_v59 = vadd.f32 %v5603_v1, %v5602_v2  ;;  %v5629_v12 = vrot.slane %v5628_v29, 4 }
0x1664   :  { %v5621_v22 = vsel %vm5571_vm6, %v5562_v10, 0.0  ;;  %v5610_v44 = vrot.slane %v5609_v32, 2 }
0x1665   :  { %v5622_v56 = vrot.slane %v5621_v22, 4  ;;  %v5605_v6 = vrot.slane %v5604_v59, 1  ;;  %v5630_v34 = vadd.f32 %v5629_v12, %v5628_v29 }
0x1666   :  { %v5611_v19 = vadd.f32 %v5610_v44, %v5609_v32 }
0x1667   :  { %v5623_v9 = vadd.f32 %v5622_v56, %v5621_v22  ;;  %v5606_v15 = vadd.f32 %v5605_v6, %v5604_v59  ;;  %v5637_v22 = vadd.f32 %v5636_v3, %v5635_v27 }
0x1668   :  { %v5612_v0 = vrot.slane %v5611_v19, 1 }
0x1669   :  { %v5624_v20 = vrot.slane %v5623_v9, 2  ;;  %v5638_v32 = vrot.slane %v5637_v22, 2 }
0x166a   :  { %v5613_v2 = vadd.f32 %v5612_v0, %v5611_v19 }
0x166b   :  { %v5625_v60 = vadd.f32 %v5624_v20, %v5623_v9  ;;  %v5639_v35 = vadd.f32 %v5638_v32, %v5637_v22  ;;  %v5747_v32 = vld [vmem:[%s8974_s9] sm:$0x1] }
0x166d   :  { %v5626_v41 = vrot.slane %v5625_v60, 1  ;;  %v5640_v6 = vrot.slane %v5639_v35, 1 }
0x166f   :  { %v5627_v7 = vadd.f32 %v5626_v41, %v5625_v60  ;;  %v5641_v60 = vadd.f32 %v5640_v6, %v5639_v35  ;;  %v8975_v35 = vld [vmem:[#allocation33_spill] sm:$0xff] }
0x1670   :  { %v5813_v6 = vld [vmem:[#allocation10 + $0x18] sm:$0xff] }
0x1671   :  { %5836 = vmatpush.msrb.mxu0 %v5813_v6 }
0x16a5   :  { %v5548_v10 = vpop.permute.xlu2 %5547 }
0x16a6   :  { %v5569_v55 = vmul.f32 %v5548_v10, %v8152_v39 }
0x16ba   :  { %v5500_v58 = vpop.permute.xlu0 %5499 }
0x16bb   :  { %v5561_v30 = vmul.f32 %v5500_v58, %v8043_v8  ;;  %v5585_v8 = vadd.f32 %v5584_v18, %v5583_v17  ;;  %v5670_v17 = vsel %vm5571_vm6, %v5569_v55, 0.0  ;;  %v5631_v58 = vrot.slane %v5630_v34, 2 }
0x16bd   :  { %v5614_v21 = vsel %vm5571_vm6, %v5561_v30, 0.0  ;;  %v5700_v31 = vsel %vm3670_vm13, %v5585_v8, %v5578_v13  ;;  %v5671_v30 = vrot.slane %v5670_v17, 4  ;;  %v5632_v45 = vadd.f32 %v5631_v58, %v5630_v34 }
0x16be   :  { %v5615_v33 = vrot.slane %v5614_v21, 4  ;;  %v5701_v46 = vsel %vm3672_vm14, %v5592_v23, %v5700_v31 }
0x16bf   :  { %v5702_v25 = vsel %vm3674_vm15, %v5599_v14, %v5701_v46  ;;  %v5633_v27 = vrot.slane %v5632_v45, 1 }
0x16c0   :  { %v5616_v4 = vadd.f32 %v5615_v33, %v5614_v21  ;;  %v5703_v63 = vsel %vm3676_vm1, %v5606_v15, %v5702_v25  ;;  %v5672_v21 = vadd.f32 %v5671_v30, %v5670_v17  ;;  %v5748_v17 = vmul.f32 8.0, %v5747_v32  ;;  %v5870_v32 = vld [vmem:[%s6975_s27 + $0x28] sm:$0xff] }
0x16c1   :  { %v5704_v1 = vsel %vm3678_vm2, %v5613_v2, %v5703_v63  ;;  %v5634_v31 = vadd.f32 %v5633_v27, %v5632_v45 }
0x16c2   :  { %v5617_v38 = vrot.slane %v5616_v4, 2  ;;  %v5536_v42 = vpop.permute.xlu0 %5535  ;;  %v5673_v29 = vrot.slane %v5672_v21, 2 }
0x16c3   :  { %v5567_v5 = vmul.f32 %v5536_v42, %v8113_v52  ;;  %v5707_v10 = vsel %vm3670_vm13, %v5641_v60, %v5634_v31 }
0x16c4   :  { %v5618_v51 = vadd.f32 %v5617_v38, %v5616_v4  ;;  %v5674_v12 = vadd.f32 %v5673_v29, %v5672_v21  ;;  %v5878_v29 = vld [vmem:[%s6975_s27 + $0x68] sm:$0xff] }
0x16c5   :  { %v5656_v56 = vsel %vm5571_vm6, %v5567_v5, 0.0 }
0x16c6   :  { %v5619_v11 = vrot.slane %v5618_v51, 1  ;;  %v5657_v9 = vrot.slane %v5656_v56, 4 }
0x16c8   :  { %v5620_v61 = vadd.f32 %v5619_v11, %v5618_v51  ;;  %v5658_v37 = vadd.f32 %v5657_v9, %v5656_v56  ;;  %v5675_v11 = vrot.slane %v5674_v12, 1 }
0x16ca   :  { %v5554_v52 = vpop.permute.xlu0 %5553  ;;  %v5705_v26 = vsel %vm3680_vm4, %v5620_v61, %v5704_v1  ;;  %v5524_v36 = vpop.permute.xlu1 %5523  ;;  %v5659_v19 = vrot.slane %v5658_v37, 2  ;;  %v5676_v34 = vadd.f32 %v5675_v11, %v5674_v12 }
0x16cb   :  { %v5570_v47 = vmul.f32 %v5554_v52, %v8134_v53  ;;  %v5706_v39 = vsel %vm3682_vm3, %v5627_v7, %v5705_v26  ;;  %v5565_v59 = vmul.f32 %v5524_v36, %v8107_v24  ;;  %v5652_v53 = vrot.slane %v5651_v28, 2 }
0x16cc   :  { %5714 = vrot.lane.b32.xlu1 %v5706_v39, %s6825_s21  ;;  %v5660_v42 = vadd.f32 %v5659_v19, %v5658_v37  ;;  %v5750_v36 = vperm.slane %v5748_v17, 0  ;;  %v5869_v17 = vld [vmem:[%s6975_s27 + $0x20] sm:$0xff] }
0x16cd   :  { %v5677_v44 = vsel %vm5571_vm6, %v5570_v47, 0.0  ;;  %v5642_v18 = vsel %vm5571_vm6, %v5565_v59, 0.0  ;;  %v5653_v4 = vadd.f32 %v5652_v53, %v5651_v28 }
0x16ce   :  { %v5643_v43 = vrot.slane %v5642_v18, 4  ;;  %v5678_v54 = vrot.slane %v5677_v44, 4  ;;  %v5661_v25 = vrot.slane %v5660_v42, 1 }
0x16cf   :  { %v5654_v0 = vrot.slane %v5653_v4, 1 }
0x16d0   :  { %v5644_v20 = vadd.f32 %v5643_v43, %v5642_v18  ;;  %v5679_v24 = vadd.f32 %v5678_v54, %v5677_v44  ;;  %v5662_v22 = vadd.f32 %v5661_v25, %v5660_v42 }
0x16d1   :  { %v5655_v5 = vadd.f32 %v5654_v0, %v5653_v4  ;;  %v5880_v4 = vld [vmem:[%s6975_s27 + $0x78] sm:$0xff] }
0x16d2   :  { %v5645_v33 = vrot.slane %v5644_v20, 2  ;;  %v5542_v13 = vpop.permute.xlu1 %5541  ;;  %v5680_v15 = vrot.slane %v5679_v24, 2  ;;  %5885 = vmatpush.msra.mxu1 %v5880_v4 }
0x16d3   :  { %v5568_v23 = vmul.f32 %v5542_v13, %v8129_v49  ;;  %v5810_v13 = vld [vmem:[#allocation10] sm:$0xff] }
0x16d4   :  { %v5646_v8 = vadd.f32 %v5645_v33, %v5644_v20  ;;  %v5681_v51 = vadd.f32 %v5680_v15, %v5679_v24  ;;  %v5812_v33 = vld [vmem:[#allocation10 + $0x10] sm:$0xff]  ;;  %v5811_v24 = vld [vmem:[#allocation10 + $0x8] sm:$0xff] }
0x16d5   :  { %v5663_v14 = vsel %vm5571_vm6, %v5568_v23, 0.0  ;;  %5837 = vmatpush.msrb.mxu0 %v5812_v33 }
0x16d6   :  { %v5647_v50 = vrot.slane %v5646_v8, 1  ;;  %v5664_v38 = vrot.slane %v5663_v14, 4  ;;  %v5682_v63 = vrot.slane %v5681_v51, 1 }
0x16d7   :  { %5838 = vmatpush.msrb.mxu0 %v5811_v24 }
0x16d8   :  { %v5648_v3 = vadd.f32 %v5647_v50, %v5646_v8  ;;  %v5665_v46 = vadd.f32 %v5664_v38, %v5663_v14  ;;  %v5683_v16 = vadd.f32 %v5682_v63, %v5681_v51  ;;  %v5879_v8 = vld [vmem:[%s6975_s27 + $0x70] sm:$0xff]  ;;  %v5877_v50 = vld [vmem:[%s6975_s27 + $0x60] sm:$0xff] }
0x16d9   :  { %5839 = vmatpush.msrb.mxu0 %v5810_v13  ;;  %5886 = vmatpush.msra.mxu1 %v5879_v8  ;;  %v6255_v51 = vld [vmem:[%s8976_s22] ss:$0 sm:$0xff] }
0x16da   :  { %v5666_v49 = vrot.slane %v5665_v46, 2  ;;  %v5708_v41 = vsel %vm3672_vm14, %v5648_v3, %v5707_v10 }
0x16db   :  { %v5709_v2 = vsel %vm3674_vm15, %v5655_v5, %v5708_v41  ;;  %5887 = vmatpush.msra.mxu1 %v5878_v29  ;;  %v6256_v41 = vld [vmem:[%s8977_s5] ss:$0 sm:$0xff]  ;;  %v6258_v29 = vld [vmem:[#allocation13] ss:$0 sm:$0xff] }
0x16dc   :  { %v5667_v40 = vadd.f32 %v5666_v49, %v5665_v46  ;;  %v5710_v61 = vsel %vm3676_vm1, %v5662_v22, %v5709_v2 }
0x16dd   :  { %5888 = vmatpush.msra.mxu1 %v5877_v50 }
0x16de   :  { %v5668_v62 = vrot.slane %v5667_v40, 1 }
0x16e0   :  { %v5669_v55 = vadd.f32 %v5668_v62, %v5667_v40 }
0x16e2   :  { %v5711_v7 = vsel %vm3678_vm2, %v5669_v55, %v5710_v61 }
0x16e3   :  { %v5712_v56 = vsel %vm3680_vm4, %v5676_v34, %v5711_v7  ;;  %v5875_v7 = vld [vmem:[%s6975_s27 + $0x50] sm:$0xff] }
0x16e4   :  { %v5713_v1 = vsel %vm3682_vm3, %v5683_v16, %v5712_v56  ;;  %v5876_v16 = vld [vmem:[%s6975_s27 + $0x58] sm:$0xff]  ;;  %v5874_v56 = vld [vmem:[%s6975_s27 + $0x48] sm:$0xff] }
0x16e5   :  { %5716 = vrot.lane.b32.xlu2 %v5713_v1, %s6825_s21  ;;  %5889 = vmatpush.msra.mxu1 %v5876_v16  ;;  %v5873_v1 = vld [vmem:[%s6975_s27 + $0x40] sm:$0xff] }
0x16e7   :  { %5890 = vmatpush.msra.mxu1 %v5875_v7 }
0x16e9   :  { %5891 = vmatpush.msra.mxu1 %v5874_v56 }
0x16eb   :  { %5892 = vmatpush.msra.mxu1 %v5873_v1 }
0x173e   :  { %v5715_v52 = vpop.permute.xlu1 %5714 }
0x173f   :  { %6188 = vmatmul.msk.f32.vlgmr.msra.gmra.mxu3 %vm399_vm8, %v5715_v52  ;;  %v5717_v26 = vpop.permute.xlu2 %5716  ;;  %v5872_v52 = vld [vmem:[%s6975_s27 + $0x38] sm:$0xff] }
0x1740   :  { %5893 = vmatpush.msra.mxu1 %v5872_v52 }
0x1747   :  { %6189 = vmatmul.msk.f32.gmra.mxu3 %vm399_vm8, %v5717_v26  ;;  %v5871_v26 = vld [vmem:[%s6975_s27 + $0x30] sm:$0xff] }
0x1748   :  { %5894 = vmatpush.msra.mxu1 %v5871_v26 }
0x174a   :  { %5895 = vmatpush.msra.mxu1 %v5870_v32 }
0x174c   :  { %5896 = vmatpush.msra.mxu1 %v5869_v17 }
0x17c2   :  { %v5739_v47 = vpop.f32.mrf.mxu3 }
0x17c3   :  { %v5745_v39 = vadd.f32 %v5739_v47, %v8569_v57  ;;  %v5867_v47 = vld [vmem:[%s6975_s27 + $0x10] sm:$0xff] }
0x17c5   :  { %v8790_v9 = vadd.f32 %v5750_v36, %v5745_v39  ;;  %v5866_v39 = vld [vmem:[%s6975_s27 + $0x8] sm:$0xff] }
0x17c7   :  { %v5756_v59 = vsel %vm234_vm0, %v8790_v9, 0.0 }
0x17c8   :  { %5757 = vadd.xlane.f32.xlu0 %v5756_v59  ;;  %v5865_v59 = vld [vmem:[%s6975_s27] sm:$0xff] }
0x17ca   :  { %v5742_v58 = vpop.f32.mrf.mxu3 }
0x17cb   :  { %v5746_v28 = vadd.f32 %v5742_v58, %v8577_v48  ;;  %v6257_v58 = vld [vmem:[#allocation11] ss:$0 sm:$0xff] }
0x17cd   :  { %v8795_v44 = vadd.f32 %v5750_v36, %v5746_v28  ;;  %v5868_v36 = vld [vmem:[%s6975_s27 + $0x18] sm:$0xff]  ;;  %s6826_s27 = smov [#allocation14]  }
0x17ce   :  { %5897 = vmatpush.msra.mxu1 %v5868_v36  ;;  %s5916_s16 = sshll.u32 %s6826_s27, 4  ;;  %s5917_s16 = int_to_ptr.vmem [resolvable:$true] %s5916_s16 }
0x17cf   :  { %v5759_v30 = vsel %vm234_vm0, %v8795_v44, 0.0 }
0x17d0   :  { %5760 = vadd.xlane.f32.xlu1 %v5759_v30  ;;  %5898 = vmatpush.msra.mxu1 %v5867_v47 }
0x17d2   :  { %5899 = vmatpush.msra.mxu1 %v5866_v39 }
0x17d4   :  { %5900 = vmatpush.msra.mxu1 %v5865_v59 }
0x183b   :  { %v5758_v18 = vpop.xlane.xlu0 %5757 }
0x183c   :  { %v5762_v43 = vmul.f32 %v5758_v18, %v8975_v35 }
0x183e   :  { %v5764_v57 = vsub.f32 %v8790_v9, %v5762_v43 }
0x1840   :  { %v5766_v54 = vmul.f32 %v5764_v57, %v5764_v57 }
0x1842   :  { %v5768_v37 = vsel %vm234_vm0, %v5766_v54, 0.0 }
0x1843   :  { %v5761_v45 = vpop.xlane.xlu1 %5760  ;;  %5769 = vadd.xlane.f32.xlu2 %v5768_v37 }
0x1844   :  { %v5763_v53 = vmul.f32 %v5761_v45, %v8975_v35 }
0x1846   :  { %v5765_v48 = vsub.f32 %v8795_v44, %v5763_v53 }
0x1848   :  { %v5767_v20 = vmul.f32 %v5765_v48, %v5765_v48 }
0x184a   :  { %v5771_v21 = vsel %vm234_vm0, %v5767_v20, 0.0 }
0x184b   :  { %5772 = vadd.xlane.f32.xlu0 %v5771_v21 }
0x18b6   :  { %v5770_v19 = vpop.xlane.xlu2 %5769 }
0x18b7   :  { %v5774_v23 = vmul.f32 %v5770_v19, %v8975_v35 }
0x18b9   :  { %v5776_v27 = vadd.f32 1e-05, %v5774_v23 }
0x18bb   :  { %6573 = vrsqrt.f32 %v5776_v27  ;;  %vm5784_vm7 = vweird.f32 %v5776_v27 }
0x18be   :  { %v5773_v14 = vpop.xlane.xlu0 %5772 }
0x18bf   :  { %v5775_v60 = vmul.f32 %v5773_v14, %v8975_v35 }
0x18c1   :  { %v6574_v15 = vpop.eup %6573  ;;  %v5777_v38 = vadd.f32 1e-05, %v5775_v60 }
0x18c2   :  { %v5779_v42 = vmul.f32 %v6574_v15, %v5776_v27  ;;  %vm5785_vm8 = vweird.f32 %v6574_v15 }
0x18c3   :  { %6575 = vrsqrt.f32 %v5777_v38  ;;  %vm5786_vm10 = vmor %vm5784_vm7, %vm5785_vm8  ;;  %vm5794_vm12 = vweird.f32 %v5777_v38 }
0x18c4   :  { %v5780_v31 = vmul.f32 %v6574_v15, %v5779_v42 }
0x18c6   :  { %v5781_v0 = vmul.f32 0.5, %v5780_v31 }
0x18c8   :  { %v5782_v3 = vsub.f32 1.5, %v5781_v0 }
0x18c9   :  { %v6576_v46 = vpop.eup %6575 }
0x18ca   :  { %v5783_v12 = vmul.f32 %v6574_v15, %v5782_v3  ;;  %v5789_v10 = vmul.f32 %v6576_v46, %v5777_v38  ;;  %vm5795_vm11 = vweird.f32 %v6576_v46 }
0x18cb   :  { %vm5796_vm9 = vmor %vm5794_vm12, %vm5795_vm11 }
0x18cc   :  { %v5787_v49 = vsel %vm5786_vm10, %v6574_v15, %v5783_v12  ;;  %v5790_v25 = vmul.f32 %v6576_v46, %v5789_v10 }
0x18cd   :  { %v5798_v5 = vmul.f32 %v5787_v49, %v5764_v57 }
0x18ce   :  { %v5791_v40 = vmul.f32 0.5, %v5790_v25 }
0x18cf   :  { %v5803_v11 = vmul.f32 %v6255_v51, %v5798_v5 }
0x18d0   :  { %v5792_v63 = vsub.f32 1.5, %v5791_v40 }
0x18d1   :  { %v5808_v62 = vadd.f32 %v6256_v41, %v5803_v11 }
0x18d2   :  { %v5793_v2 = vmul.f32 %v6576_v46, %v5792_v63 }
0x18d3   :  { %6190 = vmatmul.msk.f32.vlgmr.msrb.gmra.mxu0 %vm234_vm0, %v5808_v62 }
0x18d4   :  { %v5797_v22 = vsel %vm5796_vm9, %v6576_v46, %v5793_v2 }
0x18d5   :  { %v5799_v55 = vmul.f32 %v5797_v22, %v5765_v48 }
0x18d7   :  { %v5804_v34 = vmul.f32 %v6255_v51, %v5799_v55 }
0x18d9   :  { %v5809_v61 = vadd.f32 %v6256_v41, %v5804_v34 }
0x18db   :  { %6191 = vmatmul.msk.f32.gmra.mxu0 %vm234_vm0, %v5809_v61 }
0x1950   :  { %v5841_v28 = vpop.f32.mrf.mxu0 }
0x1951   :  { %v5842_v30 = vadd.f32 %v6257_v58, %v5841_v28 }
0x1953   :  { %v5849_v18 = vmul.f32 0.044715, %v5842_v30  ;;  %v5847_v24 = vmul.f32 0.5, %v5842_v30 }
0x1955   :  { %v5851_v35 = vmul.f32 %v5849_v18, %v5842_v30 }
0x1957   :  { %v5853_v43 = vmul.f32 %v5851_v35, %v5842_v30 }
0x1958   :  { %v5844_v57 = vpop.f32.mrf.mxu0 }
0x1959   :  { %v5855_v54 = vadd.f32 %v5853_v43, %v5842_v30  ;;  %v5845_v37 = vadd.f32 %v6257_v58, %v5844_v57 }
0x195b   :  { %v5857_v45 = vmul.f32 0.7978846, %v5855_v54  ;;  %v5850_v53 = vmul.f32 0.044715, %v5845_v37  ;;  %v5848_v27 = vmul.f32 0.5, %v5845_v37 }
0x195d   :  { %6577 = vtanh.f32 %v5857_v45  ;;  %v5852_v48 = vmul.f32 %v5850_v53, %v5845_v37 }
0x195f   :  { %v5854_v20 = vmul.f32 %v5852_v48, %v5845_v37 }
0x1961   :  { %v5856_v21 = vadd.f32 %v5854_v20, %v5845_v37 }
0x1963   :  { %v6578_v6 = vpop.eup %6577  ;;  %v5858_v33 = vmul.f32 0.7978846, %v5856_v21 }
0x1964   :  { %v5861_v13 = vadd.f32 1.0, %v6578_v6 }
0x1965   :  { %6579 = vtanh.f32 %v5858_v33 }
0x1966   :  { %v5863_v19 = vmul.f32 %v5861_v13, %v5847_v24 }
0x1968   :  { %5901 = vmatmul.f32.vlgmr.msra.gmra.mxu1 %v5863_v19 }
0x196b   :  { %v6580_v23 = vpop.eup %6579 }
0x196c   :  { %v5862_v4 = vadd.f32 1.0, %v6580_v23 }
0x196e   :  { %v5864_v8 = vmul.f32 %v5862_v4, %v5848_v27 }
0x1970   :  { %5904 = vmatmul.f32.gmra.mxu1 %v5864_v8 }
0x19e5   :  { %v5902_v14 = vpop.f32.mrf.mxu1 }
0x19e6   :  { %v5903_v60 = vadd.f32 %v6258_v29, %v5902_v14 }
0x19e8   :  { %v5908_v50 = vadd.f32 %v5903_v60, %v8790_v9 }
0x19ea   :  { %5910 = vst.msk [vmem:[#allocation14] sm:$0xff] %vm234_vm0, %v5908_v50 }
0x19ed   :  { %v5905_v15 = vpop.f32.mrf.mxu1 }
0x19ee   :  { %v5906_v38 = vadd.f32 %v6258_v29, %v5905_v15 }
0x19f0   :  { %v5909_v42 = vadd.f32 %v5906_v38, %v8795_v44 }
0x19f2   :  { %5911 = vst.msk [vmem:[#allocation14 + $0x8] sm:$0xff] %vm234_vm0, %v5909_v42 }
0x19f3   :  { %6772 = shalt.err (!%p6769_p11)
}
0x19f4   :  { %5924 = dma.vmem_to_hbm [thread:$0]  %s5917_s16, 256, %s5919_s23, [#allocation4], %s6815_s11, %s6815_s11, %s6816_s15  }
0x19f5   :  { %6781 = dma.done.wait [#allocation4], 256  }
0x19f6   :  { %6782 = vsyncadd [#allocation4], 4294967040 }
0x19f7   :  { %5929 = vsyncpa [#allocation3], 1 }
0x19f8   :  { %5930 = vsyncpa [#allocation6], 1 }
0x19f9   :  { %5931 = vsyncpa [#allocation9], 1 }
0x19fa   :  { %5932 = vsyncpa [#allocation12], 1 }
0x19fb   :  { %5933 = vsyncpa [#allocation4], 1 }

</bundles_post_ra>
